<compile_context>
chip_gen: v7x
topology: tpu7x:2x2x1
jax: 0.10.0
libtpu: 0.0.40
codegen_flags: <defaults>
</compile_context>

<pallas_src>
import functools

import jax
import jax.numpy as jnp
from jax.experimental import pallas as pl
from jax.experimental.pallas import tpu as pltpu

BN_EPS = 1e-5


# ---------------------------------------------------------------------------
# Small in-kernel helpers
# ---------------------------------------------------------------------------
def _conv1_rows(x, w1, b1):
    """1x1 conv with C_in=2 as two broadcast FMAs on the VPU."""
    return x[:, 0:1] * w1[0:1, :] + x[:, 1:2] * w1[1:2, :] + b1


def _valid_rows(t, tile, num_valid):
    """Mask (tile, 1) of rows that are real points (not padding)."""
    idx = t * tile + jax.lax.broadcasted_iota(jnp.int32, (tile, 1), 0)
    return idx < num_valid


# ---------------------------------------------------------------------------
# Kernels
# ---------------------------------------------------------------------------
def conv1_stats_kernel(x_ref, w1_ref, b1_ref, s_ref, q_ref,
                       *, tile, num_valid, need_mask):
    """conv1 (VPU) -> per-batch BN1 sum / sumsq accumulation (stats only)."""
    t = pl.program_id(1)
    z = _conv1_rows(x_ref[...], w1_ref[...], b1_ref[...])          # (tile, 64) f32
    if need_mask:
        z = jnp.where(_valid_rows(t, tile, num_valid), z, 0.0)

    @pl.when(t == 0)
    def _():
        s_ref[...] = jnp.zeros_like(s_ref)
        q_ref[...] = jnp.zeros_like(q_ref)

    s_ref[...] += jnp.sum(z, axis=0, keepdims=True)
    q_ref[...] += jnp.sum(z * z, axis=0, keepdims=True)


def conv2_stats_kernel(x_ref, w1_ref, b1_ref, a1_ref, c1_ref, w2_ref, b2_ref,
                       s_ref, q_ref, *, tile, num_valid, need_mask):
    """Recompute conv1 -> BN1+tanh -> conv2 (bf16 MXU) -> BN2 stats only."""
    t = pl.program_id(1)
    z1 = _conv1_rows(x_ref[...], w1_ref[...], b1_ref[...])
    h1 = jnp.tanh(z1 * a1_ref[...] + c1_ref[...])                  # f32
    z2 = jnp.dot(h1.astype(jnp.bfloat16), w2_ref[...],
                 preferred_element_type=jnp.float32) + b2_ref[...]  # (tile, 128)
    if need_mask:
        z2 = jnp.where(_valid_rows(t, tile, num_valid), z2, 0.0)

    @pl.when(t == 0)
    def _():
        s_ref[...] = jnp.zeros_like(s_ref)
        q_ref[...] = jnp.zeros_like(q_ref)

    s_ref[...] += jnp.sum(z2, axis=0, keepdims=True)
    q_ref[...] += jnp.sum(z2 * z2, axis=0, keepdims=True)


def conv3_stats_minmax_kernel(x_ref, w1_ref, b1_ref, a1_ref, c1_ref,
                              w2_ref, b2_ref, a2_ref, c2_ref, w3_ref, b3_ref,
                              s_ref, q_ref, zmax_ref, zmin_ref,
                              *, tile, num_valid, need_mask):
    """Recompute conv1/conv2 -> BN2+tanh -> conv3 (bf16 MXU).
    Accumulate BN3 sum/sumsq and per-batch per-channel max AND min of the raw
    conv3 output -- z3 is never written to HBM."""
    t = pl.program_id(1)
    z1 = _conv1_rows(x_ref[...], w1_ref[...], b1_ref[...])
    h1 = jnp.tanh(z1 * a1_ref[...] + c1_ref[...])
    z2 = jnp.dot(h1.astype(jnp.bfloat16), w2_ref[...],
                 preferred_element_type=jnp.float32) + b2_ref[...]
    h2 = jnp.tanh(z2 * a2_ref[...] + c2_ref[...])
    z3 = jnp.dot(h2.astype(jnp.bfloat16), w3_ref[...],
                 preferred_element_type=jnp.float32) + b3_ref[...]  # (tile, 1024)

    @pl.when(t == 0)
    def _():
        s_ref[...] = jnp.zeros_like(s_ref)
        q_ref[...] = jnp.zeros_like(q_ref)
        zmax_ref[...] = jnp.full(zmax_ref.shape, -jnp.inf, zmax_ref.dtype)
        zmin_ref[...] = jnp.full(zmin_ref.shape, jnp.inf, zmin_ref.dtype)

    if need_mask:
        mask = _valid_rows(t, tile, num_valid)
        zs = jnp.where(mask, z3, 0.0)
        zmx = jnp.where(mask, z3, -jnp.inf)
        zmn = jnp.where(mask, z3, jnp.inf)
    else:
        zs, zmx, zmn = z3, z3, z3

    s_ref[...] += jnp.sum(zs, axis=0, keepdims=True)
    q_ref[...] += jnp.sum(zs * zs, axis=0, keepdims=True)
    zmax_ref[...] = jnp.maximum(zmax_ref[...], jnp.max(zmx, axis=0, keepdims=True))
    zmin_ref[...] = jnp.minimum(zmin_ref[...], jnp.min(zmn, axis=0, keepdims=True))


def head_kernel(zmax_ref, zmin_ref, a3_ref, c3_ref,
                fw1_ref, fb1_ref, fw2_ref, fb2_ref, fw3_ref, fb3_ref,
                iden_ref, out_ref):
    """BN3+tanh max-pool epilogue (monotone trick) + tanh(fc1) -> tanh(fc2)
    -> fc3 + flattened identity."""
    a3 = a3_ref[...]                                   # per-channel BN3 scale
    # tanh is monotone increasing: max_p tanh(a*z_p + c) == tanh(a*max_p z + c)
    # when a >= 0 and tanh(a*min_p z + c) when a < 0.
    zsel = jnp.where(a3 >= 0.0, zmax_ref[...], zmin_ref[...])      # (B, 1024)
    pooled = jnp.tanh(zsel * a3 + c3_ref[...])
    h = jnp.tanh(jnp.dot(pooled.astype(jnp.bfloat16), fw1_ref[...],
                         preferred_element_type=jnp.float32) + fb1_ref[...])
    h = jnp.tanh(jnp.dot(h.astype(jnp.bfloat16), fw2_ref[...],
                         preferred_element_type=jnp.float32) + fb2_ref[...])
    h = jnp.dot(h.astype(jnp.bfloat16), fw3_ref[...],
                preferred_element_type=jnp.float32) + fb3_ref[...]
    out_ref[...] = h + iden_ref[...]


# ---------------------------------------------------------------------------
# Parameters (deterministic, PyTorch-default-style init)
# ---------------------------------------------------------------------------
def init_params(key):
    ks = jax.random.split(key, 6)

    def lin(k, fan_in, fan_out):
        bound = 1.0 / float(fan_in) ** 0.5
        kw, kb = jax.random.split(k)
        w = jax.random.uniform(kw, (fan_in, fan_out), jnp.float32, -bound, bound)
        b = jax.random.uniform(kb, (1, fan_out), jnp.float32, -bound, bound)
        return w, b

    p = {}
    p['w1'], p['b1'] = lin(ks[0], 2, 64)        # Conv1d(2, 64, 1)   weight[:, :, 0].T
    p['w2'], p['b2'] = lin(ks[1], 64, 128)      # Conv1d(64, 128, 1)
    p['w3'], p['b3'] = lin(ks[2], 128, 1024)    # Conv1d(128, 1024, 1)
    p['fw1'], p['fb1'] = lin(ks[3], 1024, 512)  # Linear(1024, 512)
    p['fw2'], p['fb2'] = lin(ks[4], 512, 256)   # Linear(512, 256)
    p['fw3'], p['fb3'] = lin(ks[5], 256, 9)     # Linear(256, 9)
    for name, c in (('1', 64), ('2', 128), ('3', 1024)):   # BN affine defaults
        p['g' + name] = jnp.ones((1, c), jnp.float32)
        p['be' + name] = jnp.zeros((1, c), jnp.float32)
    return p


# ---------------------------------------------------------------------------
# Wrapper
# ---------------------------------------------------------------------------
def _round_up(a, b):
    return (a + b - 1) // b * b


def _vmem_budget_and_tile_cap():
    """Per-generation VMEM limit (with headroom for compiler scratch) and
    point-tile cap (bigger tiles on 128 MiB v5e/v6e than on 64 MiB v7x)."""
    try:
        cap = int(pltpu.get_tpu_info().vmem_capacity_bytes)
    except Exception:
        cap = 64 * 1024 * 1024
    vmem_limit = max(32 * 1024 * 1024, int(cap * 0.75))
    tile_cap = 4096 if cap >= 100 * 1024 * 1024 else 2048
    return vmem_limit, tile_cap


def _bn_scale_shift(s_part, q_part, g, be, m_rows):
    """Fold per-batch partial sum/sumsq into per-channel BN scale & shift.
    Tiny (1, C) JAX glue between passes."""
    s = jnp.sum(s_part, axis=0)                 # (1, C)
    q = jnp.sum(q_part, axis=0)                 # (1, C)
    mean = s / m_rows
    var = jnp.maximum(q / m_rows - mean * mean, 0.0)
    scale = g * jax.lax.rsqrt(var + BN_EPS)
    return scale, be - mean * scale


def stn3d_forward(x_ncw, params):
    B, C, N = x_ncw.shape
    assert C == 2
    m_rows = float(B * N)

    vmem_limit, tile_cap = _vmem_budget_and_tile_cap()

    # Channels-last layout; pad the point axis up to a tile multiple and mask
    # the pad rows out of the BN sums and the max/min inside the kernels.
    x3d = jnp.transpose(x_ncw, (0, 2, 1))                     # (B, N, 2)
    if N <= tile_cap:
        pt_tile = _round_up(N, 8)
    else:
        pt_tile = tile_cap
    n_pad = _round_up(N, pt_tile)
    n_pt = n_pad // pt_tile
    need_mask = (n_pad != N)
    if need_mask:
        x3d = jnp.pad(x3d, ((0, 0), (0, n_pad - N), (0, 0)))
    m_pad = B * n_pad

    # bf16 staging for MXU operands (f32 accumulation in-kernel); conv1 and all
    # BN / tanh math stay f32.
    w2 = params['w2'].astype(jnp.bfloat16)
    w3 = params['w3'].astype(jnp.bfloat16)
    fw1 = params['fw1'].astype(jnp.bfloat16)
    fw2 = params['fw2'].astype(jnp.bfloat16)
    fw3 = params['fw3'].astype(jnp.bfloat16)

    iden = jnp.eye(3, dtype=jnp.float32).reshape(1, 9)

    cp_conv = pltpu.CompilerParams(
        dimension_semantics=("parallel", "arbitrary"),   # batches split across cores
        vmem_limit_bytes=vmem_limit)
    cp_head = pltpu.CompilerParams(
        dimension_semantics=("arbitrary",), vmem_limit_bytes=vmem_limit)

    const = lambda b, t: (0, 0)
    per_batch = lambda b, t: (b, 0, 0)
    x_spec = pl.BlockSpec((None, pt_tile, 2), lambda b, t: (b, t, 0))

    # --- pass 1: conv1 (VPU) -> BN1 stats only -------------------------------
    s1p, q1p = pl.pallas_call(
        functools.partial(conv1_stats_kernel, tile=pt_tile, num_valid=N,
                          need_mask=need_mask),
        out_shape=(jax.ShapeDtypeStruct((B, 1, 64), jnp.float32),
                   jax.ShapeDtypeStruct((B, 1, 64), jnp.float32)),
        grid=(B, n_pt),
        in_specs=[x_spec,
                  pl.BlockSpec((2, 64), const),
                  pl.BlockSpec((1, 64), const)],
        out_specs=(pl.BlockSpec((None, 1, 64), per_batch),
                   pl.BlockSpec((None, 1, 64), per_batch)),
        compiler_params=cp_conv,
    )(x3d, params['w1'], params['b1'])
    a1, c1 = _bn_scale_shift(s1p, q1p, params['g1'], params['be1'], m_rows)

    # --- pass 2: conv1 -> BN1+tanh -> conv2 (bf16 MXU) -> BN2 stats only ------
    ce2 = pl.CostEstimate(
        flops=int(m_pad * (2 * 2 * 64 + 2 * 64 * 128)),
        transcendentals=int(m_pad * 64),
        bytes_accessed=int(m_pad * 2 * 4 + 64 * 128 * 2 + 6 * 64 * 4
                           + 128 * 4 + 2 * B * 128 * 4))
    s2p, q2p = pl.pallas_call(
        functools.partial(conv2_stats_kernel, tile=pt_tile, num_valid=N,
                          need_mask=need_mask),
        out_shape=(jax.ShapeDtypeStruct((B, 1, 128), jnp.float32),
                   jax.ShapeDtypeStruct((B, 1, 128), jnp.float32)),
        grid=(B, n_pt),
        in_specs=[x_spec,
                  pl.BlockSpec((2, 64), const),
                  pl.BlockSpec((1, 64), const),
                  pl.BlockSpec((1, 64), const),
                  pl.BlockSpec((1, 64), const),
                  pl.BlockSpec((64, 128), const),
                  pl.BlockSpec((1, 128), const)],
        out_specs=(pl.BlockSpec((None, 1, 128), per_batch),
                   pl.BlockSpec((None, 1, 128), per_batch)),
        compiler_params=cp_conv,
        cost_estimate=ce2,
    )(x3d, params['w1'], params['b1'], a1, c1, w2, params['b2'])
    a2, c2 = _bn_scale_shift(s2p, q2p, params['g2'], params['be2'], m_rows)

    # --- pass 3: conv stack -> conv3 + BN3 stats + per-batch max/min ----------
    ce3 = pl.CostEstimate(
        flops=int(m_pad * (2 * 2 * 64 + 2 * 64 * 128 + 2 * 128 * 1024)),
        transcendentals=int(m_pad * (64 + 128)),
        bytes_accessed=int(m_pad * 2 * 4 + 64 * 128 * 2 + 128 * 1024 * 2
                           + 1024 * 4 + 4 * B * 1024 * 4))
    s3p, q3p, zmax, zmin = pl.pallas_call(
        functools.partial(conv3_stats_minmax_kernel, tile=pt_tile, num_valid=N,
                          need_mask=need_mask),
        out_shape=(jax.ShapeDtypeStruct((B, 1, 1024), jnp.float32),
                   jax.ShapeDtypeStruct((B, 1, 1024), jnp.float32),
                   jax.ShapeDtypeStruct((B, 1, 1024), jnp.float32),
                   jax.ShapeDtypeStruct((B, 1, 1024), jnp.float32)),
        grid=(B, n_pt),
        in_specs=[x_spec,
                  pl.BlockSpec((2, 64), const),
                  pl.BlockSpec((1, 64), const),
                  pl.BlockSpec((1, 64), const),
                  pl.BlockSpec((1, 64), const),
                  pl.BlockSpec((64, 128), const),
                  pl.BlockSpec((1, 128), const),
                  pl.BlockSpec((1, 128), const),
                  pl.BlockSpec((1, 128), const),
                  pl.BlockSpec((128, 1024), const),
                  pl.BlockSpec((1, 1024), const)],
        out_specs=(pl.BlockSpec((None, 1, 1024), per_batch),
                   pl.BlockSpec((None, 1, 1024), per_batch),
                   pl.BlockSpec((None, 1, 1024), per_batch),
                   pl.BlockSpec((None, 1, 1024), per_batch)),
        compiler_params=cp_conv,
        cost_estimate=ce3,
    )(x3d, params['w1'], params['b1'], a1, c1, w2, params['b2'],
      a2, c2, w3, params['b3'])
    a3, c3 = _bn_scale_shift(s3p, q3p, params['g3'], params['be3'], m_rows)

    # --- pass 4: BN3+tanh max-pool epilogue + FC head -------------------------
    const1 = lambda i: (0, 0)
    out9 = pl.pallas_call(
        head_kernel,
        out_shape=jax.ShapeDtypeStruct((B, 9), jnp.float32),
        grid=(1,),
        in_specs=[pl.BlockSpec((B, 1024), const1),
                  pl.BlockSpec((B, 1024), const1),
                  pl.BlockSpec((1, 1024), const1),
                  pl.BlockSpec((1, 1024), const1),
                  pl.BlockSpec((1024, 512), const1),
                  pl.BlockSpec((1, 512), const1),
                  pl.BlockSpec((512, 256), const1),
                  pl.BlockSpec((1, 256), const1),
                  pl.BlockSpec((256, 9), const1),
                  pl.BlockSpec((1, 9), const1),
                  pl.BlockSpec((1, 9), const1)],
        out_specs=pl.BlockSpec((B, 9), const1),
        compiler_params=cp_head,
    )(zmax.reshape(B, 1024), zmin.reshape(B, 1024), a3, c3,
      fw1, params['fb1'], fw2, params['fb2'], fw3, params['fb3'], iden)

    return out9.reshape(B, 3, 3)


# ---------------------------------------------------------------------------
# Pure-JAX f32 reference (same train-mode-BN / tanh semantics)
# ---------------------------------------------------------------------------
def stn3d_reference(x_ncw, params):
    B, C, N = x_ncw.shape
    x = jnp.transpose(x_ncw, (0, 2, 1)).reshape(B * N, C)

    def bn(z, g, be):
        mean = jnp.mean(z, axis=0, keepdims=True)
        var = jnp.mean(z * z, axis=0, keepdims=True) - mean * mean
        return (z - mean) * jax.lax.rsqrt(var + BN_EPS) * g + be

    h1 = jnp.tanh(bn(x @ params['w1'] + params['b1'], params['g1'], params['be1']))
    h2 = jnp.tanh(bn(h1 @ params['w2'] + params['b2'], params['g2'], params['be2']))
    h3 = jnp.tanh(bn(h2 @ params['w3'] + params['b3'], params['g3'], params['be3']))
    pooled = jnp.max(h3.reshape(B, N, 1024), axis=1)
    f1 = jnp.tanh(pooled @ params['fw1'] + params['fb1'])
    f2 = jnp.tanh(f1 @ params['fw2'] + params['fb2'])
    f3 = f2 @ params['fw3'] + params['fb3']
    return (f3 + jnp.eye(3, dtype=jnp.float32).reshape(1, 9)).reshape(B, 3, 3)


if __name__ == "__main__":
    key = jax.random.PRNGKey(0)
    kx, kp = jax.random.split(key)
    B, N = 2, 16
    x = jax.random.normal(kx, (B, 2, N), jnp.float32)   # PyTorch NCW input (B, 2, N)
    params = init_params(kp)

    out = jax.jit(stn3d_forward)(x, params)
    jax.block_until_ready(out)
    assert out.shape == (B, 3, 3) and out.dtype == jnp.float32

    ref = stn3d_reference(x, params)
    err = float(jnp.max(jnp.abs(out - ref)))
    assert err < 1e-1, f"max abs error vs f32 reference: {err}"
    print("KERNEL_OK")
</pallas_src>

<mosaic_0001>
module attributes {stable_mosaic.version = 11 : i64} {
  func.func @conv1_stats_kernel(%arg0: i32, %arg1: i32, %arg2: memref<1x16x2xf32, #tpu.memory_space<vmem>>, %arg3: memref<2x64xf32, #tpu.memory_space<vmem>>, %arg4: memref<1x64xf32, #tpu.memory_space<vmem>>, %arg5: memref<1x1x64xf32, #tpu.memory_space<vmem>>, %arg6: memref<1x1x64xf32, #tpu.memory_space<vmem>>) attributes {dimension_semantics = [#tpu.dimension_semantics<parallel>, #tpu.dimension_semantics<arbitrary>], iteration_bounds = array<i64: 2, 1>, scalar_prefetch = 0 : i64, scratch_operands = 0 : i64, tpu.core_type = #tpu.core_type<tc>, window_params = [{transform_indices = @transform_0, window_bounds = array<i64: 1, 16, 2>}, {pipeline_mode = #tpu.pipeline_mode<synchronous>, transform_indices = @transform_1, window_bounds = array<i64: 2, 64>}, {pipeline_mode = #tpu.pipeline_mode<synchronous>, transform_indices = @transform_2, window_bounds = array<i64: 1, 64>}, {transform_indices = @transform_3, window_bounds = array<i64: 1, 1, 64>}, {transform_indices = @transform_4, window_bounds = array<i64: 1, 1, 64>}]} {
    %c0 = arith.constant 0 : index
    %c0_0 = arith.constant 0 : index
    %c0_1 = arith.constant 0 : index
    %0 = vector.load %arg2[%c0, %c0_0, %c0_1] : memref<1x16x2xf32, #tpu.memory_space<vmem>>, vector<1x16x2xf32>
    %1 = vector.shape_cast %0 : vector<1x16x2xf32> to vector<16x2xf32>
    %c0_2 = arith.constant 0 : index
    %c0_3 = arith.constant 0 : index
    %2 = vector.load %arg3[%c0_2, %c0_3] : memref<2x64xf32, #tpu.memory_space<vmem>>, vector<2x64xf32>
    %c0_4 = arith.constant 0 : index
    %c0_5 = arith.constant 0 : index
    %3 = vector.load %arg4[%c0_4, %c0_5] : memref<1x64xf32, #tpu.memory_space<vmem>>, vector<1x64xf32>
    %4 = vector.extract_strided_slice %1 {offsets = [0, 0], sizes = [16, 1], strides = [1, 1]} : vector<16x2xf32> to vector<16x1xf32>
    %5 = vector.extract_strided_slice %2 {offsets = [0, 0], sizes = [1, 64], strides = [1, 1]} : vector<2x64xf32> to vector<1x64xf32>
    %6 = vector.broadcast %4 : vector<16x1xf32> to vector<16x64xf32>
    %7 = vector.broadcast %5 : vector<1x64xf32> to vector<16x64xf32>
    %8 = arith.mulf %6, %7 : vector<16x64xf32>
    %9 = vector.extract_strided_slice %1 {offsets = [0, 1], sizes = [16, 1], strides = [1, 1]} : vector<16x2xf32> to vector<16x1xf32>
    %10 = vector.extract_strided_slice %2 {offsets = [1, 0], sizes = [1, 64], strides = [1, 1]} : vector<2x64xf32> to vector<1x64xf32>
    %11 = vector.broadcast %9 : vector<16x1xf32> to vector<16x64xf32>
    %12 = vector.broadcast %10 : vector<1x64xf32> to vector<16x64xf32>
    %13 = arith.mulf %11, %12 : vector<16x64xf32>
    %14 = arith.addf %8, %13 : vector<16x64xf32>
    %15 = vector.broadcast %3 : vector<1x64xf32> to vector<16x64xf32>
    %16 = arith.addf %14, %15 : vector<16x64xf32>
    %c0_i32 = arith.constant 0 : i32
    %17 = arith.cmpi eq, %arg1, %c0_i32 : i32
    %18 = arith.extui %17 : i1 to i32
    %c0_i32_6 = arith.constant 0 : i32
    %19 = arith.cmpi ne, %18, %c0_i32_6 : i32
    scf.if %19 {
      %cst_20 = arith.constant 0.000000e+00 : f32
      %37 = vector.broadcast %cst_20 : f32 to vector<1x64xf32>
      %c0_21 = arith.constant 0 : index
      %c0_22 = arith.constant 0 : index
      %c0_23 = arith.constant 0 : index
      %38 = vector.load %arg5[%c0_21, %c0_22, %c0_23] : memref<1x1x64xf32, #tpu.memory_space<vmem>>, vector<1x1x64xf32>
      %39 = vector.shape_cast %38 : vector<1x1x64xf32> to vector<1x64xf32>
      %40 = vector.shape_cast %37 : vector<1x64xf32> to vector<1x1x64xf32>
      tpu.vector_store %arg5[%c0_21, %c0_22, %c0_23], %40 {strides = array<i32>} : memref<1x1x64xf32, #tpu.memory_space<vmem>>, vector<1x1x64xf32>,
      %cst_24 = arith.constant 0.000000e+00 : f32
      %41 = vector.broadcast %cst_24 : f32 to vector<1x64xf32>
      %c0_25 = arith.constant 0 : index
      %c0_26 = arith.constant 0 : index
      %c0_27 = arith.constant 0 : index
      %42 = vector.load %arg6[%c0_25, %c0_26, %c0_27] : memref<1x1x64xf32, #tpu.memory_space<vmem>>, vector<1x1x64xf32>
      %43 = vector.shape_cast %42 : vector<1x1x64xf32> to vector<1x64xf32>
      %44 = vector.shape_cast %41 : vector<1x64xf32> to vector<1x1x64xf32>
      tpu.vector_store %arg6[%c0_25, %c0_26, %c0_27], %44 {strides = array<i32>} : memref<1x1x64xf32, #tpu.memory_space<vmem>>, vector<1x1x64xf32>,
    } else {
    }
    %c0_7 = arith.constant 0 : index
    %c0_8 = arith.constant 0 : index
    %c0_9 = arith.constant 0 : index
    %20 = vector.load %arg5[%c0_7, %c0_8, %c0_9] : memref<1x1x64xf32, #tpu.memory_space<vmem>>, vector<1x1x64xf32>
    %21 = vector.shape_cast %20 : vector<1x1x64xf32> to vector<1x64xf32>
    %cst = arith.constant dense<0.000000e+00> : vector<64xf32>
    %22 = vector.multi_reduction <add>, %16, %cst [0] : vector<16x64xf32> to vector<64xf32>
    %23 = vector.shape_cast %22 : vector<64xf32> to vector<1x64xf32>
    %24 = arith.addf %21, %23 : vector<1x64xf32>
    %c0_10 = arith.constant 0 : index
    %c0_11 = arith.constant 0 : index
    %c0_12 = arith.constant 0 : index
    %25 = vector.load %arg5[%c0_10, %c0_11, %c0_12] : memref<1x1x64xf32, #tpu.memory_space<vmem>>, vector<1x1x64xf32>
    %26 = vector.shape_cast %25 : vector<1x1x64xf32> to vector<1x64xf32>
    %27 = vector.shape_cast %24 : vector<1x64xf32> to vector<1x1x64xf32>
    tpu.vector_store %arg5[%c0_10, %c0_11, %c0_12], %27 {strides = array<i32>} : memref<1x1x64xf32, #tpu.memory_space<vmem>>, vector<1x1x64xf32>,
    %c0_13 = arith.constant 0 : index
    %c0_14 = arith.constant 0 : index
    %c0_15 = arith.constant 0 : index
    %28 = vector.load %arg6[%c0_13, %c0_14, %c0_15] : memref<1x1x64xf32, #tpu.memory_space<vmem>>, vector<1x1x64xf32>
    %29 = vector.shape_cast %28 : vector<1x1x64xf32> to vector<1x64xf32>
    %30 = arith.mulf %16, %16 : vector<16x64xf32>
    %cst_16 = arith.constant dense<0.000000e+00> : vector<64xf32>
    %31 = vector.multi_reduction <add>, %30, %cst_16 [0] : vector<16x64xf32> to vector<64xf32>
    %32 = vector.shape_cast %31 : vector<64xf32> to vector<1x64xf32>
    %33 = arith.addf %29, %32 : vector<1x64xf32>
    %c0_17 = arith.constant 0 : index
    %c0_18 = arith.constant 0 : index
    %c0_19 = arith.constant 0 : index
    %34 = vector.load %arg6[%c0_17, %c0_18, %c0_19] : memref<1x1x64xf32, #tpu.memory_space<vmem>>, vector<1x1x64xf32>
    %35 = vector.shape_cast %34 : vector<1x1x64xf32> to vector<1x64xf32>
    %36 = vector.shape_cast %33 : vector<1x64xf32> to vector<1x1x64xf32>
    tpu.vector_store %arg6[%c0_17, %c0_18, %c0_19], %36 {strides = array<i32>} : memref<1x1x64xf32, #tpu.memory_space<vmem>>, vector<1x1x64xf32>,
    return
  }
  func.func @transform_0(%arg0: i32, %arg1: i32) -> (i32, i32, i32) {
    %c0_i32 = arith.constant 0 : i32
    %c0_i32_0 = arith.constant 0 : i32
    return %arg0, %arg1, %c0_i32 : i32, i32, i32
  }
  func.func @transform_1(%arg0: i32, %arg1: i32) -> (i32, i32) {
    %c0_i32 = arith.constant 0 : i32
    %c0_i32_0 = arith.constant 0 : i32
    %c0_i32_1 = arith.constant 0 : i32
    return %c0_i32, %c0_i32_0 : i32, i32
  }
  func.func @transform_2(%arg0: i32, %arg1: i32) -> (i32, i32) {
    %c0_i32 = arith.constant 0 : i32
    %c0_i32_0 = arith.constant 0 : i32
    %c0_i32_1 = arith.constant 0 : i32
    return %c0_i32, %c0_i32_0 : i32, i32
  }
  func.func @transform_3(%arg0: i32, %arg1: i32) -> (i32, i32, i32) {
    %c0_i32 = arith.constant 0 : i32
    %c0_i32_0 = arith.constant 0 : i32
    %c0_i32_1 = arith.constant 0 : i32
    return %arg0, %c0_i32, %c0_i32_0 : i32, i32, i32
  }
  func.func @transform_4(%arg0: i32, %arg1: i32) -> (i32, i32, i32) {
    %c0_i32 = arith.constant 0 : i32
    %c0_i32_0 = arith.constant 0 : i32
    %c0_i32_1 = arith.constant 0 : i32
    return %arg0, %c0_i32, %c0_i32_0 : i32, i32, i32
  }
}

module attributes {stable_mosaic.version = 11 : i64} {
  func.func @conv2_stats_kernel(%arg0: i32, %arg1: i32, %arg2: memref<1x16x2xf32, #tpu.memory_space<vmem>>, %arg3: memref<2x64xf32, #tpu.memory_space<vmem>>, %arg4: memref<1x64xf32, #tpu.memory_space<vmem>>, %arg5: memref<1x64xf32, #tpu.memory_space<vmem>>, %arg6: memref<1x64xf32, #tpu.memory_space<vmem>>, %arg7: memref<64x128xbf16, #tpu.memory_space<vmem>>, %arg8: memref<1x128xf32, #tpu.memory_space<vmem>>, %arg9: memref<1x1x128xf32, #tpu.memory_space<vmem>>, %arg10: memref<1x1x128xf32, #tpu.memory_space<vmem>>) attributes {dimension_semantics = [#tpu.dimension_semantics<parallel>, #tpu.dimension_semantics<arbitrary>], iteration_bounds = array<i64: 2, 1>, scalar_prefetch = 0 : i64, scratch_operands = 0 : i64, tpu.core_type = #tpu.core_type<tc>, window_params = [{transform_indices = @transform_0, window_bounds = array<i64: 1, 16, 2>}, {pipeline_mode = #tpu.pipeline_mode<synchronous>, transform_indices = @transform_1, window_bounds = array<i64: 2, 64>}, {pipeline_mode = #tpu.pipeline_mode<synchronous>, transform_indices = @transform_2, window_bounds = array<i64: 1, 64>}, {pipeline_mode = #tpu.pipeline_mode<synchronous>, transform_indices = @transform_3, window_bounds = array<i64: 1, 64>}, {pipeline_mode = #tpu.pipeline_mode<synchronous>, transform_indices = @transform_4, window_bounds = array<i64: 1, 64>}, {pipeline_mode = #tpu.pipeline_mode<synchronous>, transform_indices = @transform_5, window_bounds = array<i64: 64, 128>}, {pipeline_mode = #tpu.pipeline_mode<synchronous>, transform_indices = @transform_6, window_bounds = array<i64: 1, 128>}, {transform_indices = @transform_7, window_bounds = array<i64: 1, 1, 128>}, {transform_indices = @transform_8, window_bounds = array<i64: 1, 1, 128>}]} {
    %c0 = arith.constant 0 : index
    %c0_0 = arith.constant 0 : index
    %c0_1 = arith.constant 0 : index
    %0 = vector.load %arg2[%c0, %c0_0, %c0_1] : memref<1x16x2xf32, #tpu.memory_space<vmem>>, vector<1x16x2xf32>
    %1 = vector.shape_cast %0 : vector<1x16x2xf32> to vector<16x2xf32>
    %c0_2 = arith.constant 0 : index
    %c0_3 = arith.constant 0 : index
    %2 = vector.load %arg3[%c0_2, %c0_3] : memref<2x64xf32, #tpu.memory_space<vmem>>, vector<2x64xf32>
    %c0_4 = arith.constant 0 : index
    %c0_5 = arith.constant 0 : index
    %3 = vector.load %arg4[%c0_4, %c0_5] : memref<1x64xf32, #tpu.memory_space<vmem>>, vector<1x64xf32>
    %4 = vector.extract_strided_slice %1 {offsets = [0, 0], sizes = [16, 1], strides = [1, 1]} : vector<16x2xf32> to vector<16x1xf32>
    %5 = vector.extract_strided_slice %2 {offsets = [0, 0], sizes = [1, 64], strides = [1, 1]} : vector<2x64xf32> to vector<1x64xf32>
    %6 = vector.broadcast %4 : vector<16x1xf32> to vector<16x64xf32>
    %7 = vector.broadcast %5 : vector<1x64xf32> to vector<16x64xf32>
    %8 = arith.mulf %6, %7 : vector<16x64xf32>
    %9 = vector.extract_strided_slice %1 {offsets = [0, 1], sizes = [16, 1], strides = [1, 1]} : vector<16x2xf32> to vector<16x1xf32>
    %10 = vector.extract_strided_slice %2 {offsets = [1, 0], sizes = [1, 64], strides = [1, 1]} : vector<2x64xf32> to vector<1x64xf32>
    %11 = vector.broadcast %9 : vector<16x1xf32> to vector<16x64xf32>
    %12 = vector.broadcast %10 : vector<1x64xf32> to vector<16x64xf32>
    %13 = arith.mulf %11, %12 : vector<16x64xf32>
    %14 = arith.addf %8, %13 : vector<16x64xf32>
    %15 = vector.broadcast %3 : vector<1x64xf32> to vector<16x64xf32>
    %16 = arith.addf %14, %15 : vector<16x64xf32>
    %c0_6 = arith.constant 0 : index
    %c0_7 = arith.constant 0 : index
    %17 = vector.load %arg5[%c0_6, %c0_7] : memref<1x64xf32, #tpu.memory_space<vmem>>, vector<1x64xf32>
    %18 = vector.broadcast %17 : vector<1x64xf32> to vector<16x64xf32>
    %19 = arith.mulf %16, %18 : vector<16x64xf32>
    %c0_8 = arith.constant 0 : index
    %c0_9 = arith.constant 0 : index
    %20 = vector.load %arg6[%c0_8, %c0_9] : memref<1x64xf32, #tpu.memory_space<vmem>>, vector<1x64xf32>
    %21 = vector.broadcast %20 : vector<1x64xf32> to vector<16x64xf32>
    %22 = arith.addf %19, %21 : vector<16x64xf32>
    %23 = math.tanh %22 : vector<16x64xf32>
    %24 = arith.truncf %23 : vector<16x64xf32> to vector<16x64xbf16>
    %c0_10 = arith.constant 0 : index
    %c0_11 = arith.constant 0 : index
    %25 = vector.load %arg7[%c0_10, %c0_11] : memref<64x128xbf16, #tpu.memory_space<vmem>>, vector<64x128xbf16>
    %cst = arith.constant dense<0.000000e+00> : vector<16x128xf32>
    %26 = tpu.matmul %24, %25, %cst {dimension_numbers = #tpu.dot_dimension_numbers<[1], [0], [0], [1], [0, 0, 1, 1], [], []>} : vector<16x64xbf16>, vector<64x128xbf16>, vector<16x128xf32> -> vector<16x128xf32>
    %c0_12 = arith.constant 0 : index
    %c0_13 = arith.constant 0 : index
    %27 = vector.load %arg8[%c0_12, %c0_13] : memref<1x128xf32, #tpu.memory_space<vmem>>, vector<1x128xf32>
    %28 = vector.broadcast %27 : vector<1x128xf32> to vector<16x128xf32>
    %29 = arith.addf %26, %28 : vector<16x128xf32>
    %c0_i32 = arith.constant 0 : i32
    %30 = arith.cmpi eq, %arg1, %c0_i32 : i32
    %31 = arith.extui %30 : i1 to i32
    %c0_i32_14 = arith.constant 0 : i32
    %32 = arith.cmpi ne, %31, %c0_i32_14 : i32
    scf.if %32 {
      %cst_29 = arith.constant 0.000000e+00 : f32
      %50 = vector.broadcast %cst_29 : f32 to vector<1x128xf32>
      %c0_30 = arith.constant 0 : index
      %c0_31 = arith.constant 0 : index
      %c0_32 = arith.constant 0 : index
      %51 = vector.load %arg9[%c0_30, %c0_31, %c0_32] : memref<1x1x128xf32, #tpu.memory_space<vmem>>, vector<1x1x128xf32>
      %52 = vector.shape_cast %51 : vector<1x1x128xf32> to vector<1x128xf32>
      %53 = vector.shape_cast %50 : vector<1x128xf32> to vector<1x1x128xf32>
      tpu.vector_store %arg9[%c0_30, %c0_31, %c0_32], %53 {strides = array<i32>} : memref<1x1x128xf32, #tpu.memory_space<vmem>>, vector<1x1x128xf32>,
      %cst_33 = arith.constant 0.000000e+00 : f32
      %54 = vector.broadcast %cst_33 : f32 to vector<1x128xf32>
      %c0_34 = arith.constant 0 : index
      %c0_35 = arith.constant 0 : index
      %c0_36 = arith.constant 0 : index
      %55 = vector.load %arg10[%c0_34, %c0_35, %c0_36] : memref<1x1x128xf32, #tpu.memory_space<vmem>>, vector<1x1x128xf32>
      %56 = vector.shape_cast %55 : vector<1x1x128xf32> to vector<1x128xf32>
      %57 = vector.shape_cast %54 : vector<1x128xf32> to vector<1x1x128xf32>
      tpu.vector_store %arg10[%c0_34, %c0_35, %c0_36], %57 {strides = array<i32>} : memref<1x1x128xf32, #tpu.memory_space<vmem>>, vector<1x1x128xf32>,
    } else {
    }
    %c0_15 = arith.constant 0 : index
    %c0_16 = arith.constant 0 : index
    %c0_17 = arith.constant 0 : index
    %33 = vector.load %arg9[%c0_15, %c0_16, %c0_17] : memref<1x1x128xf32, #tpu.memory_space<vmem>>, vector<1x1x128xf32>
    %34 = vector.shape_cast %33 : vector<1x1x128xf32> to vector<1x128xf32>
    %cst_18 = arith.constant dense<0.000000e+00> : vector<128xf32>
    %35 = vector.multi_reduction <add>, %29, %cst_18 [0] : vector<16x128xf32> to vector<128xf32>
    %36 = vector.shape_cast %35 : vector<128xf32> to vector<1x128xf32>
    %37 = arith.addf %34, %36 : vector<1x128xf32>
    %c0_19 = arith.constant 0 : index
    %c0_20 = arith.constant 0 : index
    %c0_21 = arith.constant 0 : index
    %38 = vector.load %arg9[%c0_19, %c0_20, %c0_21] : memref<1x1x128xf32, #tpu.memory_space<vmem>>, vector<1x1x128xf32>
    %39 = vector.shape_cast %38 : vector<1x1x128xf32> to vector<1x128xf32>
    %40 = vector.shape_cast %37 : vector<1x128xf32> to vector<1x1x128xf32>
    tpu.vector_store %arg9[%c0_19, %c0_20, %c0_21], %40 {strides = array<i32>} : memref<1x1x128xf32, #tpu.memory_space<vmem>>, vector<1x1x128xf32>,
    %c0_22 = arith.constant 0 : index
    %c0_23 = arith.constant 0 : index
    %c0_24 = arith.constant 0 : index
    %41 = vector.load %arg10[%c0_22, %c0_23, %c0_24] : memref<1x1x128xf32, #tpu.memory_space<vmem>>, vector<1x1x128xf32>
    %42 = vector.shape_cast %41 : vector<1x1x128xf32> to vector<1x128xf32>
    %43 = arith.mulf %29, %29 : vector<16x128xf32>
    %cst_25 = arith.constant dense<0.000000e+00> : vector<128xf32>
    %44 = vector.multi_reduction <add>, %43, %cst_25 [0] : vector<16x128xf32> to vector<128xf32>
    %45 = vector.shape_cast %44 : vector<128xf32> to vector<1x128xf32>
    %46 = arith.addf %42, %45 : vector<1x128xf32>
    %c0_26 = arith.constant 0 : index
    %c0_27 = arith.constant 0 : index
    %c0_28 = arith.constant 0 : index
    %47 = vector.load %arg10[%c0_26, %c0_27, %c0_28] : memref<1x1x128xf32, #tpu.memory_space<vmem>>, vector<1x1x128xf32>
    %48 = vector.shape_cast %47 : vector<1x1x128xf32> to vector<1x128xf32>
    %49 = vector.shape_cast %46 : vector<1x128xf32> to vector<1x1x128xf32>
    tpu.vector_store %arg10[%c0_26, %c0_27, %c0_28], %49 {strides = array<i32>} : memref<1x1x128xf32, #tpu.memory_space<vmem>>, vector<1x1x128xf32>,
    return
  }
  func.func @transform_0(%arg0: i32, %arg1: i32) -> (i32, i32, i32) {
    %c0_i32 = arith.constant 0 : i32
    %c0_i32_0 = arith.constant 0 : i32
    return %arg0, %arg1, %c0_i32 : i32, i32, i32
  }
  func.func @transform_1(%arg0: i32, %arg1: i32) -> (i32, i32) {
    %c0_i32 = arith.constant 0 : i32
    %c0_i32_0 = arith.constant 0 : i32
    %c0_i32_1 = arith.constant 0 : i32
    return %c0_i32, %c0_i32_0 : i32, i32
  }
  func.func @transform_2(%arg0: i32, %arg1: i32) -> (i32, i32) {
    %c0_i32 = arith.constant 0 : i32
    %c0_i32_0 = arith.constant 0 : i32
    %c0_i32_1 = arith.constant 0 : i32
    return %c0_i32, %c0_i32_0 : i32, i32
  }
  func.func @transform_3(%arg0: i32, %arg1: i32) -> (i32, i32) {
    %c0_i32 = arith.constant 0 : i32
    %c0_i32_0 = arith.constant 0 : i32
    %c0_i32_1 = arith.constant 0 : i32
    return %c0_i32, %c0_i32_0 : i32, i32
  }
  func.func @transform_4(%arg0: i32, %arg1: i32) -> (i32, i32) {
    %c0_i32 = arith.constant 0 : i32
    %c0_i32_0 = arith.constant 0 : i32
    %c0_i32_1 = arith.constant 0 : i32
    return %c0_i32, %c0_i32_0 : i32, i32
  }
  func.func @transform_5(%arg0: i32, %arg1: i32) -> (i32, i32) {
    %c0_i32 = arith.constant 0 : i32
    %c0_i32_0 = arith.constant 0 : i32
    %c0_i32_1 = arith.constant 0 : i32
    return %c0_i32, %c0_i32_0 : i32, i32
  }
  func.func @transform_6(%arg0: i32, %arg1: i32) -> (i32, i32) {
    %c0_i32 = arith.constant 0 : i32
    %c0_i32_0 = arith.constant 0 : i32
    %c0_i32_1 = arith.constant 0 : i32
    return %c0_i32, %c0_i32_0 : i32, i32
  }
  func.func @transform_7(%arg0: i32, %arg1: i32) -> (i32, i32, i32) {
    %c0_i32 = arith.constant 0 : i32
    %c0_i32_0 = arith.constant 0 : i32
    %c0_i32_1 = arith.constant 0 : i32
    return %arg0, %c0_i32, %c0_i32_0 : i32, i32, i32
  }
  func.func @transform_8(%arg0: i32, %arg1: i32) -> (i32, i32, i32) {
    %c0_i32 = arith.constant 0 : i32
    %c0_i32_0 = arith.constant 0 : i32
    %c0_i32_1 = arith.constant 0 : i32
    return %arg0, %c0_i32, %c0_i32_0 : i32, i32, i32
  }
}

module attributes {stable_mosaic.version = 11 : i64} {
  func.func @conv3_stats_minmax_kernel(%arg0: i32, %arg1: i32, %arg2: memref<1x16x2xf32, #tpu.memory_space<vmem>>, %arg3: memref<2x64xf32, #tpu.memory_space<vmem>>, %arg4: memref<1x64xf32, #tpu.memory_space<vmem>>, %arg5: memref<1x64xf32, #tpu.memory_space<vmem>>, %arg6: memref<1x64xf32, #tpu.memory_space<vmem>>, %arg7: memref<64x128xbf16, #tpu.memory_space<vmem>>, %arg8: memref<1x128xf32, #tpu.memory_space<vmem>>, %arg9: memref<1x128xf32, #tpu.memory_space<vmem>>, %arg10: memref<1x128xf32, #tpu.memory_space<vmem>>, %arg11: memref<128x1024xbf16, #tpu.memory_space<vmem>>, %arg12: memref<1x1024xf32, #tpu.memory_space<vmem>>, %arg13: memref<1x1x1024xf32, #tpu.memory_space<vmem>>, %arg14: memref<1x1x1024xf32, #tpu.memory_space<vmem>>, %arg15: memref<1x1x1024xf32, #tpu.memory_space<vmem>>, %arg16: memref<1x1x1024xf32, #tpu.memory_space<vmem>>) attributes {dimension_semantics = [#tpu.dimension_semantics<parallel>, #tpu.dimension_semantics<arbitrary>], iteration_bounds = array<i64: 2, 1>, scalar_prefetch = 0 : i64, scratch_operands = 0 : i64, tpu.core_type = #tpu.core_type<tc>, window_params = [{transform_indices = @transform_0, window_bounds = array<i64: 1, 16, 2>}, {pipeline_mode = #tpu.pipeline_mode<synchronous>, transform_indices = @transform_1, window_bounds = array<i64: 2, 64>}, {pipeline_mode = #tpu.pipeline_mode<synchronous>, transform_indices = @transform_2, window_bounds = array<i64: 1, 64>}, {pipeline_mode = #tpu.pipeline_mode<synchronous>, transform_indices = @transform_3, window_bounds = array<i64: 1, 64>}, {pipeline_mode = #tpu.pipeline_mode<synchronous>, transform_indices = @transform_4, window_bounds = array<i64: 1, 64>}, {pipeline_mode = #tpu.pipeline_mode<synchronous>, transform_indices = @transform_5, window_bounds = array<i64: 64, 128>}, {pipeline_mode = #tpu.pipeline_mode<synchronous>, transform_indices = @transform_6, window_bounds = array<i64: 1, 128>}, {pipeline_mode = #tpu.pipeline_mode<synchronous>, transform_indices = @transform_7, window_bounds = array<i64: 1, 128>}, {pipeline_mode = #tpu.pipeline_mode<synchronous>, transform_indices = @transform_8, window_bounds = array<i64: 1, 128>}, {pipeline_mode = #tpu.pipeline_mode<synchronous>, transform_indices = @transform_9, window_bounds = array<i64: 128, 1024>}, {pipeline_mode = #tpu.pipeline_mode<synchronous>, transform_indices = @transform_10, window_bounds = array<i64: 1, 1024>}, {transform_indices = @transform_11, window_bounds = array<i64: 1, 1, 1024>}, {transform_indices = @transform_12, window_bounds = array<i64: 1, 1, 1024>}, {transform_indices = @transform_13, window_bounds = array<i64: 1, 1, 1024>}, {transform_indices = @transform_14, window_bounds = array<i64: 1, 1, 1024>}]} {
    %c0 = arith.constant 0 : index
    %c0_0 = arith.constant 0 : index
    %c0_1 = arith.constant 0 : index
    %0 = vector.load %arg2[%c0, %c0_0, %c0_1] : memref<1x16x2xf32, #tpu.memory_space<vmem>>, vector<1x16x2xf32>
    %1 = vector.shape_cast %0 : vector<1x16x2xf32> to vector<16x2xf32>
    %c0_2 = arith.constant 0 : index
    %c0_3 = arith.constant 0 : index
    %2 = vector.load %arg3[%c0_2, %c0_3] : memref<2x64xf32, #tpu.memory_space<vmem>>, vector<2x64xf32>
    %c0_4 = arith.constant 0 : index
    %c0_5 = arith.constant 0 : index
    %3 = vector.load %arg4[%c0_4, %c0_5] : memref<1x64xf32, #tpu.memory_space<vmem>>, vector<1x64xf32>
    %4 = vector.extract_strided_slice %1 {offsets = [0, 0], sizes = [16, 1], strides = [1, 1]} : vector<16x2xf32> to vector<16x1xf32>
    %5 = vector.extract_strided_slice %2 {offsets = [0, 0], sizes = [1, 64], strides = [1, 1]} : vector<2x64xf32> to vector<1x64xf32>
    %6 = vector.broadcast %4 : vector<16x1xf32> to vector<16x64xf32>
    %7 = vector.broadcast %5 : vector<1x64xf32> to vector<16x64xf32>
    %8 = arith.mulf %6, %7 : vector<16x64xf32>
    %9 = vector.extract_strided_slice %1 {offsets = [0, 1], sizes = [16, 1], strides = [1, 1]} : vector<16x2xf32> to vector<16x1xf32>
    %10 = vector.extract_strided_slice %2 {offsets = [1, 0], sizes = [1, 64], strides = [1, 1]} : vector<2x64xf32> to vector<1x64xf32>
    %11 = vector.broadcast %9 : vector<16x1xf32> to vector<16x64xf32>
    %12 = vector.broadcast %10 : vector<1x64xf32> to vector<16x64xf32>
    %13 = arith.mulf %11, %12 : vector<16x64xf32>
    %14 = arith.addf %8, %13 : vector<16x64xf32>
    %15 = vector.broadcast %3 : vector<1x64xf32> to vector<16x64xf32>
    %16 = arith.addf %14, %15 : vector<16x64xf32>
    %c0_6 = arith.constant 0 : index
    %c0_7 = arith.constant 0 : index
    %17 = vector.load %arg5[%c0_6, %c0_7] : memref<1x64xf32, #tpu.memory_space<vmem>>, vector<1x64xf32>
    %18 = vector.broadcast %17 : vector<1x64xf32> to vector<16x64xf32>
    %19 = arith.mulf %16, %18 : vector<16x64xf32>
    %c0_8 = arith.constant 0 : index
    %c0_9 = arith.constant 0 : index
    %20 = vector.load %arg6[%c0_8, %c0_9] : memref<1x64xf32, #tpu.memory_space<vmem>>, vector<1x64xf32>
    %21 = vector.broadcast %20 : vector<1x64xf32> to vector<16x64xf32>
    %22 = arith.addf %19, %21 : vector<16x64xf32>
    %23 = math.tanh %22 : vector<16x64xf32>
    %24 = arith.truncf %23 : vector<16x64xf32> to vector<16x64xbf16>
    %c0_10 = arith.constant 0 : index
    %c0_11 = arith.constant 0 : index
    %25 = vector.load %arg7[%c0_10, %c0_11] : memref<64x128xbf16, #tpu.memory_space<vmem>>, vector<64x128xbf16>
    %cst = arith.constant dense<0.000000e+00> : vector<16x128xf32>
    %26 = tpu.matmul %24, %25, %cst {dimension_numbers = #tpu.dot_dimension_numbers<[1], [0], [0], [1], [0, 0, 1, 1], [], []>} : vector<16x64xbf16>, vector<64x128xbf16>, vector<16x128xf32> -> vector<16x128xf32>
    %c0_12 = arith.constant 0 : index
    %c0_13 = arith.constant 0 : index
    %27 = vector.load %arg8[%c0_12, %c0_13] : memref<1x128xf32, #tpu.memory_space<vmem>>, vector<1x128xf32>
    %28 = vector.broadcast %27 : vector<1x128xf32> to vector<16x128xf32>
    %29 = arith.addf %26, %28 : vector<16x128xf32>
    %c0_14 = arith.constant 0 : index
    %c0_15 = arith.constant 0 : index
    %30 = vector.load %arg9[%c0_14, %c0_15] : memref<1x128xf32, #tpu.memory_space<vmem>>, vector<1x128xf32>
    %31 = vector.broadcast %30 : vector<1x128xf32> to vector<16x128xf32>
    %32 = arith.mulf %29, %31 : vector<16x128xf32>
    %c0_16 = arith.constant 0 : index
    %c0_17 = arith.constant 0 : index
    %33 = vector.load %arg10[%c0_16, %c0_17] : memref<1x128xf32, #tpu.memory_space<vmem>>, vector<1x128xf32>
    %34 = vector.broadcast %33 : vector<1x128xf32> to vector<16x128xf32>
    %35 = arith.addf %32, %34 : vector<16x128xf32>
    %36 = math.tanh %35 : vector<16x128xf32>
    %37 = arith.truncf %36 : vector<16x128xf32> to vector<16x128xbf16>
    %c0_18 = arith.constant 0 : index
    %c0_19 = arith.constant 0 : index
    %38 = vector.load %arg11[%c0_18, %c0_19] : memref<128x1024xbf16, #tpu.memory_space<vmem>>, vector<128x1024xbf16>
    %cst_20 = arith.constant dense<0.000000e+00> : vector<16x1024xf32>
    %39 = tpu.matmul %37, %38, %cst_20 {dimension_numbers = #tpu.dot_dimension_numbers<[1], [0], [0], [1], [0, 0, 1, 1], [], []>} : vector<16x128xbf16>, vector<128x1024xbf16>, vector<16x1024xf32> -> vector<16x1024xf32>
    %c0_21 = arith.constant 0 : index
    %c0_22 = arith.constant 0 : index
    %40 = vector.load %arg12[%c0_21, %c0_22] : memref<1x1024xf32, #tpu.memory_space<vmem>>, vector<1x1024xf32>
    %41 = vector.broadcast %40 : vector<1x1024xf32> to vector<16x1024xf32>
    %42 = arith.addf %39, %41 : vector<16x1024xf32>
    %c0_i32 = arith.constant 0 : i32
    %43 = arith.cmpi eq, %arg1, %c0_i32 : i32
    %44 = arith.extui %43 : i1 to i32
    %c0_i32_23 = arith.constant 0 : i32
    %45 = arith.cmpi ne, %44, %c0_i32_23 : i32
    scf.if %45 {
      %cst_52 = arith.constant 0.000000e+00 : f32
      %79 = vector.broadcast %cst_52 : f32 to vector<1x1024xf32>
      %c0_53 = arith.constant 0 : index
      %c0_54 = arith.constant 0 : index
      %c0_55 = arith.constant 0 : index
      %80 = vector.load %arg13[%c0_53, %c0_54, %c0_55] : memref<1x1x1024xf32, #tpu.memory_space<vmem>>, vector<1x1x1024xf32>
      %81 = vector.shape_cast %80 : vector<1x1x1024xf32> to vector<1x1024xf32>
      %82 = vector.shape_cast %79 : vector<1x1024xf32> to vector<1x1x1024xf32>
      tpu.vector_store %arg13[%c0_53, %c0_54, %c0_55], %82 {strides = array<i32>} : memref<1x1x1024xf32, #tpu.memory_space<vmem>>, vector<1x1x1024xf32>,
      %cst_56 = arith.constant 0.000000e+00 : f32
      %83 = vector.broadcast %cst_56 : f32 to vector<1x1024xf32>
      %c0_57 = arith.constant 0 : index
      %c0_58 = arith.constant 0 : index
      %c0_59 = arith.constant 0 : index
      %84 = vector.load %arg14[%c0_57, %c0_58, %c0_59] : memref<1x1x1024xf32, #tpu.memory_space<vmem>>, vector<1x1x1024xf32>
      %85 = vector.shape_cast %84 : vector<1x1x1024xf32> to vector<1x1024xf32>
      %86 = vector.shape_cast %83 : vector<1x1024xf32> to vector<1x1x1024xf32>
      tpu.vector_store %arg14[%c0_57, %c0_58, %c0_59], %86 {strides = array<i32>} : memref<1x1x1024xf32, #tpu.memory_space<vmem>>, vector<1x1x1024xf32>,
      %cst_60 = arith.constant 0xFF800000 : f32
      %87 = vector.broadcast %cst_60 : f32 to vector<1x1024xf32>
      %c0_61 = arith.constant 0 : index
      %c0_62 = arith.constant 0 : index
      %c0_63 = arith.constant 0 : index
      %88 = vector.load %arg15[%c0_61, %c0_62, %c0_63] : memref<1x1x1024xf32, #tpu.memory_space<vmem>>, vector<1x1x1024xf32>
      %89 = vector.shape_cast %88 : vector<1x1x1024xf32> to vector<1x1024xf32>
      %90 = vector.shape_cast %87 : vector<1x1024xf32> to vector<1x1x1024xf32>
      tpu.vector_store %arg15[%c0_61, %c0_62, %c0_63], %90 {strides = array<i32>} : memref<1x1x1024xf32, #tpu.memory_space<vmem>>, vector<1x1x1024xf32>,
      %cst_64 = arith.constant 0x7F800000 : f32
      %91 = vector.broadcast %cst_64 : f32 to vector<1x1024xf32>
      %c0_65 = arith.constant 0 : index
      %c0_66 = arith.constant 0 : index
      %c0_67 = arith.constant 0 : index
      %92 = vector.load %arg16[%c0_65, %c0_66, %c0_67] : memref<1x1x1024xf32, #tpu.memory_space<vmem>>, vector<1x1x1024xf32>
      %93 = vector.shape_cast %92 : vector<1x1x1024xf32> to vector<1x1024xf32>
      %94 = vector.shape_cast %91 : vector<1x1024xf32> to vector<1x1x1024xf32>
      tpu.vector_store %arg16[%c0_65, %c0_66, %c0_67], %94 {strides = array<i32>} : memref<1x1x1024xf32, #tpu.memory_space<vmem>>, vector<1x1x1024xf32>,
    } else {
    }
    %c0_24 = arith.constant 0 : index
    %c0_25 = arith.constant 0 : index
    %c0_26 = arith.constant 0 : index
    %46 = vector.load %arg13[%c0_24, %c0_25, %c0_26] : memref<1x1x1024xf32, #tpu.memory_space<vmem>>, vector<1x1x1024xf32>
    %47 = vector.shape_cast %46 : vector<1x1x1024xf32> to vector<1x1024xf32>
    %cst_27 = arith.constant dense<0.000000e+00> : vector<1024xf32>
    %48 = vector.multi_reduction <add>, %42, %cst_27 [0] : vector<16x1024xf32> to vector<1024xf32>
    %49 = vector.shape_cast %48 : vector<1024xf32> to vector<1x1024xf32>
    %50 = arith.addf %47, %49 : vector<1x1024xf32>
    %c0_28 = arith.constant 0 : index
    %c0_29 = arith.constant 0 : index
    %c0_30 = arith.constant 0 : index
    %51 = vector.load %arg13[%c0_28, %c0_29, %c0_30] : memref<1x1x1024xf32, #tpu.memory_space<vmem>>, vector<1x1x1024xf32>
    %52 = vector.shape_cast %51 : vector<1x1x1024xf32> to vector<1x1024xf32>
    %53 = vector.shape_cast %50 : vector<1x1024xf32> to vector<1x1x1024xf32>
    tpu.vector_store %arg13[%c0_28, %c0_29, %c0_30], %53 {strides = array<i32>} : memref<1x1x1024xf32, #tpu.memory_space<vmem>>, vector<1x1x1024xf32>,
    %c0_31 = arith.constant 0 : index
    %c0_32 = arith.constant 0 : index
    %c0_33 = arith.constant 0 : index
    %54 = vector.load %arg14[%c0_31, %c0_32, %c0_33] : memref<1x1x1024xf32, #tpu.memory_space<vmem>>, vector<1x1x1024xf32>
    %55 = vector.shape_cast %54 : vector<1x1x1024xf32> to vector<1x1024xf32>
    %56 = arith.mulf %42, %42 : vector<16x1024xf32>
    %cst_34 = arith.constant dense<0.000000e+00> : vector<1024xf32>
    %57 = vector.multi_reduction <add>, %56, %cst_34 [0] : vector<16x1024xf32> to vector<1024xf32>
    %58 = vector.shape_cast %57 : vector<1024xf32> to vector<1x1024xf32>
    %59 = arith.addf %55, %58 : vector<1x1024xf32>
    %c0_35 = arith.constant 0 : index
    %c0_36 = arith.constant 0 : index
    %c0_37 = arith.constant 0 : index
    %60 = vector.load %arg14[%c0_35, %c0_36, %c0_37] : memref<1x1x1024xf32, #tpu.memory_space<vmem>>, vector<1x1x1024xf32>
    %61 = vector.shape_cast %60 : vector<1x1x1024xf32> to vector<1x1024xf32>
    %62 = vector.shape_cast %59 : vector<1x1024xf32> to vector<1x1x1024xf32>
    tpu.vector_store %arg14[%c0_35, %c0_36, %c0_37], %62 {strides = array<i32>} : memref<1x1x1024xf32, #tpu.memory_space<vmem>>, vector<1x1x1024xf32>,
    %c0_38 = arith.constant 0 : index
    %c0_39 = arith.constant 0 : index
    %c0_40 = arith.constant 0 : index
    %63 = vector.load %arg15[%c0_38, %c0_39, %c0_40] : memref<1x1x1024xf32, #tpu.memory_space<vmem>>, vector<1x1x1024xf32>
    %64 = vector.shape_cast %63 : vector<1x1x1024xf32> to vector<1x1024xf32>
    %cst_41 = arith.constant dense<0xFF800000> : vector<1024xf32>
    %65 = vector.multi_reduction <maximumf>, %42, %cst_41 [0] : vector<16x1024xf32> to vector<1024xf32>
    %66 = vector.shape_cast %65 : vector<1024xf32> to vector<1x1024xf32>
    %67 = arith.maximumf %64, %66 : vector<1x1024xf32>
    %c0_42 = arith.constant 0 : index
    %c0_43 = arith.constant 0 : index
    %c0_44 = arith.constant 0 : index
    %68 = vector.load %arg15[%c0_42, %c0_43, %c0_44] : memref<1x1x1024xf32, #tpu.memory_space<vmem>>, vector<1x1x1024xf32>
    %69 = vector.shape_cast %68 : vector<1x1x1024xf32> to vector<1x1024xf32>
    %70 = vector.shape_cast %67 : vector<1x1024xf32> to vector<1x1x1024xf32>
    tpu.vector_store %arg15[%c0_42, %c0_43, %c0_44], %70 {strides = array<i32>} : memref<1x1x1024xf32, #tpu.memory_space<vmem>>, vector<1x1x1024xf32>,
    %c0_45 = arith.constant 0 : index
    %c0_46 = arith.constant 0 : index
    %c0_47 = arith.constant 0 : index
    %71 = vector.load %arg16[%c0_45, %c0_46, %c0_47] : memref<1x1x1024xf32, #tpu.memory_space<vmem>>, vector<1x1x1024xf32>
    %72 = vector.shape_cast %71 : vector<1x1x1024xf32> to vector<1x1024xf32>
    %cst_48 = arith.constant dense<0x7F800000> : vector<1024xf32>
    %73 = vector.multi_reduction <minimumf>, %42, %cst_48 [0] : vector<16x1024xf32> to vector<1024xf32>
    %74 = vector.shape_cast %73 : vector<1024xf32> to vector<1x1024xf32>
    %75 = arith.minimumf %72, %74 : vector<1x1024xf32>
    %c0_49 = arith.constant 0 : index
    %c0_50 = arith.constant 0 : index
    %c0_51 = arith.constant 0 : index
    %76 = vector.load %arg16[%c0_49, %c0_50, %c0_51] : memref<1x1x1024xf32, #tpu.memory_space<vmem>>, vector<1x1x1024xf32>
    %77 = vector.shape_cast %76 : vector<1x1x1024xf32> to vector<1x1024xf32>
    %78 = vector.shape_cast %75 : vector<1x1024xf32> to vector<1x1x1024xf32>
    tpu.vector_store %arg16[%c0_49, %c0_50, %c0_51], %78 {strides = array<i32>} : memref<1x1x1024xf32, #tpu.memory_space<vmem>>, vector<1x1x1024xf32>,
    return
  }
  func.func @transform_0(%arg0: i32, %arg1: i32) -> (i32, i32, i32) {
    %c0_i32 = arith.constant 0 : i32
    %c0_i32_0 = arith.constant 0 : i32
    return %arg0, %arg1, %c0_i32 : i32, i32, i32
  }
  func.func @transform_1(%arg0: i32, %arg1: i32) -> (i32, i32) {
    %c0_i32 = arith.constant 0 : i32
    %c0_i32_0 = arith.constant 0 : i32
    %c0_i32_1 = arith.constant 0 : i32
    return %c0_i32, %c0_i32_0 : i32, i32
  }
  func.func @transform_2(%arg0: i32, %arg1: i32) -> (i32, i32) {
    %c0_i32 = arith.constant 0 : i32
    %c0_i32_0 = arith.constant 0 : i32
    %c0_i32_1 = arith.constant 0 : i32
    return %c0_i32, %c0_i32_0 : i32, i32
  }
  func.func @transform_3(%arg0: i32, %arg1: i32) -> (i32, i32) {
    %c0_i32 = arith.constant 0 : i32
    %c0_i32_0 = arith.constant 0 : i32
    %c0_i32_1 = arith.constant 0 : i32
    return %c0_i32, %c0_i32_0 : i32, i32
  }
  func.func @transform_4(%arg0: i32, %arg1: i32) -> (i32, i32) {
    %c0_i32 = arith.constant 0 : i32
    %c0_i32_0 = arith.constant 0 : i32
    %c0_i32_1 = arith.constant 0 : i32
    return %c0_i32, %c0_i32_0 : i32, i32
  }
  func.func @transform_5(%arg0: i32, %arg1: i32) -> (i32, i32) {
    %c0_i32 = arith.constant 0 : i32
    %c0_i32_0 = arith.constant 0 : i32
    %c0_i32_1 = arith.constant 0 : i32
    return %c0_i32, %c0_i32_0 : i32, i32
  }
  func.func @transform_6(%arg0: i32, %arg1: i32) -> (i32, i32) {
    %c0_i32 = arith.constant 0 : i32
    %c0_i32_0 = arith.constant 0 : i32
    %c0_i32_1 = arith.constant 0 : i32
    return %c0_i32, %c0_i32_0 : i32, i32
  }
  func.func @transform_7(%arg0: i32, %arg1: i32) -> (i32, i32) {
    %c0_i32 = arith.constant 0 : i32
    %c0_i32_0 = arith.constant 0 : i32
    %c0_i32_1 = arith.constant 0 : i32
    return %c0_i32, %c0_i32_0 : i32, i32
  }
  func.func @transform_8(%arg0: i32, %arg1: i32) -> (i32, i32) {
    %c0_i32 = arith.constant 0 : i32
    %c0_i32_0 = arith.constant 0 : i32
    %c0_i32_1 = arith.constant 0 : i32
    return %c0_i32, %c0_i32_0 : i32, i32
  }
  func.func @transform_9(%arg0: i32, %arg1: i32) -> (i32, i32) {
    %c0_i32 = arith.constant 0 : i32
    %c0_i32_0 = arith.constant 0 : i32
    %c0_i32_1 = arith.constant 0 : i32
    return %c0_i32, %c0_i32_0 : i32, i32
  }
  func.func @transform_10(%arg0: i32, %arg1: i32) -> (i32, i32) {
    %c0_i32 = arith.constant 0 : i32
    %c0_i32_0 = arith.constant 0 : i32
    %c0_i32_1 = arith.constant 0 : i32
    return %c0_i32, %c0_i32_0 : i32, i32
  }
  func.func @transform_11(%arg0: i32, %arg1: i32) -> (i32, i32, i32) {
    %c0_i32 = arith.constant 0 : i32
    %c0_i32_0 = arith.constant 0 : i32
    %c0_i32_1 = arith.constant 0 : i32
    return %arg0, %c0_i32, %c0_i32_0 : i32, i32, i32
  }
  func.func @transform_12(%arg0: i32, %arg1: i32) -> (i32, i32, i32) {
    %c0_i32 = arith.constant 0 : i32
    %c0_i32_0 = arith.constant 0 : i32
    %c0_i32_1 = arith.constant 0 : i32
    return %arg0, %c0_i32, %c0_i32_0 : i32, i32, i32
  }
  func.func @transform_13(%arg0: i32, %arg1: i32) -> (i32, i32, i32) {
    %c0_i32 = arith.constant 0 : i32
    %c0_i32_0 = arith.constant 0 : i32
    %c0_i32_1 = arith.constant 0 : i32
    return %arg0, %c0_i32, %c0_i32_0 : i32, i32, i32
  }
  func.func @transform_14(%arg0: i32, %arg1: i32) -> (i32, i32, i32) {
    %c0_i32 = arith.constant 0 : i32
    %c0_i32_0 = arith.constant 0 : i32
    %c0_i32_1 = arith.constant 0 : i32
    return %arg0, %c0_i32, %c0_i32_0 : i32, i32, i32
  }
}

module attributes {stable_mosaic.version = 11 : i64} {
  func.func @head_kernel(%arg0: i32, %arg1: memref<2x1024xf32, #tpu.memory_space<vmem>>, %arg2: memref<2x1024xf32, #tpu.memory_space<vmem>>, %arg3: memref<1x1024xf32, #tpu.memory_space<vmem>>, %arg4: memref<1x1024xf32, #tpu.memory_space<vmem>>, %arg5: memref<1024x512xbf16, #tpu.memory_space<vmem>>, %arg6: memref<1x512xf32, #tpu.memory_space<vmem>>, %arg7: memref<512x256xbf16, #tpu.memory_space<vmem>>, %arg8: memref<1x256xf32, #tpu.memory_space<vmem>>, %arg9: memref<256x9xbf16, #tpu.memory_space<vmem>>, %arg10: memref<1x9xf32, #tpu.memory_space<vmem>>, %arg11: memref<1x9xf32, #tpu.memory_space<vmem>>, %arg12: memref<2x9xf32, #tpu.memory_space<vmem>>) attributes {dimension_semantics = [#tpu.dimension_semantics<arbitrary>], iteration_bounds = array<i64: 1>, scalar_prefetch = 0 : i64, scratch_operands = 0 : i64, tpu.core_type = #tpu.core_type<tc>, window_params = [{pipeline_mode = #tpu.pipeline_mode<synchronous>, transform_indices = @transform_0, window_bounds = array<i64: 2, 1024>}, {pipeline_mode = #tpu.pipeline_mode<synchronous>, transform_indices = @transform_1, window_bounds = array<i64: 2, 1024>}, {pipeline_mode = #tpu.pipeline_mode<synchronous>, transform_indices = @transform_2, window_bounds = array<i64: 1, 1024>}, {pipeline_mode = #tpu.pipeline_mode<synchronous>, transform_indices = @transform_3, window_bounds = array<i64: 1, 1024>}, {pipeline_mode = #tpu.pipeline_mode<synchronous>, transform_indices = @transform_4, window_bounds = array<i64: 1024, 512>}, {pipeline_mode = #tpu.pipeline_mode<synchronous>, transform_indices = @transform_5, window_bounds = array<i64: 1, 512>}, {pipeline_mode = #tpu.pipeline_mode<synchronous>, transform_indices = @transform_6, window_bounds = array<i64: 512, 256>}, {pipeline_mode = #tpu.pipeline_mode<synchronous>, transform_indices = @transform_7, window_bounds = array<i64: 1, 256>}, {pipeline_mode = #tpu.pipeline_mode<synchronous>, transform_indices = @transform_8, window_bounds = array<i64: 256, 9>}, {pipeline_mode = #tpu.pipeline_mode<synchronous>, transform_indices = @transform_9, window_bounds = array<i64: 1, 9>}, {pipeline_mode = #tpu.pipeline_mode<synchronous>, transform_indices = @transform_10, window_bounds = array<i64: 1, 9>}, {pipeline_mode = #tpu.pipeline_mode<synchronous>, transform_indices = @transform_11, window_bounds = array<i64: 2, 9>}]} {
    %c0 = arith.constant 0 : index
    %c0_0 = arith.constant 0 : index
    %0 = vector.load %arg3[%c0, %c0_0] : memref<1x1024xf32, #tpu.memory_space<vmem>>, vector<1x1024xf32>
    %cst = arith.constant 0.000000e+00 : f32
    %1 = vector.broadcast %cst : f32 to vector<1x1024xf32>
    %2 = arith.cmpf oge, %0, %1 : vector<1x1024xf32>
    %c0_1 = arith.constant 0 : index
    %c0_2 = arith.constant 0 : index
    %3 = vector.load %arg1[%c0_1, %c0_2] : memref<2x1024xf32, #tpu.memory_space<vmem>>, vector<2x1024xf32>
    %c0_3 = arith.constant 0 : index
    %c0_4 = arith.constant 0 : index
    %4 = vector.load %arg2[%c0_3, %c0_4] : memref<2x1024xf32, #tpu.memory_space<vmem>>, vector<2x1024xf32>
    %5 = vector.shape_cast %2 : vector<1x1024xi1> to vector<1x1024xi1>
    %6 = vector.broadcast %5 : vector<1x1024xi1> to vector<2x1024xi1>
    %7 = arith.select %6, %3, %4 : vector<2x1024xi1>, vector<2x1024xf32>
    %8 = vector.broadcast %0 : vector<1x1024xf32> to vector<2x1024xf32>
    %9 = arith.mulf %7, %8 : vector<2x1024xf32>
    %c0_5 = arith.constant 0 : index
    %c0_6 = arith.constant 0 : index
    %10 = vector.load %arg4[%c0_5, %c0_6] : memref<1x1024xf32, #tpu.memory_space<vmem>>, vector<1x1024xf32>
    %11 = vector.broadcast %10 : vector<1x1024xf32> to vector<2x1024xf32>
    %12 = arith.addf %9, %11 : vector<2x1024xf32>
    %13 = math.tanh %12 : vector<2x1024xf32>
    %14 = arith.truncf %13 : vector<2x1024xf32> to vector<2x1024xbf16>
    %c0_7 = arith.constant 0 : index
    %c0_8 = arith.constant 0 : index
    %15 = vector.load %arg5[%c0_7, %c0_8] : memref<1024x512xbf16, #tpu.memory_space<vmem>>, vector<1024x512xbf16>
    %cst_9 = arith.constant dense<0.000000e+00> : vector<2x512xf32>
    %16 = tpu.matmul %14, %15, %cst_9 {dimension_numbers = #tpu.dot_dimension_numbers<[1], [0], [0], [1], [0, 0, 1, 1], [], []>} : vector<2x1024xbf16>, vector<1024x512xbf16>, vector<2x512xf32> -> vector<2x512xf32>
    %c0_10 = arith.constant 0 : index
    %c0_11 = arith.constant 0 : index
    %17 = vector.load %arg6[%c0_10, %c0_11] : memref<1x512xf32, #tpu.memory_space<vmem>>, vector<1x512xf32>
    %18 = vector.broadcast %17 : vector<1x512xf32> to vector<2x512xf32>
    %19 = arith.addf %16, %18 : vector<2x512xf32>
    %20 = math.tanh %19 : vector<2x512xf32>
    %21 = arith.truncf %20 : vector<2x512xf32> to vector<2x512xbf16>
    %c0_12 = arith.constant 0 : index
    %c0_13 = arith.constant 0 : index
    %22 = vector.load %arg7[%c0_12, %c0_13] : memref<512x256xbf16, #tpu.memory_space<vmem>>, vector<512x256xbf16>
    %cst_14 = arith.constant dense<0.000000e+00> : vector<2x256xf32>
    %23 = tpu.matmul %21, %22, %cst_14 {dimension_numbers = #tpu.dot_dimension_numbers<[1], [0], [0], [1], [0, 0, 1, 1], [], []>} : vector<2x512xbf16>, vector<512x256xbf16>, vector<2x256xf32> -> vector<2x256xf32>
    %c0_15 = arith.constant 0 : index
    %c0_16 = arith.constant 0 : index
    %24 = vector.load %arg8[%c0_15, %c0_16] : memref<1x256xf32, #tpu.memory_space<vmem>>, vector<1x256xf32>
    %25 = vector.broadcast %24 : vector<1x256xf32> to vector<2x256xf32>
    %26 = arith.addf %23, %25 : vector<2x256xf32>
    %27 = math.tanh %26 : vector<2x256xf32>
    %28 = arith.truncf %27 : vector<2x256xf32> to vector<2x256xbf16>
    %c0_17 = arith.constant 0 : index
    %c0_18 = arith.constant 0 : index
    %29 = vector.load %arg9[%c0_17, %c0_18] : memref<256x9xbf16, #tpu.memory_space<vmem>>, vector<256x9xbf16>
    %cst_19 = arith.constant dense<0.000000e+00> : vector<2x9xf32>
    %30 = tpu.matmul %28, %29, %cst_19 {dimension_numbers = #tpu.dot_dimension_numbers<[1], [0], [0], [1], [0, 0, 1, 1], [], []>} : vector<2x256xbf16>, vector<256x9xbf16>, vector<2x9xf32> -> vector<2x9xf32>
    %c0_20 = arith.constant 0 : index
    %c0_21 = arith.constant 0 : index
    %31 = vector.load %arg10[%c0_20, %c0_21] : memref<1x9xf32, #tpu.memory_space<vmem>>, vector<1x9xf32>
    %32 = vector.broadcast %31 : vector<1x9xf32> to vector<2x9xf32>
    %33 = arith.addf %30, %32 : vector<2x9xf32>
    %c0_22 = arith.constant 0 : index
    %c0_23 = arith.constant 0 : index
    %34 = vector.load %arg11[%c0_22, %c0_23] : memref<1x9xf32, #tpu.memory_space<vmem>>, vector<1x9xf32>
    %35 = vector.broadcast %34 : vector<1x9xf32> to vector<2x9xf32>
    %36 = arith.addf %33, %35 : vector<2x9xf32>
    %c0_24 = arith.constant 0 : index
    %c0_25 = arith.constant 0 : index
    %37 = vector.load %arg12[%c0_24, %c0_25] : memref<2x9xf32, #tpu.memory_space<vmem>>, vector<2x9xf32>
    tpu.vector_store %arg12[%c0_24, %c0_25], %36 {strides = array<i32>} : memref<2x9xf32, #tpu.memory_space<vmem>>, vector<2x9xf32>,
    return
  }
  func.func @transform_0(%arg0: i32) -> (i32, i32) {
    %c0_i32 = arith.constant 0 : i32
    %c0_i32_0 = arith.constant 0 : i32
    %c0_i32_1 = arith.constant 0 : i32
    return %c0_i32, %c0_i32_0 : i32, i32
  }
  func.func @transform_1(%arg0: i32) -> (i32, i32) {
    %c0_i32 = arith.constant 0 : i32
    %c0_i32_0 = arith.constant 0 : i32
    %c0_i32_1 = arith.constant 0 : i32
    return %c0_i32, %c0_i32_0 : i32, i32
  }
  func.func @transform_2(%arg0: i32) -> (i32, i32) {
    %c0_i32 = arith.constant 0 : i32
    %c0_i32_0 = arith.constant 0 : i32
    %c0_i32_1 = arith.constant 0 : i32
    return %c0_i32, %c0_i32_0 : i32, i32
  }
  func.func @transform_3(%arg0: i32) -> (i32, i32) {
    %c0_i32 = arith.constant 0 : i32
    %c0_i32_0 = arith.constant 0 : i32
    %c0_i32_1 = arith.constant 0 : i32
    return %c0_i32, %c0_i32_0 : i32, i32
  }
  func.func @transform_4(%arg0: i32) -> (i32, i32) {
    %c0_i32 = arith.constant 0 : i32
    %c0_i32_0 = arith.constant 0 : i32
    %c0_i32_1 = arith.constant 0 : i32
    return %c0_i32, %c0_i32_0 : i32, i32
  }
  func.func @transform_5(%arg0: i32) -> (i32, i32) {
    %c0_i32 = arith.constant 0 : i32
    %c0_i32_0 = arith.constant 0 : i32
    %c0_i32_1 = arith.constant 0 : i32
    return %c0_i32, %c0_i32_0 : i32, i32
  }
  func.func @transform_6(%arg0: i32) -> (i32, i32) {
    %c0_i32 = arith.constant 0 : i32
    %c0_i32_0 = arith.constant 0 : i32
    %c0_i32_1 = arith.constant 0 : i32
    return %c0_i32, %c0_i32_0 : i32, i32
  }
  func.func @transform_7(%arg0: i32) -> (i32, i32) {
    %c0_i32 = arith.constant 0 : i32
    %c0_i32_0 = arith.constant 0 : i32
    %c0_i32_1 = arith.constant 0 : i32
    return %c0_i32, %c0_i32_0 : i32, i32
  }
  func.func @transform_8(%arg0: i32) -> (i32, i32) {
    %c0_i32 = arith.constant 0 : i32
    %c0_i32_0 = arith.constant 0 : i32
    %c0_i32_1 = arith.constant 0 : i32
    return %c0_i32, %c0_i32_0 : i32, i32
  }
  func.func @transform_9(%arg0: i32) -> (i32, i32) {
    %c0_i32 = arith.constant 0 : i32
    %c0_i32_0 = arith.constant 0 : i32
    %c0_i32_1 = arith.constant 0 : i32
    return %c0_i32, %c0_i32_0 : i32, i32
  }
  func.func @transform_10(%arg0: i32) -> (i32, i32) {
    %c0_i32 = arith.constant 0 : i32
    %c0_i32_0 = arith.constant 0 : i32
    %c0_i32_1 = arith.constant 0 : i32
    return %c0_i32, %c0_i32_0 : i32, i32
  }
  func.func @transform_11(%arg0: i32) -> (i32, i32) {
    %c0_i32 = arith.constant 0 : i32
    %c0_i32_0 = arith.constant 0 : i32
    %c0_i32_1 = arith.constant 0 : i32
    return %c0_i32, %c0_i32_0 : i32, i32
  }
}

</mosaic_0001>

<bundles_post_ra>
// kernel: stn3d_forward.4
= control target key start
LH: loop header
LB: loop body
LE: loop exit
PB: predicated region body
PF: predicated region fallthrough
CT: control target
= control target key end

     0   :  { %10 = vsyncpa [#allocation3], 0  ;;  %s760_s0 = inlined_call_operand.vmem [shape: f32[2,16,2], index: 0, kind: input, shape index: {}]   ;;  %s761_s1 = inlined_call_operand.hbm [shape: f32[2,64], index: 1, kind: input, shape index: {}]   ;;  %s762_s2 = inlined_call_operand.hbm [shape: f32[1,64], index: 2, kind: input, shape index: {}]   ;;  %s763_s3 = inlined_call_operand.vmem [shape: f32[2,1,64], index: 3, kind: output, shape index: {0}]   ;;  %s764_s4 = inlined_call_operand.vmem [shape: f32[2,1,64], index: 4, kind: output, shape index: {1}]  }
   0x1   :  { %11 = vsyncpa [#allocation5], 0  ;;  %s629_s15 = smov 0   ;;  %s631_s16 = smov 0  }
   0x2   :  { %s633_s17 = smov 0  }
   0x3 LB: > { %s445_s18 = sadd.s32 4294967295, %s597_s17   ;;  %s29_s19 = sadd.s32 1, %s593_s16  ;;  %s597_s17 = sphi %s633_s17, %s17_s17   ;;  %s593_s16 = sphi %s631_s16, %s774_s16   ;;  %s589_s15 = sphi %s629_s15, %s773_s15  }
   0x4   : > { %p31_p0 = scmp.ge.s32.totalorder %s29_s19, 2  ;;  %p447_p1 = scmp.ge.s32.totalorder %s597_s17, 1 }
   0x5   : > { %p156_p2 = scmp.lt.s32.totalorder %s597_s17, 3  ;;  %p654_p4 = scmp.eq.s32.totalorder %s445_s18, 0 }
   0x6   : > { %s776_s19 = smov (%p31_p0, %s29_s19), 0  ;;  %s599_s22 = smov [#allocation2]  }
   0x7   : > { %p650_p3 = pnand %p447_p1, %p156_p2  ;;  %s169_s23 = sshll.u32 %s599_s22, 4  ;;  %s170_s23 = int_to_ptr.vmem [resolvable:$true] %s169_s23 }
   0x8   : > { %s769_s21 = scalar_select %p654_p4, 1, 0 }
   0x9   : > { %s768_s20 = scalar_select %p650_p3, 1, 0 }
   0xa   : > { %p468_p5 = pneg %p650_p3  ;;  %s600_s24 = smov [#allocation4]  }
   0xb   : > { %s180_s25 = sshll.u32 %s600_s24, 4  ;;  %s511_s29 = scalar_lea.hbm %s761_s1, 32  ;;  %s666_s25 = int_to_ptr.vmem [resolvable:$true] %s180_s25 }
   0xc   : > { %p662_p6 = pnand %p654_p4, %p468_p5  ;;  %p512_p7 = scmp.ne.s32.totalorder %s761_s1, %s511_s29 }
   0xd   : > { %p518_p11 = scmp.lt.u32.totalorder %s511_s29, %s761_s1 }
   0xe   : > { %p513_p8 = pneg %p662_p6 }
  0x10   : > { %p514_p9 = pnand %p513_p8, %p512_p7 }
  0x12   : > { %p515_p10 = pneg %p514_p9 }
  0x14   : > { %p520_p12 = pnand %p518_p11, %p515_p10 }
  0x16   : > { %523 = shalt.err (!%p520_p12)
}
  0x17   : > { %s524_s8 = scalar_lea.vmem %s170_s23, 32  ;;  %p532_p2 = scmp.lt.s32.totalorder %s170_s23, %s170_s23 }
  0x18   : > { %p525_p13 = scmp.ne.s32.totalorder %s170_s23, %s524_s8  ;;  %p533_p5 = scmp.lt.s32.totalorder %s524_s8, %s524_s8 }
  0x1a   : > { %p527_p0 = pnand %p525_p13, %p513_p8  ;;  %p534_p4 = por %p533_p5, %p532_p2 }
  0x1c   : > { %p528_p1 = pneg %p527_p0 }
  0x1e   : > { %p535_p3 = pnand %p534_p4, %p528_p1 }
  0x20   : > { %538 = shalt.err (!%p535_p3)
}
  0x21   : > { %471 = dma.hbm_to_vmem [thread:$0]  (!%p662_p6), %s761_s1, 32, %s170_s23, [#allocation3]  }
  0x22   : > { %s539_s13 = scalar_lea.hbm %s762_s2, 16 }
  0x23   : > { %p540_p7 = scmp.ne.s32.totalorder %s762_s2, %s539_s13  ;;  %p546_p3 = scmp.lt.u32.totalorder %s539_s13, %s762_s2 }
  0x25   : > { %p542_p9 = pnand %p540_p7, %p513_p8 }
  0x27   : > { %p543_p4 = pneg %p542_p9 }
  0x29   : > { %p548_p10 = pnand %p546_p3, %p543_p4 }
  0x2b   : > { %551 = shalt.err (!%p548_p10)
}
  0x2c   : > { %s552_s23 = scalar_lea.vmem %s666_s25, 16  ;;  %s559_s27 = scalar_lea.vmem %s666_s25, 32 }
  0x2d   : > { %p553_p11 = scmp.ne.s32.totalorder %s666_s25, %s552_s23  ;;  %p560_p0 = scmp.lt.s32.totalorder %s666_s25, %s666_s25 }
  0x2e   : > { %p561_p1 = scmp.lt.s32.totalorder %s559_s27, %s552_s23 }
  0x2f   : > { %p555_p12 = pnand %p553_p11, %p513_p8 }
  0x30   : > { %p562_p2 = por %p561_p1, %p560_p0 }
  0x31   : > { %p556_p13 = pneg %p555_p12 }
  0x33   : > { %p563_p5 = pnand %p562_p2, %p556_p13 }
  0x35   : > { %566 = shalt.err (!%p563_p5)
}
  0x36   : > { %474 = dma.hbm_to_vmem [thread:$0]  (!%p662_p6), %s762_s2, 16, %s666_s25, [#allocation5]  }
  0x37   : > { %p771_p7 = scmp.ne.s32.totalorder %s768_s20, 0 }
  0x38   : > { %p772_p8 = scmp.ne.s32.totalorder (!%p771_p7), %s769_s21, 0 }
  0x39   : > { %206 = sbr.rel (%p771_p7) target bundleno = 231 (0xe7), region = 32 }
  0x40   : > { %580 = dma.done.wait (%p772_p8), [#allocation3], 32  }
  0x41   : > { %582 = vsyncadd (%p772_p8), [#allocation3], 4294967264 }
  0x42   : > { %584 = dma.done.wait (%p772_p8), [#allocation5], 16  }
  0x43   : > { %586 = vsyncadd (%p772_p8), [#allocation5], 4294967280  ;;  %p242_p9 = scmp.lt.s32.totalorder %s589_s15, 1  ;;  %v601_v0 = vmov 1   ;;  %v602_v1 = vmov 0   ;;  %vm305_vm0 = vcmask 516096   ;;  %v271_v5 = vlaneseq }
  0x44   : > { %509 = vset.pattern.permute.xlu1 %v601_v0  ;;  %508 = vset.pattern.permute.xlu0 %v602_v1  ;;  %v603_v2 = vmov 0.0   ;;  %v259_v9 = vld [vmem:[#allocation2] sm:$0x3]  ;;  %v456_v16 = vld [vmem:[#allocation4] ss:$0 sm:$0xff]  ;;  %vm309_vm1 = vcmask 523264  }
  0x45   : > { %s778_s15 = smov (!%p242_p9, %s589_s15), 1  ;;  %v272_v6 = vshrl.u32 %v271_v5, 7 }
  0x46   : > { %s459_s20 = sshll.u32 %s778_s15, 4  ;;  %s731_s30 = scalar_lea.vmem %s763_s3, %s778_s15 }
  0x47   : > { %s249_s21 = scalar_lea.vmem %s760_s0, %s459_s20  ;;  %s739_s9 = scalar_lea.vmem %s764_s4, %s778_s15  ;;  %306 = vst.msk [vmem:[%s731_s30] sm:$0x1] %vm305_vm0, %v603_v2  ;;  %v287_v7 = vsub.s32 1, %v272_v6  ;;  %v273_v8 = vsub.s32 0, %v272_v6 }
  0x48   : > { %307 = vst.msk [vmem:[%s739_s9] sm:$0x1] %vm305_vm0, %v603_v2  ;;  %v257_v3 = vld [vmem:[%s249_s21] sm:$0xff]  ;;  %v258_v4 = vld [vmem:[%s249_s21 + $0x8] sm:$0xff] }
  0x49   : > { %278 = vperm.xlu1 %509, %v257_v3   ;;  %263 = vperm.xlu0 %508, %v257_v3   ;;  %v288_v10 = vrot.slane %v259_v9, %v287_v7  ;;  %v274_v11 = vrot.slane %v259_v9, %v273_v8 }
  0x4d   : > { %282 = vperm.xlu1 %509, %v258_v4   ;;  %268 = vperm.xlu0 %508, %v258_v4  }
  0x4e   : > { %v308_v42 = vld [vmem:[%s731_s30] sm:$0x1] }
  0x4f   : > { %v322_v45 = vld [vmem:[%s739_s9] sm:$0x1] }
  0x51   : > { %510 = vset.pattern.permute.xlu0 %v601_v0 }
  0xc8   : > { %v279_v12 = vpop.permute.xlu1 %278  ;;  %v264_v13 = vpop.permute.xlu0 %263 }
  0xc9   : > { %v289_v14 = vmul.f32 %v288_v10, %v279_v12  ;;  %v275_v15 = vmul.f32 %v274_v11, %v264_v13 }
  0xcb   : > { %v291_v17 = vadd.f32 %v289_v14, %v275_v15 }
  0xcc   : > { %v283_v18 = vpop.permute.xlu1 %282  ;;  %v269_v19 = vpop.permute.xlu0 %268 }
  0xcd   : > { %v299_v20 = vadd.f32 %v456_v16, %v291_v17  ;;  %v290_v21 = vmul.f32 %v288_v10, %v283_v18  ;;  %v276_v22 = vmul.f32 %v274_v11, %v269_v19 }
  0xcf   : > { %v292_v23 = vadd.f32 %v290_v21, %v276_v22  ;;  %v323_v24 = vmul.f32 %v299_v20, %v299_v20  ;;  %v310_v26 = vsel %vm309_vm1, %v299_v20, 0.0 }
  0xd1   : > { %v300_v25 = vadd.f32 %v456_v16, %v292_v23  ;;  %v325_v30 = vsel %vm309_vm1, %v323_v24, 0.0 }
  0xd3   : > { %v311_v27 = vsel %vm309_vm1, %v300_v25, 0.0  ;;  %v324_v28 = vmul.f32 %v300_v25, %v300_v25 }
  0xd4   : > { %v312_v29 = vadd.f32 %v311_v27, %v310_v26 }
  0xd5   : > { %v326_v31 = vsel %vm309_vm1, %v324_v28, 0.0 }
  0xd6   : > { %v313_v32 = vrot.slane %v312_v29, 4  ;;  %v327_v33 = vadd.f32 %v326_v31, %v325_v30 }
  0xd8   : > { %v314_v34 = vadd.f32 %v313_v32, %v312_v29  ;;  %v328_v35 = vrot.slane %v327_v33, 4 }
  0xda   : > { %v315_v36 = vrot.slane %v314_v34, 2  ;;  %v329_v37 = vadd.f32 %v328_v35, %v327_v33 }
  0xdc   : > { %v316_v38 = vadd.f32 %v315_v36, %v314_v34  ;;  %v330_v39 = vrot.slane %v329_v37, 2 }
  0xde   : > { %v317_v40 = vrot.slane %v316_v38, 1  ;;  %v331_v41 = vadd.f32 %v330_v39, %v329_v37 }
  0xe0   : > { %v318_v43 = vadd.f32 %v317_v40, %v316_v38  ;;  %v332_v44 = vrot.slane %v331_v41, 1 }
  0xe2   : > { %v319_v46 = vadd.f32 %v318_v43, %v308_v42  ;;  %v333_v47 = vadd.f32 %v332_v44, %v331_v41 }
  0xe4   : > { %321 = vst.msk [vmem:[%s731_s30] sm:$0x1] %vm305_vm0, %v319_v46  ;;  %v334_v48 = vadd.f32 %v333_v47, %v322_v45 }
  0xe6   : > { %335 = vst.msk [vmem:[%s739_s9] sm:$0x1] %vm305_vm0, %v334_v48 }
  0xe7 PF: > { %s17_s17 = sadd.s32 1, %s597_s17   ;;  %s773_s15 = smov %s593_s16 }
  0xe8   : > { %p14_p6 = scmp.ge.s32.totalorder %s17_s17, 4   ;;  %s774_s16 = smov %s776_s19 }
  0xea   :  { %16 = sbr.rel (!%p14_p6) target bundleno = 3 (0x3), region = 87 }
  0xf1   :  { %365 = vsyncpa [#allocation3], 1 }
  0xf2   :  { %367 = vsyncpa [#allocation3 + $0x1], 1 }
  0xf3   :  { %368 = vsyncpa [#allocation5], 1 }

// kernel: stn3d_forward.5
= control target key start
LH: loop header
LB: loop body
LE: loop exit
PB: predicated region body
PF: predicated region fallthrough
CT: control target
= control target key end

     0   :  { %14 = vsyncpa [#allocation3], 0  ;;  %s1121_s0 = inlined_call_operand.vmem [shape: f32[2,16,2], index: 0, kind: input, shape index: {}]   ;;  %s1122_s1 = inlined_call_operand.hbm [shape: f32[2,64], index: 1, kind: input, shape index: {}]   ;;  %s1123_s2 = inlined_call_operand.hbm [shape: f32[1,64], index: 2, kind: input, shape index: {}]   ;;  %s1124_s3 = inlined_call_operand.vmem [shape: f32[1,64], index: 3, kind: input, shape index: {}]   ;;  %s1125_s4 = inlined_call_operand.vmem [shape: f32[1,64], index: 4, kind: input, shape index: {}]   ;;  %s1126_s5 = inlined_call_operand.vmem [shape: bf16[64,128], index: 5, kind: input, shape index: {}]   ;;  %s1127_s6 = inlined_call_operand.hbm [shape: f32[1,128], index: 6, kind: input, shape index: {}]   ;;  %s1128_s7 = inlined_call_operand.vmem [shape: f32[2,1,128], index: 7, kind: output, shape index: {0}]   ;;  %s1129_s8 = inlined_call_operand.vmem [shape: f32[2,1,128], index: 8, kind: output, shape index: {1}]  }
   0x1   :  { %15 = vsyncpa [#allocation5], 0  ;;  %s953_s27 = smov 0   ;;  %s955_s28 = smov 0  }
   0x2   :  { %s957_s29 = smov 0  }
   0x3 LB: > { %s901_s30 = smov [#allocation4]   ;;  %s673_s10 = sadd.s32 4294967295, %s899_s29   ;;  %s899_s29 = sphi %s957_s29, %s21_s29   ;;  %s895_s28 = sphi %s955_s28, %s1142_s28   ;;  %s891_s27 = sphi %s953_s27, %s1141_s27  }
   0x4   : > { %s268_s9 = sshll.u32 %s901_s30, 4  ;;  %p675_p0 = scmp.ge.s32.totalorder %s899_s29, 1  ;;  %s269_s9 = int_to_ptr.vmem [resolvable:$true] %s268_s9 }
   0x5   : > { %p244_p1 = scmp.lt.s32.totalorder %s899_s29, 3  ;;  %p971_p2 = scmp.eq.s32.totalorder %s673_s10, 0 }
   0x6   : > { %s33_s13 = sadd.s32 1, %s895_s28  ;;  %s902_s16 = smov [#allocation2]  }
   0x7   : > { %s1133_s11 = scalar_select %p971_p2, 1, 0 }
   0x8   : > { %p975_p3 = pnand %p675_p0, %p244_p1  ;;  %p988_p6 = scmp.ge.s32.totalorder %s33_s13, 2 }
   0x9   : > { %s257_s17 = sshll.u32 %s902_s16, 4  ;;  %s785_s20 = scalar_lea.hbm %s1123_s2, 16  ;;  %s992_s17 = int_to_ptr.vmem [resolvable:$true] %s257_s17 }
   0xa   : > { %s1134_s12 = scalar_select %p975_p3, 1, 0 }
   0xb   : > { %p727_p4 = pneg %p975_p3  ;;  %p786_p7 = scmp.ne.s32.totalorder %s1123_s2, %s785_s20 }
   0xc   : > { %s1136_s15 = scalar_select %p988_p6, 1, 0 }
   0xd   : > { %p984_p5 = pnand %p971_p2, %p727_p4  ;;  %p792_p11 = scmp.lt.u32.totalorder %s785_s20, %s1123_s2 }
   0xf   : > { %p1002_p8 = pneg %p984_p5 }
  0x11   : > { %p788_p9 = pnand %p1002_p8, %p786_p7 }
  0x13   : > { %p789_p10 = pneg %p788_p9 }
  0x15   : > { %p794_p12 = pnand %p792_p11, %p789_p10 }
  0x17   : > { %797 = shalt.err (!%p794_p12)
}
  0x18   : > { %s798_s26 = scalar_lea.vmem %s269_s9, 16  ;;  %s805_s30 = scalar_lea.vmem %s269_s9, 32 }
  0x19   : > { %p799_p13 = scmp.ne.s32.totalorder %s269_s9, %s798_s26  ;;  %p806_p4 = scmp.lt.s32.totalorder %s269_s9, %s269_s9 }
  0x1a   : > { %p807_p2 = scmp.lt.s32.totalorder %s805_s30, %s798_s26 }
  0x1b   : > { %p801_p0 = pnand %p799_p13, %p1002_p8 }
  0x1c   : > { %p808_p3 = por %p807_p2, %p806_p4 }
  0x1d   : > { %p802_p1 = pneg %p801_p0 }
  0x1f   : > { %p809_p6 = pnand %p808_p3, %p802_p1 }
  0x21   : > { %812 = shalt.err (!%p809_p6)
}
  0x22   : > { %733 = dma.hbm_to_vmem [thread:$0]  (!%p984_p5), %s1123_s2, 16, %s269_s9, [#allocation5]  }
  0x23   : > { %p1138_p7 = scmp.ne.s32.totalorder %s1136_s15, 0  ;;  %s813_s20 = scalar_lea.hbm %s1122_s1, 32 }
  0x24   : > { %p814_p2 = scmp.ne.s32.totalorder %s1122_s1, %s813_s20  ;;  %p820_p9 = scmp.lt.u32.totalorder %s813_s20, %s1122_s1 }
  0x25   : > { %s1144_s13 = smov (%p1138_p7, %s33_s13), 0 }
  0x26   : > { %p816_p3 = pnand %p814_p2, %p1002_p8 }
  0x28   : > { %p817_p6 = pneg %p816_p3 }
  0x2a   : > { %p822_p10 = pnand %p820_p9, %p817_p6 }
  0x2c   : > { %825 = shalt.err (!%p822_p10)
}
  0x2d   : > { %s826_s9 = scalar_lea.vmem %s992_s17, 32  ;;  %p834_p0 = scmp.lt.s32.totalorder %s992_s17, %s992_s17 }
  0x2e   : > { %p827_p11 = scmp.ne.s32.totalorder %s992_s17, %s826_s9  ;;  %p835_p1 = scmp.lt.s32.totalorder %s826_s9, %s826_s9 }
  0x30   : > { %p829_p12 = pnand %p827_p11, %p1002_p8  ;;  %p836_p4 = por %p835_p1, %p834_p0 }
  0x32   : > { %p830_p13 = pneg %p829_p12 }
  0x34   : > { %p837_p7 = pnand %p836_p4, %p830_p13 }
  0x36   : > { %840 = shalt.err (!%p837_p7)
}
  0x37   : > { %730 = dma.hbm_to_vmem [thread:$0]  (!%p984_p5), %s1122_s1, 32, %s992_s17, [#allocation3]  }
  0x38   : > { %s903_s30 = smov [#allocation6]   ;;  %s841_s19 = scalar_lea.hbm %s1127_s6, 16 }
  0x39   : > { %s288_s10 = sshll.u32 %s903_s30, 4  ;;  %p842_p2 = scmp.ne.s32.totalorder %s1127_s6, %s841_s19  ;;  %s289_s10 = int_to_ptr.vmem [resolvable:$true] %s288_s10 }
  0x3a   : > { %p848_p9 = scmp.lt.u32.totalorder %s841_s19, %s1127_s6 }
  0x3b   : > { %p844_p3 = pnand %p842_p2, %p1002_p8 }
  0x3d   : > { %p845_p6 = pneg %p844_p3 }
  0x3f   : > { %p850_p10 = pnand %p848_p9, %p845_p6 }
  0x41   : > { %853 = shalt.err (!%p850_p10)
}
  0x42   : > { %s854_s17 = scalar_lea.vmem %s289_s10, 16  ;;  %s861_s25 = scalar_lea.vmem %s289_s10, 32 }
  0x43   : > { %p855_p11 = scmp.ne.s32.totalorder %s289_s10, %s854_s17  ;;  %p862_p0 = scmp.lt.s32.totalorder %s289_s10, %s289_s10 }
  0x44   : > { %p863_p1 = scmp.lt.s32.totalorder %s861_s25, %s854_s17 }
  0x45   : > { %p857_p12 = pnand %p855_p11, %p1002_p8 }
  0x46   : > { %p864_p4 = por %p863_p1, %p862_p0 }
  0x47   : > { %p858_p13 = pneg %p857_p12 }
  0x49   : > { %p865_p7 = pnand %p864_p4, %p858_p13 }
  0x4b   : > { %868 = shalt.err (!%p865_p7)
}
  0x4c   : > { %736 = dma.hbm_to_vmem [thread:$0]  (!%p984_p5), %s1127_s6, 16, %s289_s10, [#allocation5]  }
  0x4d   : > { %p1139_p2 = scmp.ne.s32.totalorder %s1134_s12, 0 }
  0x4e   : > { %p1140_p3 = scmp.ne.s32.totalorder (!%p1139_p2), %s1133_s11, 0 }
  0x4f   : > { %314 = sbr.rel (%p1139_p2) target bundleno = 485 (0x1e5), region = 48 }
  0x56   : > { %882 = dma.done.wait (%p1140_p3), [#allocation3], 32  }
  0x57   : > { %884 = vsyncadd (%p1140_p3), [#allocation3], 4294967264 }
  0x58   : > { %886 = dma.done.wait (%p1140_p3), [#allocation5], 32  }
  0x59   : > { %888 = vsyncadd (%p1140_p3), [#allocation5], 4294967264  ;;  %p362_p8 = scmp.lt.s32.totalorder %s891_s27, 1  ;;  %v904_v0 = vmov 1   ;;  %v905_v1 = vmov 0   ;;  %v777_v4 = vld [vmem:[%s1126_s5] sm:$0xff]   ;;  %v392_v9 = vlaneseq }
  0x5a   : > { %775 = vset.pattern.permute.xlu1 %v904_v0  ;;  %774 = vset.pattern.permute.xlu0 %v905_v1  ;;  %v906_v5 = vmov 0.0   ;;  %v778_v6 = vld [vmem:[%s1126_s5 + $0x8] sm:$0xff]   ;;  %vm907_vm0 = vmmov 0   ;;  %v779_v7 = vld [vmem:[%s1126_s5 + $0x10] sm:$0xff]   ;;  %v780_v8 = vld [vmem:[%s1126_s5 + $0x18] sm:$0xff]   ;;  %vm482_vm1 = vcmask 523264  }
  0x5b   : > { %s1146_s27 = smov (!%p362_p8, %s891_s27), 1  ;;  %703 = vmatprep.subr.bf16.mxu0 %v906_v5  ;;  %711 = vmatprep.mubr.msk.bf16.mxu0 %vm907_vm0, %v906_v5  ;;  %v393_v10 = vshrl.u32 %v392_v9, 7  ;;  %v380_v13 = vld [vmem:[#allocation2] sm:$0x3]  ;;  %v686_v20 = vld [vmem:[#allocation4] ss:$0 sm:$0xff] }
  0x5c   : > { %s697_s12 = sshll.u32 %s1146_s27, 4  ;;  %s1081_s10 = scalar_lea.vmem %s1128_s7, %s1146_s27  ;;  %704 = vmatpush3.bf16.msra.mxu0 %v777_v4  ;;  %v687_v22 = vld [vmem:[%s1124_s3] ss:$0 sm:$0xff]  ;;  %v689_v38 = vld [vmem:[#allocation6] ss:$0 sm:$0xff] }
  0x5d   : > { %s369_s26 = scalar_lea.vmem %s1121_s0, %s697_s12  ;;  %s1086_s19 = scalar_lea.vmem %s1129_s8, %s1146_s27  ;;  %531 = vst [vmem:[%s1081_s10] sm:$0x1] %v906_v5  ;;  %705 = vmatprep.subr.bf16.mxu0 %v906_v5  ;;  %v408_v11 = vsub.s32 1, %v393_v10  ;;  %v394_v12 = vsub.s32 0, %v393_v10  ;;  %v688_v28 = vld [vmem:[%s1125_s4] ss:$0 sm:$0xff] }
  0x5e   : > { %v378_v2 = vld [vmem:[%s369_s26] sm:$0xff]  ;;  %v379_v3 = vld [vmem:[%s369_s26 + $0x8] sm:$0xff]  ;;  %532 = vst [vmem:[%s1086_s19] sm:$0x1] %v906_v5 }
  0x5f   : > { %399 = vperm.xlu1 %775, %v378_v2   ;;  %384 = vperm.xlu0 %774, %v378_v2   ;;  %v409_v14 = vrot.slane %v380_v13, %v408_v11  ;;  %v395_v15 = vrot.slane %v380_v13, %v394_v12 }
  0x60   : > { %706 = vmatpush3.bf16.msra.mxu0 %v778_v6 }
  0x61   : > { %707 = vmatprep.subr.bf16.mxu0 %v906_v5 }
  0x63   : > { %403 = vperm.xlu1 %775, %v379_v3   ;;  %389 = vperm.xlu0 %774, %v379_v3  }
  0x64   : > { %708 = vmatpush3.bf16.msra.mxu0 %v779_v7  ;;  %v533_v58 = vld [vmem:[%s1081_s10] sm:$0x1] }
  0x65   : > { %709 = vmatprep.subr.bf16.mxu0 %v906_v5  ;;  %v543_v61 = vld [vmem:[%s1086_s19] sm:$0x1] }
  0x67   : > { %776 = vset.pattern.permute.xlu0 %v904_v0 }
  0x68   : > { %710 = vmatpush3.bf16.msra.mxu0 %v780_v8 }
  0xde   : > { %v400_v16 = vpop.permute.xlu1 %399  ;;  %v385_v17 = vpop.permute.xlu0 %384 }
  0xdf   : > { %v410_v18 = vmul.f32 %v409_v14, %v400_v16  ;;  %v396_v19 = vmul.f32 %v395_v15, %v385_v17 }
  0xe1   : > { %v412_v21 = vadd.f32 %v410_v18, %v396_v19 }
  0xe2   : > { %v404_v23 = vpop.permute.xlu1 %403  ;;  %v390_v24 = vpop.permute.xlu0 %389 }
  0xe3   : > { %v420_v25 = vadd.f32 %v686_v20, %v412_v21  ;;  %v411_v26 = vmul.f32 %v409_v14, %v404_v23  ;;  %v397_v27 = vmul.f32 %v395_v15, %v390_v24 }
  0xe5   : > { %v429_v29 = vmul.f32 %v687_v22, %v420_v25  ;;  %v413_v30 = vadd.f32 %v411_v26, %v397_v27 }
  0xe7   : > { %v421_v31 = vadd.f32 %v686_v20, %v413_v30  ;;  %v438_v32 = vadd.f32 %v688_v28, %v429_v29 }
  0xe9   : > { %v430_v33 = vmul.f32 %v687_v22, %v421_v31  ;;  %781 = vtanh.f32 %v438_v32 }
  0xeb   : > { %v439_v34 = vadd.f32 %v688_v28, %v430_v33 }
  0xed   : > { %783 = vtanh.f32 %v439_v34 }
  0xf3   : > { %v782_v35 = vpop.eup %781 }
  0xf7   : > { %v784_v36 = vpop.eup %783 }
  0xf8   : > { %v442_v37 = vpack.c.bf16 %v784_v36, %v782_v35 }
  0xfa   : > { %712 = vmatmul.mubr.msk.bf16.vlgmr.msra.gmra.mrb[0].mxu0 %vm482_vm1, %v442_v37 }
 0x1cd   : > { %v520_v39 = vpop.f32.mrb[0].mxu0 }
 0x1ce   : > { %v521_v40 = vadd.f32 %v689_v38, %v520_v39  ;;  %v713_v41 = vpop.f32.mrb[1].mxu0 }
 0x1cf   : > { %v523_v42 = vpop.f32.mrb[2].mxu0 }
 0x1d0   : > { %v524_v43 = vadd.f32 %v689_v38, %v523_v42  ;;  %v714_v44 = vpop.f32.mrb[3].mxu0  ;;  %v544_v45 = vmul.f32 %v521_v40, %v521_v40 }
 0x1d2   : > { %v534_v46 = vadd.f32 %v524_v43, %v521_v40  ;;  %v545_v47 = vmul.f32 %v524_v43, %v524_v43 }
 0x1d4   : > { %v535_v48 = vrot.slane %v534_v46, 4  ;;  %v546_v49 = vadd.f32 %v545_v47, %v544_v45 }
 0x1d6   : > { %v536_v50 = vadd.f32 %v535_v48, %v534_v46  ;;  %v547_v51 = vrot.slane %v546_v49, 4 }
 0x1d8   : > { %v537_v52 = vrot.slane %v536_v50, 2  ;;  %v548_v53 = vadd.f32 %v547_v51, %v546_v49 }
 0x1da   : > { %v538_v54 = vadd.f32 %v537_v52, %v536_v50  ;;  %v549_v55 = vrot.slane %v548_v53, 2 }
 0x1dc   : > { %v539_v56 = vrot.slane %v538_v54, 1  ;;  %v550_v57 = vadd.f32 %v549_v55, %v548_v53 }
 0x1de   : > { %v540_v59 = vadd.f32 %v539_v56, %v538_v54  ;;  %v551_v60 = vrot.slane %v550_v57, 1 }
 0x1e0   : > { %v541_v62 = vadd.f32 %v540_v59, %v533_v58  ;;  %v552_v63 = vadd.f32 %v551_v60, %v550_v57 }
 0x1e2   : > { %542 = vst [vmem:[%s1081_s10] sm:$0x1] %v541_v62  ;;  %v553_v0 = vadd.f32 %v552_v63, %v543_v61 }
 0x1e4   : > { %554 = vst [vmem:[%s1086_s19] sm:$0x1] %v553_v0 }
 0x1e5 PF: > { %s21_s29 = sadd.s32 1, %s899_s29   ;;  %s1141_s27 = smov %s895_s28 }
 0x1e6   : > { %p18_p5 = scmp.ge.s32.totalorder %s21_s29, 4   ;;  %s1142_s28 = smov %s1144_s13 }
 0x1e8   :  { %20 = sbr.rel (!%p18_p5) target bundleno = 3 (0x3), region = 107 }
 0x1ef   :  { %584 = vsyncpa [#allocation3], 1 }
 0x1f0   :  { %586 = vsyncpa [#allocation3 + $0x1], 1 }
 0x1f1   :  { %587 = vsyncpa [#allocation5], 1 }

// kernel: stn3d_forward.6
= control target key start
LH: loop header
LB: loop body
LE: loop exit
PB: predicated region body
PF: predicated region fallthrough
CT: control target
= control target key end

     0   :  { %s3084_s0 = inlined_call_operand.vmem [shape: f32[2,16,2], index: 0, kind: input, shape index: {}]   ;;  %s3085_s1 = inlined_call_operand.hbm [shape: f32[2,64], index: 1, kind: input, shape index: {}]   ;;  %s3086_s2 = inlined_call_operand.hbm [shape: f32[1,64], index: 2, kind: input, shape index: {}]   ;;  %s3087_s3 = inlined_call_operand.vmem [shape: f32[1,64], index: 3, kind: input, shape index: {}]   ;;  %s3088_s4 = inlined_call_operand.vmem [shape: f32[1,64], index: 4, kind: input, shape index: {}]   ;;  %s3089_s5 = inlined_call_operand.vmem [shape: bf16[64,128], index: 5, kind: input, shape index: {}]   ;;  %s3090_s6 = inlined_call_operand.hbm [shape: f32[1,128], index: 6, kind: input, shape index: {}]   ;;  %s3091_s7 = inlined_call_operand.vmem [shape: f32[1,128], index: 7, kind: input, shape index: {}]   ;;  %s3092_s8 = inlined_call_operand.vmem [shape: f32[1,128], index: 8, kind: input, shape index: {}]   ;;  %s3093_s9 = inlined_call_operand.vmem [shape: bf16[128,1024], index: 9, kind: input, shape index: {}]   ;;  %s3094_s10 = inlined_call_operand.hbm [shape: f32[1,1024], index: 10, kind: input, shape index: {}]   ;;  %s3095_s11 = inlined_call_operand.vmem [shape: f32[2,1,1024], index: 11, kind: output, shape index: {0}]   ;;  %s3096_s12 = inlined_call_operand.vmem [shape: f32[2,1,1024], index: 12, kind: output, shape index: {1}]   ;;  %s3097_s13 = inlined_call_operand.vmem [shape: f32[2,1,1024], index: 13, kind: output, shape index: {2}]   ;;  %s3098_s14 = inlined_call_operand.vmem [shape: f32[2,1,1024], index: 14, kind: output, shape index: {3}]  }
   0x1   :  { %3104 = sst [smem:[#allocation14_spill]] %s3086_s2 }
   0x2   :  { %3105 = sst [smem:[#allocation15_spill]] %s3096_s12 }
   0x3   :  { %3106 = sst [smem:[#allocation16_spill]] %s3098_s14 }
   0x4   :  { %20 = vsyncpa [#allocation3], 0 }
   0x5   :  { %21 = vsyncpa [#allocation5], 0 }
   0x6   :  { %22 = vsyncpa [#allocation8], 0  ;;  %s2472_s29 = smov 0   ;;  %s2474_s30 = smov 0  }
   0x7   :  { %s2476_s15 = smov 0  }
   0x8 LB: > { %3107 = sst [smem:[#allocation12_spill]] %s2382_s30  ;;  %s2388_s16 = smov [#allocation4]   ;;  %s2386_s15 = sphi %s2476_s15, %s28_s15   ;;  %s2382_s30 = sphi %s2474_s30, %s3122_s30   ;;  %s2378_s29 = sphi %s2472_s29, %s3121_s29  }
   0x9   : > { %3108 = sst [smem:[#allocation13_spill]] %s2386_s15  ;;  %s411_s17 = sshll.u32 %s2388_s16, 4  ;;  %s412_s17 = int_to_ptr.vmem [resolvable:$true] %s411_s17 }
   0xa   : > { %s2039_s18 = sadd.s32 4294967295, %s2386_s15   ;;  %p2041_p0 = scmp.ge.s32.totalorder %s2386_s15, 1 }
   0xb   : > { %p387_p1 = scmp.lt.s32.totalorder %s2386_s15, 3  ;;  %p2490_p2 = scmp.eq.s32.totalorder %s2039_s18, 0 }
   0xc   : > { %s40_s21 = sadd.s32 1, %s2382_s30  ;;  %s2389_s24 = smov [#allocation2]  }
   0xd   : > { %s3109_s19 = scalar_select %p2490_p2, 1, 0 }
   0xe   : > { %p2494_p3 = pnand %p2041_p0, %p387_p1  ;;  %p2507_p6 = scmp.ge.s32.totalorder %s40_s21, 2 }
   0xf   : > { %s400_s25 = sshll.u32 %s2389_s24, 4  ;;  %s3113_s2 = sld [smem:[#allocation14_spill]]  ;;  %s2511_s25 = int_to_ptr.vmem [resolvable:$true] %s400_s25 }
  0x10   : > { %s3110_s20 = scalar_select %p2494_p3, 1, 0 }
  0x11   : > { %p2169_p4 = pneg %p2494_p3 }
  0x12   : > { %s3112_s23 = scalar_select %p2507_p6, 1, 0 }
  0x13   : > { %p2503_p5 = pnand %p2490_p2, %p2169_p4 }
  0x15   : > { %s2240_s28 = scalar_lea.hbm %s3113_s2, 16  ;;  %p2521_p8 = pneg %p2503_p5 }
  0x16   : > { %p2241_p7 = scmp.ne.s32.totalorder %s3113_s2, %s2240_s28  ;;  %p2247_p11 = scmp.lt.u32.totalorder %s2240_s28, %s3113_s2 }
  0x18   : > { %p2243_p9 = pnand %p2521_p8, %p2241_p7 }
  0x1a   : > { %p2244_p10 = pneg %p2243_p9 }
  0x1c   : > { %p2249_p12 = pnand %p2247_p11, %p2244_p10 }
  0x1e   : > { %2252 = shalt.err (!%p2249_p12)
}
  0x1f   : > { %s2253_s26 = scalar_lea.vmem %s412_s17, 16  ;;  %s2260_s27 = scalar_lea.vmem %s412_s17, 32 }
  0x20   : > { %p2254_p13 = scmp.ne.s32.totalorder %s412_s17, %s2253_s26  ;;  %p2261_p4 = scmp.lt.s32.totalorder %s412_s17, %s412_s17 }
  0x21   : > { %p2262_p2 = scmp.lt.s32.totalorder %s2260_s27, %s2253_s26 }
  0x22   : > { %p2256_p0 = pnand %p2254_p13, %p2521_p8 }
  0x23   : > { %p2263_p3 = por %p2262_p2, %p2261_p4 }
  0x24   : > { %p2257_p1 = pneg %p2256_p0 }
  0x26   : > { %p2264_p6 = pnand %p2263_p3, %p2257_p1 }
  0x28   : > { %2267 = shalt.err (!%p2264_p6)
}
  0x29   : > { %2175 = dma.hbm_to_vmem [thread:$0]  (!%p2503_p5), %s3113_s2, 16, %s412_s17, [#allocation5]  }
  0x2a   : > { %p3115_p7 = scmp.ne.s32.totalorder %s3112_s23, 0  ;;  %s2268_s24 = scalar_lea.hbm %s3085_s1, 32 }
  0x2b   : > { %p2269_p2 = scmp.ne.s32.totalorder %s3085_s1, %s2268_s24  ;;  %p2275_p9 = scmp.lt.u32.totalorder %s2268_s24, %s3085_s1 }
  0x2c   : > { %s3124_s21 = smov (%p3115_p7, %s40_s21), 0 }
  0x2d   : > { %p2271_p3 = pnand %p2269_p2, %p2521_p8 }
  0x2f   : > { %p2272_p6 = pneg %p2271_p3 }
  0x31   : > { %p2277_p10 = pnand %p2275_p9, %p2272_p6 }
  0x33   : > { %2280 = shalt.err (!%p2277_p10)
}
  0x34   : > { %s2281_s17 = scalar_lea.vmem %s2511_s25, 32  ;;  %p2289_p0 = scmp.lt.s32.totalorder %s2511_s25, %s2511_s25 }
  0x35   : > { %p2282_p11 = scmp.ne.s32.totalorder %s2511_s25, %s2281_s17  ;;  %p2290_p1 = scmp.lt.s32.totalorder %s2281_s17, %s2281_s17 }
  0x37   : > { %p2284_p12 = pnand %p2282_p11, %p2521_p8  ;;  %p2291_p4 = por %p2290_p1, %p2289_p0 }
  0x39   : > { %p2285_p13 = pneg %p2284_p12 }
  0x3b   : > { %p2292_p7 = pnand %p2291_p4, %p2285_p13 }
  0x3d   : > { %2295 = shalt.err (!%p2292_p7)
}
  0x3e   : > { %2172 = dma.hbm_to_vmem [thread:$0]  (!%p2503_p5), %s3085_s1, 32, %s2511_s25, [#allocation3]  }
  0x3f   : > { %s2390_s23 = smov [#allocation6]   ;;  %s2391_s18 = smov [#allocation7]  }
  0x40   : > { %s431_s16 = sshll.u32 %s2390_s23, 4  ;;  %s451_s15 = sshll.u32 %s2391_s18, 4  ;;  %s432_s16 = int_to_ptr.vmem [resolvable:$true] %s431_s16  ;;  %s452_s15 = int_to_ptr.vmem [resolvable:$true] %s451_s15 }
  0x41   : > { %s2296_s26 = scalar_lea.hbm %s3090_s6, 16 }
  0x42   : > { %p2297_p2 = scmp.ne.s32.totalorder %s3090_s6, %s2296_s26  ;;  %p2303_p9 = scmp.lt.u32.totalorder %s2296_s26, %s3090_s6 }
  0x44   : > { %p2299_p3 = pnand %p2297_p2, %p2521_p8 }
  0x46   : > { %p2300_p6 = pneg %p2299_p3 }
  0x48   : > { %p2305_p10 = pnand %p2303_p9, %p2300_p6 }
  0x4a   : > { %2308 = shalt.err (!%p2305_p10)
}
  0x4b   : > { %s2309_s25 = scalar_lea.vmem %s432_s16, 16  ;;  %s2316_s14 = scalar_lea.vmem %s432_s16, 32 }
  0x4c   : > { %p2310_p11 = scmp.ne.s32.totalorder %s432_s16, %s2309_s25  ;;  %p2317_p0 = scmp.lt.s32.totalorder %s432_s16, %s432_s16 }
  0x4d   : > { %p2318_p1 = scmp.lt.s32.totalorder %s2316_s14, %s2309_s25 }
  0x4e   : > { %p2312_p12 = pnand %p2310_p11, %p2521_p8 }
  0x4f   : > { %p2319_p4 = por %p2318_p1, %p2317_p0 }
  0x50   : > { %p2313_p13 = pneg %p2312_p12 }
  0x52   : > { %p2320_p7 = pnand %p2319_p4, %p2313_p13 }
  0x54   : > { %2323 = shalt.err (!%p2320_p7)
}
  0x55   : > { %2178 = dma.hbm_to_vmem [thread:$0]  (!%p2503_p5), %s3090_s6, 16, %s432_s16, [#allocation5]  }
  0x56   : > { %s2324_s24 = scalar_lea.hbm %s3094_s10, 128 }
  0x57   : > { %p2325_p2 = scmp.ne.s32.totalorder %s3094_s10, %s2324_s24  ;;  %p2331_p9 = scmp.lt.u32.totalorder %s2324_s24, %s3094_s10 }
  0x59   : > { %p2327_p3 = pnand %p2325_p2, %p2521_p8 }
  0x5b   : > { %p2328_p6 = pneg %p2327_p3 }
  0x5d   : > { %p2333_p10 = pnand %p2331_p9, %p2328_p6 }
  0x5f   : > { %2336 = shalt.err (!%p2333_p10)
}
  0x60   : > { %s2337_s25 = scalar_lea.vmem %s452_s15, 128  ;;  %p2345_p0 = scmp.lt.s32.totalorder %s452_s15, %s452_s15 }
  0x61   : > { %p2338_p11 = scmp.ne.s32.totalorder %s452_s15, %s2337_s25  ;;  %p2346_p1 = scmp.lt.s32.totalorder %s2337_s25, %s2337_s25 }
  0x63   : > { %p2340_p12 = pnand %p2338_p11, %p2521_p8  ;;  %p2347_p4 = por %p2346_p1, %p2345_p0 }
  0x65   : > { %p2341_p13 = pneg %p2340_p12 }
  0x67   : > { %p2348_p7 = pnand %p2347_p4, %p2341_p13 }
  0x69   : > { %2351 = shalt.err (!%p2348_p7)
}
  0x6a   : > { %2181 = dma.hbm_to_vmem [thread:$0]  (!%p2503_p5), %s3094_s10, 128, %s452_s15, [#allocation8]  }
  0x6b   : > { %p3116_p2 = scmp.ne.s32.totalorder %s3110_s20, 0 }
  0x6c   : > { %p3117_p3 = scmp.ne.s32.totalorder (!%p3116_p2), %s3109_s19, 0 }
  0x6d   : > { %477 = sbr.rel (%p3116_p2) target bundleno = 810 (0x32a), region = 64 }
  0x74   : > { %2365 = dma.done.wait (%p3117_p3), [#allocation3], 32  }
  0x75   : > { %2367 = vsyncadd (%p3117_p3), [#allocation3], 4294967264 }
  0x76   : > { %2369 = dma.done.wait (%p3117_p3), [#allocation5], 32  }
  0x77   : > { %2371 = vsyncadd (%p3117_p3), [#allocation5], 4294967264 }
  0x78   : > { %2373 = dma.done.wait (%p3117_p3), [#allocation8], 128  }
  0x79   : > { %2375 = vsyncadd (%p3117_p3), [#allocation8], 4294967168  ;;  %p551_p5 = scmp.lt.s32.totalorder %s2378_s29, 1  ;;  %v2392_v0 = vmov 1   ;;  %v2393_v1 = vmov 0   ;;  %v2228_v4 = vld [vmem:[%s3089_s5] sm:$0xff]   ;;  %v591_v25 = vlaneseq }
  0x7a   : > { %2226 = vset.pattern.permute.xlu1 %v2392_v0  ;;  %2225 = vset.pattern.permute.xlu0 %v2393_v1  ;;  %v2394_v5 = vmov 0.0   ;;  %v2229_v6 = vld [vmem:[%s3089_s5 + $0x8] sm:$0xff]   ;;  %vm2395_vm0 = vmmov 0   ;;  %v2230_v7 = vld [vmem:[%s3089_s5 + $0x10] sm:$0xff]   ;;  %v2231_v8 = vld [vmem:[%s3089_s5 + $0x18] sm:$0xff]   ;;  %vm681_vm1 = vcmask 523264  }
  0x7b   : > { %s3126_s29 = smov (!%p551_p5, %s2378_s29), 1  ;;  %1205 = vmatprep.mubr.bf16.mxu1 %v2393_v1  ;;  %2141 = vmatprep.subr.bf16.mxu0 %v2394_v5  ;;  %v747_v9 = vld [vmem:[%s3093_s9] sm:$0xff]  ;;  %v748_v11 = vld [vmem:[%s3093_s9 + $0x8] sm:$0xff]  ;;  %v2660_v26 = vshrl.u32 %v591_v25, 7  ;;  %s3119_s2 = sld [smem:[#allocation16_spill]] }
  0x7c   : > { %s2135_s30 = sshll.u32 %s3126_s29, 4  ;;  %2142 = vmatpush3.bf16.msra.mxu0 %v2228_v4  ;;  %2149 = vmatprep.mubr.msk.bf16.mxu0 %vm2395_vm0, %v2394_v5  ;;  %v751_v10 = vld [vmem:[%s3093_s9 + $0x20] sm:$0xff]  ;;  %v752_v13 = vld [vmem:[%s3093_s9 + $0x28] sm:$0xff]  ;;  %s2054_s17 = sshll.u32 %s3126_s29, 3 }
  0x7d   : > { %s558_s15 = scalar_lea.vmem %s3084_s0, %s2135_s30  ;;  %2143 = vmatprep.subr.bf16.mxu0 %v2394_v5  ;;  %v2070_v12 = vcombine.high %v747_v9, %v751_v10  ;;  %v2069_v14 = vcombine.low %v747_v9, %v751_v10  ;;  %v755_v15 = vld [vmem:[%s3093_s9 + $0x40] sm:$0xff]  ;;  %v2071_v17 = vcombine.low %v748_v11, %v752_v13  ;;  %v2072_v18 = vcombine.high %v748_v11, %v752_v13  ;;  %v756_v51 = vld [vmem:[%s3093_s9 + $0x48] sm:$0xff]  ;;  %s563_s25 = scalar_lea.vmem %s3095_s11, %s2054_s17 }
  0x7e   : > { %v577_v2 = vld [vmem:[%s558_s15] sm:$0xff]  ;;  %v578_v3 = vld [vmem:[%s558_s15 + $0x8] sm:$0xff]  ;;  %v607_v27 = vsub.s32 1, %v2660_v26  ;;  %v593_v28 = vsub.s32 0, %v2660_v26  ;;  %s571_s30 = scalar_lea.vmem %s3097_s13, %s2054_s17  ;;  %s3118_s15 = sld [smem:[#allocation15_spill]] }
  0x7f   : > { %598 = vperm.xlu1 %2226, %v577_v2   ;;  %583 = vperm.xlu0 %2225, %v577_v2   ;;  %v759_v16 = vld [vmem:[%s3093_s9 + $0x60] sm:$0xff]  ;;  %v760_v52 = vld [vmem:[%s3093_s9 + $0x68] sm:$0xff] }
  0x80   : > { %2144 = vmatpush3.bf16.msra.mxu0 %v2229_v6  ;;  %v2078_v19 = vcombine.high %v755_v15, %v759_v16  ;;  %1173 = vmatprep.subr.bf16.mxu1 %v2070_v12  ;;  %v2077_v20 = vcombine.low %v755_v15, %v759_v16  ;;  %v763_v21 = vld [vmem:[%s3093_s9 + $0x80] sm:$0xff]  ;;  %v2080_v56 = vcombine.high %v756_v51, %v760_v52  ;;  %v764_v57 = vld [vmem:[%s3093_s9 + $0x88] sm:$0xff] }
  0x81   : > { %2145 = vmatprep.subr.bf16.mxu0 %v2394_v5  ;;  %1174 = vmatpush1.bf16.msra.mxu1 %v2069_v14  ;;  %v767_v22 = vld [vmem:[%s3093_s9 + $0xa0] sm:$0xff]  ;;  %v768_v58 = vld [vmem:[%s3093_s9 + $0xa8] sm:$0xff]  ;;  %v2079_v59 = vcombine.low %v756_v51, %v760_v52  ;;  %s575_s28 = scalar_lea.vmem %s3119_s2, %s2054_s17 }
  0x82   : > { %1175 = vmatprep.subr.bf16.mxu1 %v2078_v19  ;;  %v2086_v23 = vcombine.high %v763_v21, %v767_v22  ;;  %v2085_v24 = vcombine.low %v763_v21, %v767_v22  ;;  %v579_v29 = vld [vmem:[#allocation2] sm:$0x3]  ;;  %v2058_v36 = vld [vmem:[#allocation4] ss:$0 sm:$0xff]  ;;  %v2088_v60 = vcombine.high %v764_v57, %v768_v58  ;;  %v2087_v61 = vcombine.low %v764_v57, %v768_v58  ;;  %v780_v9 = vld [vmem:[%s3093_s9 + $0x108] sm:$0xff] }
  0x83   : > { %602 = vperm.xlu1 %2226, %v578_v3   ;;  %588 = vperm.xlu0 %2225, %v578_v3   ;;  %v608_v30 = vrot.slane %v579_v29, %v607_v27  ;;  %v594_v31 = vrot.slane %v579_v29, %v593_v28  ;;  %v2059_v38 = vld [vmem:[%s3087_s3] ss:$0 sm:$0xff]  ;;  %v776_v3 = vld [vmem:[%s3093_s9 + $0xe8] sm:$0xff] }
  0x84   : > { %2146 = vmatpush3.bf16.msra.mxu0 %v2230_v7  ;;  %v2060_v44 = vld [vmem:[%s3088_s4] ss:$0 sm:$0xff]  ;;  %v784_v11 = vld [vmem:[%s3093_s9 + $0x128] sm:$0xff]  ;;  %s567_s19 = scalar_lea.vmem %s3118_s15, %s2054_s17 }
  0x85   : > { %2147 = vmatprep.subr.bf16.mxu0 %v2394_v5  ;;  %1176 = vmatpush1.bf16.msra.mxu1 %v2077_v20  ;;  %v771_v62 = vld [vmem:[%s3093_s9 + $0xc0] sm:$0xff]  ;;  %v2103_v12 = vcombine.low %v780_v9, %v784_v11  ;;  %v2104_v13 = vcombine.high %v780_v9, %v784_v11  ;;  %v792_v19 = vld [vmem:[%s3093_s9 + $0x168] sm:$0xff]  ;;  %v765_v9 = vld [vmem:[%s3093_s9 + $0x90] sm:$0xff] }
  0x86   : > { %1177 = vmatprep.subr.bf16.mxu1 %v2086_v23  ;;  %v775_v63 = vld [vmem:[%s3093_s9 + $0xe0] sm:$0xff]  ;;  %v796_v25 = vld [vmem:[%s3093_s9 + $0x188] sm:$0xff]  ;;  %v766_v11 = vld [vmem:[%s3093_s9 + $0x98] sm:$0xff] }
  0x87   : > { %2227 = vset.pattern.permute.xlu0 %v2392_v0  ;;  %v772_v0 = vld [vmem:[%s3093_s9 + $0xc8] sm:$0xff]  ;;  %v2094_v2 = vcombine.high %v771_v62, %v775_v63  ;;  %v2093_v6 = vcombine.low %v771_v62, %v775_v63  ;;  %v779_v7 = vld [vmem:[%s3093_s9 + $0x100] sm:$0xff]  ;;  %v757_v63 = vld [vmem:[%s3093_s9 + $0x50] sm:$0xff] }
  0x88   : > { %2148 = vmatpush3.bf16.msra.mxu0 %v2231_v8  ;;  %v2095_v4 = vcombine.low %v772_v0, %v776_v3  ;;  %v2096_v5 = vcombine.high %v772_v0, %v776_v3  ;;  %v783_v8 = vld [vmem:[%s3093_s9 + $0x120] sm:$0xff]  ;;  %v761_v0 = vld [vmem:[%s3093_s9 + $0x70] sm:$0xff]  ;;  %v762_v3 = vld [vmem:[%s3093_s9 + $0x78] sm:$0xff] }
  0x89   : > { %1216 = vmatprep.subr.bf16.mxu0 %v2072_v18  ;;  %1178 = vmatpush1.bf16.msra.mxu1 %v2085_v24  ;;  %v2102_v10 = vcombine.high %v779_v7, %v783_v8  ;;  %v2101_v14 = vcombine.low %v779_v7, %v783_v8  ;;  %v787_v15 = vld [vmem:[%s3093_s9 + $0x140] sm:$0xff]  ;;  %v2082_v7 = vcombine.high %v757_v63, %v761_v0 }
  0x8a   : > { %1179 = vmatprep.subr.bf16.mxu1 %v2094_v2  ;;  %v791_v16 = vld [vmem:[%s3093_s9 + $0x160] sm:$0xff]  ;;  %v758_v2 = vld [vmem:[%s3093_s9 + $0x58] sm:$0xff] }
  0x8b   : > { %v2110_v18 = vcombine.high %v787_v15, %v791_v16  ;;  %v2109_v22 = vcombine.low %v787_v15, %v791_v16  ;;  %v795_v23 = vld [vmem:[%s3093_s9 + $0x180] sm:$0xff]  ;;  %v2084_v8 = vcombine.high %v758_v2, %v762_v3 }
  0x8c   : > { %v799_v24 = vld [vmem:[%s3093_s9 + $0x1a0] sm:$0xff] }
  0x8d   : > { %1180 = vmatpush1.bf16.msra.mxu1 %v2093_v6  ;;  %v2118_v29 = vcombine.high %v795_v23, %v799_v24  ;;  %v2067_v52 = vld [vmem:[%s3091_s7] ss:$0 sm:$0xff] }
  0x8e   : > { %1181 = vmatprep.subr.bf16.mxu1 %v2102_v10  ;;  %v769_v10 = vld [vmem:[%s3093_s9 + $0xb0] sm:$0xff] }
  0x8f   : > { %v2090_v15 = vcombine.high %v765_v9, %v769_v10 }
  0x91   : > { %1182 = vmatpush1.bf16.msra.mxu1 %v2101_v14  ;;  %v2083_v14 = vcombine.low %v758_v2, %v762_v3  ;;  %v827_v2 = vsub.s32 3, %v2660_v26 }
  0x92   : > { %1183 = vmatprep.subr.bf16.mxu1 %v2110_v18  ;;  %v777_v18 = vld [vmem:[%s3093_s9 + $0xf0] sm:$0xff] }
  0x95   : > { %1184 = vmatpush1.bf16.msra.mxu1 %v2109_v22 }
  0x96   : > { %1185 = vmatprep.subr.bf16.mxu1 %v2118_v29  ;;  %v785_v29 = vld [vmem:[%s3093_s9 + $0x130] sm:$0xff] }
  0xfe   : > { %v599_v32 = vpop.permute.xlu1 %598  ;;  %v584_v33 = vpop.permute.xlu0 %583 }
  0xff   : > { %v609_v34 = vmul.f32 %v608_v30, %v599_v32  ;;  %v595_v35 = vmul.f32 %v594_v31, %v584_v33  ;;  %v803_v32 = vld [vmem:[%s3093_s9 + $0x1c0] sm:$0xff] }
 0x100   : > { %v807_v33 = vld [vmem:[%s3093_s9 + $0x1e0] sm:$0xff] }
 0x101   : > { %v611_v37 = vadd.f32 %v609_v34, %v595_v35 }
 0x102   : > { %v603_v39 = vpop.permute.xlu1 %602  ;;  %v589_v40 = vpop.permute.xlu0 %588 }
 0x103   : > { %v619_v41 = vadd.f32 %v2058_v36, %v611_v37  ;;  %v610_v42 = vmul.f32 %v608_v30, %v603_v39  ;;  %v596_v43 = vmul.f32 %v594_v31, %v589_v40  ;;  %v800_v30 = vld [vmem:[%s3093_s9 + $0x1a8] sm:$0xff]  ;;  %v2117_v31 = vcombine.low %v795_v23, %v799_v24  ;;  %v749_v39 = vld [vmem:[%s3093_s9 + $0x10] sm:$0xff] }
 0x104   : > { %v2119_v34 = vcombine.low %v796_v25, %v800_v30  ;;  %v2120_v35 = vcombine.high %v796_v25, %v800_v30  ;;  %v804_v37 = vld [vmem:[%s3093_s9 + $0x1c8] sm:$0xff]  ;;  %v781_v25 = vld [vmem:[%s3093_s9 + $0x110] sm:$0xff]  ;;  %v786_v30 = vld [vmem:[%s3093_s9 + $0x138] sm:$0xff] }
 0x105   : > { %v628_v45 = vmul.f32 %v2059_v38, %v619_v41  ;;  %v612_v46 = vadd.f32 %v610_v42, %v596_v43  ;;  %v753_v41 = vld [vmem:[%s3093_s9 + $0x30] sm:$0xff]  ;;  %v750_v42 = vld [vmem:[%s3093_s9 + $0x18] sm:$0xff]  ;;  %1186 = vmatpush1.bf16.msra.mxu1 %v2117_v31 }
 0x106   : > { %v754_v43 = vld [vmem:[%s3093_s9 + $0x38] sm:$0xff] }
 0x107   : > { %v620_v47 = vadd.f32 %v2058_v36, %v612_v46  ;;  %v637_v48 = vadd.f32 %v2060_v44, %v628_v45  ;;  %v2126_v36 = vcombine.high %v803_v32, %v807_v33  ;;  %v2075_v45 = vcombine.low %v750_v42, %v754_v43 }
 0x108   : > { %v2125_v46 = vcombine.low %v803_v32, %v807_v33  ;;  %v2106_v33 = vcombine.high %v781_v25, %v785_v29 }
 0x109   : > { %v629_v49 = vmul.f32 %v2059_v38, %v620_v47  ;;  %2232 = vtanh.f32 %v637_v48  ;;  %v808_v38 = vld [vmem:[%s3093_s9 + $0x1e8] sm:$0xff]  ;;  %1187 = vmatprep.subr.bf16.mxu1 %v2126_v36  ;;  %v2074_v48 = vcombine.high %v749_v39, %v753_v41  ;;  %v793_v36 = vld [vmem:[%s3093_s9 + $0x170] sm:$0xff] }
 0x10a   : > { %v2128_v40 = vcombine.high %v804_v37, %v808_v38  ;;  %v2127_v47 = vcombine.low %v804_v37, %v808_v38  ;;  %1188 = vmatpush1.bf16.msra.mxu1 %v2125_v46  ;;  %v790_v37 = vld [vmem:[%s3093_s9 + $0x158] sm:$0xff] }
 0x10b   : > { %v638_v50 = vadd.f32 %v2060_v44, %v629_v49  ;;  %v2073_v44 = vcombine.low %v749_v39, %v753_v41  ;;  %v2076_v49 = vcombine.high %v750_v42, %v754_v43  ;;  %1259 = vmatprep.subr.bf16.mxu1 %v2074_v48  ;;  %v794_v38 = vld [vmem:[%s3093_s9 + $0x178] sm:$0xff]  ;;  %v2105_v39 = vcombine.low %v781_v25, %v785_v29  ;;  %v797_v43 = vld [vmem:[%s3093_s9 + $0x190] sm:$0xff] }
 0x10c   : > { %v2116_v42 = vcombine.high %v790_v37, %v794_v38  ;;  %v802_v46 = vld [vmem:[%s3093_s9 + $0x1b8] sm:$0xff]  ;;  %v2115_v48 = vcombine.low %v790_v37, %v794_v38 }
 0x10d   : > { %2234 = vtanh.f32 %v638_v50  ;;  %v2061_v50 = vld [vmem:[#allocation6] ss:$0 sm:$0xff] }
 0x113   : > { %v2233_v53 = vpop.eup %2232 }
 0x117   : > { %v2235_v54 = vpop.eup %2234 }
 0x118   : > { %v641_v55 = vpack.c.bf16 %v2235_v54, %v2233_v53 }
 0x11a   : > { %2150 = vmatmul.mubr.msk.bf16.vlgmr.msra.gmra.mrb[0].mxu0 %vm681_vm1, %v641_v55  ;;  %v2068_v55 = vld [vmem:[%s3092_s8] ss:$0 sm:$0xff] }
 0x11b   : > { %1217 = vmatpush1.bf16.msra.mxu0 %v2071_v17  ;;  %1248 = vmatprep.mubr.bf16.mxu0 %v2393_v1  ;;  %v788_v17 = vld [vmem:[%s3093_s9 + $0x148] sm:$0xff] }
 0x11c   : > { %1218 = vmatprep.subr.bf16.mxu0 %v2080_v56  ;;  %v2111_v20 = vcombine.low %v788_v17, %v792_v19  ;;  %v2112_v21 = vcombine.high %v788_v17, %v792_v19  ;;  %v773_v17 = vld [vmem:[%s3093_s9 + $0xd0] sm:$0xff]  ;;  %v774_v19 = vld [vmem:[%s3093_s9 + $0xd8] sm:$0xff] }
 0x11d   : > { %v2098_v23 = vcombine.high %v773_v17, %v777_v18  ;;  %v2097_v31 = vcombine.low %v773_v17, %v777_v18 }
 0x11f   : > { %1219 = vmatpush1.bf16.msra.mxu0 %v2079_v59 }
 0x120   : > { %1220 = vmatprep.subr.bf16.mxu0 %v2088_v60 }
 0x123   : > { %1221 = vmatpush1.bf16.msra.mxu0 %v2087_v61 }
 0x124   : > { %1222 = vmatprep.subr.bf16.mxu0 %v2096_v5 }
 0x127   : > { %1223 = vmatpush1.bf16.msra.mxu0 %v2095_v4 }
 0x128   : > { %1224 = vmatprep.subr.bf16.mxu0 %v2104_v13  ;;  %v2081_v13 = vcombine.low %v757_v63, %v761_v0  ;;  %v823_v63 = vsub.s32 2, %v2660_v26  ;;  %v811_v0 = vld [vmem:[#allocation7] sm:$0xff] }
 0x12b   : > { %1225 = vmatpush1.bf16.msra.mxu0 %v2103_v12  ;;  %v770_v12 = vld [vmem:[%s3093_s9 + $0xb8] sm:$0xff] }
 0x12c   : > { %1226 = vmatprep.subr.bf16.mxu0 %v2112_v21  ;;  %v2092_v16 = vcombine.high %v766_v11, %v770_v12  ;;  %v2089_v21 = vcombine.low %v765_v9, %v769_v10  ;;  %v2091_v22 = vcombine.low %v766_v11, %v770_v12  ;;  %v820_v9 = vrot.slane %v811_v0, %v607_v27 }
 0x12d   : > { %v835_v10 = vsub.s32 5, %v2660_v26  ;;  %v843_v11 = vsub.s32 7, %v2660_v26 }
 0x12f   : > { %1227 = vmatpush1.bf16.msra.mxu0 %v2111_v20  ;;  %v778_v20 = vld [vmem:[%s3093_s9 + $0xf8] sm:$0xff] }
 0x130   : > { %1228 = vmatprep.subr.bf16.mxu0 %v2120_v35  ;;  %v2100_v24 = vcombine.high %v774_v19, %v778_v20  ;;  %v2099_v32 = vcombine.low %v774_v19, %v778_v20  ;;  %v789_v35 = vld [vmem:[%s3093_s9 + $0x150] sm:$0xff] }
 0x131   : > { %v2114_v41 = vcombine.high %v789_v35, %v793_v36 }
 0x133   : > { %1229 = vmatpush1.bf16.msra.mxu0 %v2119_v34 }
 0x134   : > { %1230 = vmatprep.subr.bf16.mxu0 %v2128_v40 }
 0x137   : > { %1231 = vmatpush1.bf16.msra.mxu0 %v2127_v47  ;;  %v2113_v47 = vcombine.low %v789_v35, %v793_v36 }
 0x138   : > { %1302 = vmatprep.subr.bf16.mxu0 %v2076_v49 }
 0x1ed   : > { %v719_v51 = vpop.f32.mrb[0].mxu0 }
 0x1ee   : > { %v720_v53 = vadd.f32 %v2061_v50, %v719_v51  ;;  %v2151_v54 = vpop.f32.mrb[1].mxu0  ;;  %v805_v51 = vld [vmem:[%s3093_s9 + $0x1d0] sm:$0xff] }
 0x1ef   : > { %v722_v56 = vpop.f32.mrb[2].mxu0  ;;  %v810_v54 = vld [vmem:[%s3093_s9 + $0x1f8] sm:$0xff] }
 0x1f0   : > { %v733_v57 = vmul.f32 %v2067_v52, %v720_v53  ;;  %v723_v58 = vadd.f32 %v2061_v50, %v722_v56  ;;  %v2152_v59 = vpop.f32.mrb[3].mxu0  ;;  %v806_v53 = vld [vmem:[%s3093_s9 + $0x1d8] sm:$0xff] }
 0x1f2   : > { %v742_v60 = vadd.f32 %v2068_v55, %v733_v57  ;;  %v734_v61 = vmul.f32 %v2067_v52, %v723_v58  ;;  %v809_v52 = vld [vmem:[%s3093_s9 + $0x1f0] sm:$0xff]  ;;  %v2132_v58 = vcombine.high %v806_v53, %v810_v54 }
 0x1f3   : > { %v2130_v57 = vcombine.high %v805_v51, %v809_v52  ;;  %v2129_v59 = vcombine.low %v805_v51, %v809_v52 }
 0x1f4   : > { %v743_v62 = vadd.f32 %v2068_v55, %v734_v61  ;;  %2236 = vtanh.f32 %v742_v60  ;;  %v2131_v60 = vcombine.low %v806_v53, %v810_v54  ;;  %v2396_v61 = vmov 1966171168  }
 0x1f6   : > { %2238 = vtanh.f32 %v743_v62  ;;  %v1423_v62 = vunpack.c.l.s4 %v2396_v61 }
 0x1f8   : > { %v1424_v3 = vunpack.c.0.s8 %v1423_v62 }
 0x1fa   : > { %v2868_v12 = vsub.s32 %v1424_v3, %v2660_v26 }
 0x1fe   : > { %v2237_v4 = vpop.eup %2236 }
 0x200   : > { %v2239_v5 = vpop.eup %2238 }
 0x201   : > { %v2777_v6 = vpack.c.bf16 %v2239_v5, %v2237_v4  ;;  %v816_v4 = vrot.slane %v811_v0, %v593_v28  ;;  %v824_v5 = vrot.slane %v811_v0, %v823_v63 }
 0x203   : > { %1206 = vmatmul.mubr.bf16.vlgmr.msra.gmra.mrb[0].mxu1 %v2777_v6  ;;  %1249 = vmatmul.mubr.bf16.vlgmr.msra.gmra.mrb[4].mxu0 %v2777_v6 }
 0x204   : > { %1260 = vmatpush1.bf16.msra.mxu1 %v2073_v44  ;;  %1303 = vmatpush1.bf16.msra.mxu0 %v2075_v45  ;;  %v801_v44 = vld [vmem:[%s3093_s9 + $0x1b0] sm:$0xff]  ;;  %v798_v45 = vld [vmem:[%s3093_s9 + $0x198] sm:$0xff] }
 0x205   : > { %1261 = vmatprep.subr.bf16.mxu1 %v2082_v7  ;;  %1304 = vmatprep.subr.bf16.mxu0 %v2084_v8  ;;  %v2122_v49 = vcombine.high %v797_v43, %v801_v44  ;;  %v2124_v50 = vcombine.high %v798_v45, %v802_v46  ;;  %v2121_v55 = vcombine.low %v797_v43, %v801_v44  ;;  %v831_v7 = vsub.s32 4, %v2660_v26 }
 0x206   : > { %1291 = vmatprep.mubr.bf16.mxu1 %v2393_v1  ;;  %1334 = vmatprep.mubr.bf16.mxu0 %v2393_v1  ;;  %v782_v1 = vld [vmem:[%s3093_s9 + $0x118] sm:$0xff]  ;;  %v2123_v56 = vcombine.low %v798_v45, %v802_v46  ;;  %v839_v8 = vsub.s32 6, %v2660_v26  ;;  %v2880_v26 = vrot.slane %v811_v0, %v843_v11 }
 0x207   : > { %v2108_v34 = vcombine.high %v782_v1, %v786_v30  ;;  %v2107_v40 = vcombine.low %v782_v1, %v786_v30  ;;  %v2870_v18 = vrot.slane %v811_v0, %v831_v7 }
 0x208   : > { %1262 = vmatpush1.bf16.msra.mxu1 %v2081_v13  ;;  %1305 = vmatpush1.bf16.msra.mxu0 %v2083_v14  ;;  %v2872_v19 = vrot.slane %v811_v0, %v839_v8 }
 0x209   : > { %1263 = vmatprep.subr.bf16.mxu1 %v2090_v15  ;;  %1306 = vmatprep.subr.bf16.mxu0 %v2092_v16 }
 0x20c   : > { %1264 = vmatpush1.bf16.msra.mxu1 %v2089_v21  ;;  %1307 = vmatpush1.bf16.msra.mxu0 %v2091_v22 }
 0x20d   : > { %1265 = vmatprep.subr.bf16.mxu1 %v2098_v23  ;;  %1308 = vmatprep.subr.bf16.mxu0 %v2100_v24  ;;  %v2878_v23 = vrot.slane %v811_v0, %v835_v10 }
 0x210   : > { %1266 = vmatpush1.bf16.msra.mxu1 %v2097_v31  ;;  %1309 = vmatpush1.bf16.msra.mxu0 %v2099_v32 }
 0x211   : > { %1267 = vmatprep.subr.bf16.mxu1 %v2106_v33  ;;  %1310 = vmatprep.subr.bf16.mxu0 %v2108_v34 }
 0x214   : > { %1268 = vmatpush1.bf16.msra.mxu1 %v2105_v39  ;;  %1311 = vmatpush1.bf16.msra.mxu0 %v2107_v40 }
 0x215   : > { %1269 = vmatprep.subr.bf16.mxu1 %v2114_v41  ;;  %1312 = vmatprep.subr.bf16.mxu0 %v2116_v42 }
 0x218   : > { %1270 = vmatpush1.bf16.msra.mxu1 %v2113_v47  ;;  %1313 = vmatpush1.bf16.msra.mxu0 %v2115_v48 }
 0x219   : > { %1271 = vmatprep.subr.bf16.mxu1 %v2122_v49  ;;  %1314 = vmatprep.subr.bf16.mxu0 %v2124_v50 }
 0x21c   : > { %1272 = vmatpush1.bf16.msra.mxu1 %v2121_v55  ;;  %1315 = vmatpush1.bf16.msra.mxu0 %v2123_v56 }
 0x21d   : > { %1273 = vmatprep.subr.bf16.mxu1 %v2130_v57  ;;  %1316 = vmatprep.subr.bf16.mxu0 %v2132_v58 }
 0x220   : > { %1274 = vmatpush1.bf16.msra.mxu1 %v2129_v59  ;;  %1317 = vmatpush1.bf16.msra.mxu0 %v2131_v60 }
 0x223   : > { %1292 = vmatmul.mubr.bf16.vlgmr.msra.gmra.mrb[4].mxu1 %v2777_v6  ;;  %1335 = vmatmul.mubr.bf16.vlgmr.msra.gmra.mrb[8].mxu0 %v2777_v6  ;;  %v828_v6 = vrot.slane %v811_v0, %v827_v2 }
 0x2d6   : > { %v1207_v13 = vpop.f32.mrb[0].mxu1  ;;  %v1250_v14 = vpop.f32.mrb[4].mxu0 }
 0x2d7   : > { %v1208_v15 = vadd.f32 %v1207_v13, %v816_v4  ;;  %v1251_v28 = vadd.f32 %v1250_v14, %v824_v5  ;;  %v1209_v16 = vpop.f32.mrb[1].mxu1  ;;  %v1252_v17 = vpop.f32.mrb[5].mxu0 }
 0x2d8   : > { %v2874_v20 = vadd.f32 %v1209_v16, %v820_v9  ;;  %v2876_v27 = vadd.f32 %v1252_v17, %v828_v6  ;;  %v1211_v21 = vpop.f32.mrb[2].mxu1  ;;  %v1254_v22 = vpop.f32.mrb[6].mxu0 }
 0x2d9   : > { %v1471_v24 = vmul.f32 %v1208_v15, %v1208_v15  ;;  %v1473_v25 = vmul.f32 %v1251_v28, %v1251_v28  ;;  %v1212_v29 = vadd.f32 %v1211_v21, %v816_v4  ;;  %v1255_v1 = vadd.f32 %v1254_v22, %v824_v5  ;;  %v1213_v30 = vpop.f32.mrb[3].mxu1  ;;  %v1256_v31 = vpop.f32.mrb[7].mxu0 }
 0x2da   : > { %v2884_v32 = vmul.f32 %v2874_v20, %v2874_v20  ;;  %v2888_v33 = vmul.f32 %v2876_v27, %v2876_v27  ;;  %v2890_v34 = vadd.f32 %v1213_v30, %v820_v9  ;;  %v2892_v35 = vadd.f32 %v1256_v31, %v828_v6 }
 0x2db   : > { %v1354_v36 = vadd.f32 %v1212_v29, %v1208_v15  ;;  %v1479_v37 = vmul.f32 %v1212_v29, %v1212_v29  ;;  %v1604_v38 = vmax.f32 %v1208_v15, %v1212_v29  ;;  %v1721_v39 = vmin.f32 %v1208_v15, %v1212_v29 }
 0x2dc   : > { %v1368_v40 = vadd.f32 %v1255_v1, %v1251_v28  ;;  %v1481_v41 = vmul.f32 %v1255_v1, %v1255_v1  ;;  %v1618_v42 = vmax.f32 %v1251_v28, %v1255_v1  ;;  %v1735_v43 = vmin.f32 %v1251_v28, %v1255_v1 }
 0x2dd   : > { %v1355_v44 = vrot.slane %v1354_v36, 4  ;;  %v1487_v45 = vadd.f32 %v1479_v37, %v1471_v24  ;;  %v1605_v46 = vrot.slane %v1604_v38, 4  ;;  %v1722_v47 = vrot.slane %v1721_v39, 4 }
 0x2de   : > { %v1369_v48 = vrot.slane %v1368_v40, 4  ;;  %v1501_v49 = vadd.f32 %v1481_v41, %v1473_v25  ;;  %v1619_v50 = vrot.slane %v1618_v42, 4  ;;  %v1736_v51 = vrot.slane %v1735_v43, 4 }
 0x2df   : > { %v1356_v52 = vadd.f32 %v1355_v44, %v1354_v36  ;;  %v1488_v53 = vrot.slane %v1487_v45, 4  ;;  %v1606_v54 = vmax.f32 %v1604_v38, %v1605_v46  ;;  %v1723_v55 = vmin.f32 %v1721_v39, %v1722_v47 }
 0x2e0   : > { %v1370_v56 = vadd.f32 %v1369_v48, %v1368_v40  ;;  %v1502_v57 = vrot.slane %v1501_v49, 4  ;;  %v1620_v58 = vmax.f32 %v1618_v42, %v1619_v50  ;;  %v1737_v59 = vmin.f32 %v1735_v43, %v1736_v51 }
 0x2e1   : > { %v1357_v60 = vrot.slane %v1356_v52, 2  ;;  %v1489_v61 = vadd.f32 %v1488_v53, %v1487_v45  ;;  %v1607_v62 = vrot.slane %v1606_v54, 2  ;;  %v1724_v63 = vrot.slane %v1723_v55, 2 }
 0x2e2   : > { %v1371_v0 = vrot.slane %v1370_v56, 2  ;;  %v1503_v2 = vadd.f32 %v1502_v57, %v1501_v49  ;;  %v1621_v3 = vrot.slane %v1620_v58, 2  ;;  %v1738_v4 = vrot.slane %v1737_v59, 2 }
 0x2e3   : > { %v1358_v5 = vadd.f32 %v1357_v60, %v1356_v52  ;;  %v1490_v7 = vrot.slane %v1489_v61, 2  ;;  %v1608_v8 = vmax.f32 %v1606_v54, %v1607_v62  ;;  %v1725_v9 = vmin.f32 %v1723_v55, %v1724_v63 }
 0x2e4   : > { %v1372_v6 = vadd.f32 %v1371_v0, %v1370_v56  ;;  %v1504_v10 = vrot.slane %v1503_v2, 2  ;;  %v1622_v11 = vmax.f32 %v1620_v58, %v1621_v3  ;;  %v1739_v13 = vmin.f32 %v1737_v59, %v1738_v4 }
 0x2e5   : > { %v1359_v14 = vrot.slane %v1358_v5, 1  ;;  %v1491_v15 = vadd.f32 %v1490_v7, %v1489_v61  ;;  %v1609_v28 = vrot.slane %v1608_v8, 1  ;;  %v1726_v16 = vrot.slane %v1725_v9, 1 }
 0x2e6   : > { %v1373_v17 = vrot.slane %v1372_v6, 1  ;;  %v1505_v21 = vadd.f32 %v1504_v10, %v1503_v2  ;;  %v1623_v22 = vrot.slane %v1622_v11, 1  ;;  %v1740_v24 = vrot.slane %v1739_v13, 1 }
 0x2e7   : > { %v2894_v25 = vadd.f32 %v1359_v14, %v1358_v5  ;;  %v1492_v29 = vrot.slane %v1491_v15, 1  ;;  %v2896_v1 = vmax.f32 %v1608_v8, %v1609_v28  ;;  %v2898_v30 = vmin.f32 %v1725_v9, %v1726_v16 }
 0x2e8   : > { %v2900_v31 = vadd.f32 %v1373_v17, %v1372_v6  ;;  %v1506_v36 = vrot.slane %v1505_v21, 1  ;;  %v2902_v37 = vmax.f32 %v1622_v11, %v1623_v22  ;;  %v2904_v38 = vmin.f32 %v1739_v13, %v1740_v24 }
 0x2e9   : > { %v2906_v39 = vadd.f32 %v1492_v29, %v1491_v15  ;;  %v1361_v40 = vadd.f32 %v2890_v34, %v2874_v20  ;;  %v1480_v41 = vmul.f32 %v2890_v34, %v2890_v34  ;;  %v1611_v42 = vmax.f32 %v2874_v20, %v2890_v34 }
 0x2ea   : > { %v2914_v43 = vadd.f32 %v1506_v36, %v1505_v21  ;;  %v1728_v44 = vmin.f32 %v2874_v20, %v2890_v34  ;;  %v1375_v45 = vadd.f32 %v2892_v35, %v2876_v27  ;;  %v1482_v46 = vmul.f32 %v2892_v35, %v2892_v35 }
 0x2eb   : > { %v1362_v47 = vrot.slane %v1361_v40, 4  ;;  %v1494_v48 = vadd.f32 %v1480_v41, %v2884_v32  ;;  %v1612_v49 = vrot.slane %v1611_v42, 4  ;;  %v1625_v50 = vmax.f32 %v2876_v27, %v2892_v35 }
 0x2ec   : > { %v1729_v51 = vrot.slane %v1728_v44, 4  ;;  %v1376_v52 = vrot.slane %v1375_v45, 4  ;;  %v1508_v53 = vadd.f32 %v1482_v46, %v2888_v33  ;;  %v1742_v20 = vmin.f32 %v2876_v27, %v2892_v35 }
 0x2ed   : > { %v1363_v34 = vadd.f32 %v1362_v47, %v1361_v40  ;;  %v1495_v54 = vrot.slane %v1494_v48, 4  ;;  %v1613_v55 = vmax.f32 %v1611_v42, %v1612_v49  ;;  %v1626_v56 = vrot.slane %v1625_v50, 4 }
 0x2ee   : > { %v1730_v57 = vmin.f32 %v1728_v44, %v1729_v51  ;;  %v1377_v58 = vadd.f32 %v1376_v52, %v1375_v45  ;;  %v1509_v59 = vrot.slane %v1508_v53, 4  ;;  %v1743_v60 = vrot.slane %v1742_v20, 4 }
 0x2ef   : > { %v1364_v32 = vrot.slane %v1363_v34, 2  ;;  %v1496_v61 = vadd.f32 %v1495_v54, %v1494_v48  ;;  %v1614_v62 = vrot.slane %v1613_v55, 2  ;;  %v1627_v63 = vmax.f32 %v1625_v50, %v1626_v56 }
 0x2f0   : > { %v1731_v0 = vrot.slane %v1730_v57, 2  ;;  %v1378_v2 = vrot.slane %v1377_v58, 2  ;;  %v1510_v3 = vadd.f32 %v1509_v59, %v1508_v53  ;;  %v1744_v4 = vmin.f32 %v1742_v20, %v1743_v60 }
 0x2f1   : > { %v1365_v33 = vadd.f32 %v1364_v32, %v1363_v34  ;;  %v1497_v5 = vrot.slane %v1496_v61, 2  ;;  %v1615_v7 = vmax.f32 %v1613_v55, %v1614_v62  ;;  %v1628_v27 = vrot.slane %v1627_v63, 2 }
 0x2f2   : > { %v1732_v35 = vmin.f32 %v1730_v57, %v1731_v0  ;;  %v1379_v8 = vadd.f32 %v1378_v2, %v1377_v58  ;;  %v1511_v9 = vrot.slane %v1510_v3, 2  ;;  %v1745_v6 = vrot.slane %v1744_v4, 2 }
 0x2f3   : > { %v1366_v10 = vrot.slane %v1365_v33, 1  ;;  %v1498_v11 = vadd.f32 %v1497_v5, %v1496_v61  ;;  %v1616_v13 = vrot.slane %v1615_v7, 1  ;;  %v1629_v14 = vmax.f32 %v1627_v63, %v1628_v27 }
 0x2f4   : > { %v1733_v15 = vrot.slane %v1732_v35, 1  ;;  %v1380_v28 = vrot.slane %v1379_v8, 1  ;;  %v1512_v16 = vadd.f32 %v1511_v9, %v1510_v3  ;;  %v1746_v17 = vmin.f32 %v1744_v4, %v1745_v6 }
 0x2f5   : > { %v1367_v21 = vadd.f32 %v1366_v10, %v1365_v33  ;;  %v1499_v22 = vrot.slane %v1498_v11, 1  ;;  %v1617_v24 = vmax.f32 %v1615_v7, %v1616_v13  ;;  %v1630_v29 = vrot.slane %v1629_v14, 1 }
 0x2f6   : > { %v1734_v36 = vmin.f32 %v1732_v35, %v1733_v15  ;;  %v1381_v40 = vadd.f32 %v1380_v28, %v1379_v8  ;;  %v1513_v41 = vrot.slane %v1512_v16, 1  ;;  %v1747_v42 = vrot.slane %v1746_v17, 1  ;;  %v1293_v44 = vpop.f32.mrb[4].mxu1  ;;  %v1336_v45 = vpop.f32.mrb[8].mxu0 }
 0x2f7   : > { %v1418_v46 = vcombine.low %v2894_v25, %v1367_v21  ;;  %v1500_v47 = vadd.f32 %v1499_v22, %v1498_v11  ;;  %v1668_v48 = vcombine.low %v2896_v1, %v1617_v24  ;;  %v1631_v49 = vmax.f32 %v1629_v14, %v1630_v29  ;;  %v1295_v50 = vpop.f32.mrb[5].mxu1  ;;  %v1338_v51 = vpop.f32.mrb[9].mxu0 }
 0x2f8   : > { %v1785_v52 = vcombine.low %v2898_v30, %v1734_v36  ;;  %v1419_v53 = vcombine.low %v2900_v31, %v1381_v40  ;;  %v1514_v20 = vadd.f32 %v1513_v41, %v1512_v16  ;;  %v1748_v34 = vmin.f32 %v1746_v17, %v1747_v42  ;;  %v1297_v54 = vpop.f32.mrb[6].mxu1  ;;  %v1340_v55 = vpop.f32.mrb[10].mxu0 }
 0x2f9   : > { %v2933_v56 = vrot.slane %v1418_v46, %v2868_v12  ;;  %v1551_v57 = vcombine.low %v2906_v39, %v1500_v47  ;;  %v2937_v25 = vrot.slane %v1668_v48, %v2868_v12  ;;  %v1669_v1 = vcombine.low %v2902_v37, %v1631_v49  ;;  %v1299_v58 = vpop.f32.mrb[7].mxu1  ;;  %v1342_v59 = vpop.f32.mrb[11].mxu0 }
 0x2fa   : > { %v2941_v30 = vrot.slane %v1785_v52, %v2868_v12  ;;  %v2944_v31 = vrot.slane %v1419_v53, %v2868_v12  ;;  %v1552_v60 = vcombine.low %v2914_v43, %v1514_v20  ;;  %v1786_v32 = vcombine.low %v2904_v38, %v1748_v34 }
 0x2fb   : > { %v2949_v61 = vrot.slane %v1551_v57, %v2868_v12  ;;  %v2952_v39 = vrot.slane %v1669_v1, %v2868_v12  ;;  %v1294_v37 = vadd.f32 %v1293_v44, %v2870_v18  ;;  %v1337_v62 = vadd.f32 %v1336_v45, %v2872_v19 }
 0x2fc   : > { %v1450_v63 = vcombine.low %v2933_v56, %v2944_v31  ;;  %v2959_v0 = vrot.slane %v1552_v60, %v2868_v12  ;;  %v2962_v43 = vrot.slane %v1786_v32, %v2868_v12  ;;  %v2965_v38 = vadd.f32 %v1295_v50, %v2878_v23 }
 0x2fd   : > { %v1700_v2 = vcombine.low %v2937_v25, %v2952_v39  ;;  %v2970_v3 = vadd.f32 %v1338_v51, %v2880_v26  ;;  %v1475_v5 = vmul.f32 %v1294_v37, %v1294_v37  ;;  %v1477_v7 = vmul.f32 %v1337_v62, %v1337_v62 }
 0x2fe   : > { %v1583_v4 = vcombine.low %v2949_v61, %v2959_v0  ;;  %v1817_v33 = vcombine.low %v2941_v30, %v2962_v43  ;;  %v1298_v27 = vadd.f32 %v1297_v54, %v2870_v18  ;;  %v1341_v35 = vadd.f32 %v1340_v55, %v2872_v19 }
 0x2ff   : > { %v2980_v8 = vmul.f32 %v2965_v38, %v2965_v38  ;;  %v2984_v9 = vmul.f32 %v2970_v3, %v2970_v3  ;;  %v2987_v6 = vadd.f32 %v1299_v58, %v2878_v23  ;;  %v2990_v10 = vadd.f32 %v1342_v59, %v2880_v26 }
 0x300   : > { %v1382_v11 = vadd.f32 %v1298_v27, %v1294_v37  ;;  %v1483_v13 = vmul.f32 %v1298_v27, %v1298_v27  ;;  %v1632_v14 = vmax.f32 %v1294_v37, %v1298_v27  ;;  %v1749_v18 = vmin.f32 %v1294_v37, %v1298_v27 }
 0x301   : > { %v1396_v15 = vadd.f32 %v1341_v35, %v1337_v62  ;;  %v1485_v19 = vmul.f32 %v1341_v35, %v1341_v35  ;;  %v1646_v28 = vmax.f32 %v1337_v62, %v1341_v35  ;;  %v1763_v16 = vmin.f32 %v1337_v62, %v1341_v35 }
 0x302   : > { %v1383_v17 = vrot.slane %v1382_v11, 4  ;;  %v1515_v21 = vadd.f32 %v1483_v13, %v1475_v5  ;;  %v1633_v22 = vrot.slane %v1632_v14, 4  ;;  %v1750_v24 = vrot.slane %v1749_v18, 4 }
 0x303   : > { %v1397_v29 = vrot.slane %v1396_v15, 4  ;;  %v1529_v36 = vadd.f32 %v1485_v19, %v1477_v7  ;;  %v1647_v40 = vrot.slane %v1646_v28, 4  ;;  %v1764_v23 = vrot.slane %v1763_v16, 4 }
 0x304   : > { %v1384_v41 = vadd.f32 %v1383_v17, %v1382_v11  ;;  %v1516_v42 = vrot.slane %v1515_v21, 4  ;;  %v1634_v26 = vmax.f32 %v1632_v14, %v1633_v22  ;;  %v1751_v44 = vmin.f32 %v1749_v18, %v1750_v24 }
 0x305   : > { %v1398_v45 = vadd.f32 %v1397_v29, %v1396_v15  ;;  %v1530_v46 = vrot.slane %v1529_v36, 4  ;;  %v1648_v47 = vmax.f32 %v1646_v28, %v1647_v40  ;;  %v1765_v48 = vmin.f32 %v1763_v16, %v1764_v23 }
 0x306   : > { %v1385_v49 = vrot.slane %v1384_v41, 2  ;;  %v1517_v50 = vadd.f32 %v1516_v42, %v1515_v21  ;;  %v1635_v51 = vrot.slane %v1634_v26, 2  ;;  %v1752_v52 = vrot.slane %v1751_v44, 2 }
 0x307   : > { %v1399_v53 = vrot.slane %v1398_v45, 2  ;;  %v1531_v20 = vadd.f32 %v1530_v46, %v1529_v36  ;;  %v1649_v34 = vrot.slane %v1648_v47, 2  ;;  %v1766_v54 = vrot.slane %v1765_v48, 2 }
 0x308   : > { %v1386_v55 = vadd.f32 %v1385_v49, %v1384_v41  ;;  %v1518_v57 = vrot.slane %v1517_v50, 2  ;;  %v1636_v1 = vmax.f32 %v1634_v26, %v1635_v51  ;;  %v1753_v58 = vmin.f32 %v1751_v44, %v1752_v52 }
 0x309   : > { %v1400_v59 = vadd.f32 %v1399_v53, %v1398_v45  ;;  %v1532_v60 = vrot.slane %v1531_v20, 2  ;;  %v1650_v32 = vmax.f32 %v1648_v47, %v1649_v34  ;;  %v1767_v37 = vmin.f32 %v1765_v48, %v1766_v54 }
 0x30a   : > { %v1387_v62 = vrot.slane %v1386_v55, 1  ;;  %v1519_v5 = vadd.f32 %v1518_v57, %v1517_v50  ;;  %v1637_v7 = vrot.slane %v1636_v1, 1  ;;  %v1754_v27 = vrot.slane %v1753_v58, 1 }
 0x30b   : > { %v1401_v35 = vrot.slane %v1400_v59, 1  ;;  %v1533_v11 = vadd.f32 %v1532_v60, %v1531_v20  ;;  %v1651_v13 = vrot.slane %v1650_v32, 1  ;;  %v1768_v14 = vrot.slane %v1767_v37, 1 }
 0x30c   : > { %v2992_v18 = vadd.f32 %v1387_v62, %v1386_v55  ;;  %v1520_v15 = vrot.slane %v1519_v5, 1  ;;  %v2994_v19 = vmax.f32 %v1636_v1, %v1637_v7  ;;  %v2996_v28 = vmin.f32 %v1753_v58, %v1754_v27 }
 0x30d   : > { %v2998_v16 = vadd.f32 %v1401_v35, %v1400_v59  ;;  %v1534_v17 = vrot.slane %v1533_v11, 1  ;;  %v3000_v21 = vmax.f32 %v1650_v32, %v1651_v13  ;;  %v3002_v22 = vmin.f32 %v1767_v37, %v1768_v14 }
 0x30e   : > { %v3004_v24 = vadd.f32 %v1520_v15, %v1519_v5  ;;  %v1389_v29 = vadd.f32 %v2987_v6, %v2965_v38  ;;  %v1484_v36 = vmul.f32 %v2987_v6, %v2987_v6  ;;  %v1639_v40 = vmax.f32 %v2965_v38, %v2987_v6 }
 0x30f   : > { %v3012_v23 = vadd.f32 %v1534_v17, %v1533_v11  ;;  %v1756_v41 = vmin.f32 %v2965_v38, %v2987_v6  ;;  %v1403_v42 = vadd.f32 %v2990_v10, %v2970_v3  ;;  %v1486_v26 = vmul.f32 %v2990_v10, %v2990_v10 }
 0x310   : > { %v1390_v44 = vrot.slane %v1389_v29, 4  ;;  %v1522_v45 = vadd.f32 %v1484_v36, %v2980_v8  ;;  %v1640_v46 = vrot.slane %v1639_v40, 4  ;;  %v1653_v47 = vmax.f32 %v2970_v3, %v2990_v10 }
 0x311   : > { %v1757_v48 = vrot.slane %v1756_v41, 4  ;;  %v1404_v49 = vrot.slane %v1403_v42, 4  ;;  %v1536_v50 = vadd.f32 %v1486_v26, %v2984_v9  ;;  %v1770_v38 = vmin.f32 %v2970_v3, %v2990_v10 }
 0x312   : > { %v1391_v6 = vadd.f32 %v1390_v44, %v1389_v29  ;;  %v1523_v51 = vrot.slane %v1522_v45, 4  ;;  %v1641_v52 = vmax.f32 %v1639_v40, %v1640_v46  ;;  %v1654_v53 = vrot.slane %v1653_v47, 4 }
 0x313   : > { %v1758_v20 = vmin.f32 %v1756_v41, %v1757_v48  ;;  %v1405_v34 = vadd.f32 %v1404_v49, %v1403_v42  ;;  %v1537_v54 = vrot.slane %v1536_v50, 4  ;;  %v1771_v55 = vrot.slane %v1770_v38, 4 }
 0x314   : > { %v1392_v8 = vrot.slane %v1391_v6, 2  ;;  %v1524_v57 = vadd.f32 %v1523_v51, %v1522_v45  ;;  %v1642_v1 = vrot.slane %v1641_v52, 2  ;;  %v1655_v58 = vmax.f32 %v1653_v47, %v1654_v53 }
 0x315   : > { %v1759_v59 = vrot.slane %v1758_v20, 2  ;;  %v1406_v60 = vrot.slane %v1405_v34, 2  ;;  %v1538_v32 = vadd.f32 %v1537_v54, %v1536_v50  ;;  %v1772_v37 = vmin.f32 %v1770_v38, %v1771_v55 }
 0x316   : > { %v1393_v9 = vadd.f32 %v1392_v8, %v1391_v6  ;;  %v1525_v62 = vrot.slane %v1524_v57, 2  ;;  %v1643_v5 = vmax.f32 %v1641_v52, %v1642_v1  ;;  %v1656_v3 = vrot.slane %v1655_v58, 2 }
 0x317   : > { %v1760_v10 = vmin.f32 %v1758_v20, %v1759_v59  ;;  %v1407_v7 = vadd.f32 %v1406_v60, %v1405_v34  ;;  %v1539_v27 = vrot.slane %v1538_v32, 2  ;;  %v1773_v35 = vrot.slane %v1772_v37, 2 }
 0x318   : > { %v1394_v11 = vrot.slane %v1393_v9, 1  ;;  %v1526_v13 = vadd.f32 %v1525_v62, %v1524_v57  ;;  %v1644_v14 = vrot.slane %v1643_v5, 1  ;;  %v1657_v15 = vmax.f32 %v1655_v58, %v1656_v3 }
 0x319   : > { %v1761_v17 = vrot.slane %v1760_v10, 1  ;;  %v1408_v29 = vrot.slane %v1407_v7, 1  ;;  %v1540_v36 = vadd.f32 %v1539_v27, %v1538_v32  ;;  %v1774_v40 = vmin.f32 %v1772_v37, %v1773_v35 }
 0x31a   : > { %v1395_v41 = vadd.f32 %v1394_v11, %v1393_v9  ;;  %v1527_v42 = vrot.slane %v1526_v13, 1  ;;  %v1645_v26 = vmax.f32 %v1643_v5, %v1644_v14  ;;  %v1658_v44 = vrot.slane %v1657_v15, 1 }
 0x31b   : > { %v1762_v45 = vmin.f32 %v1760_v10, %v1761_v17  ;;  %v1409_v46 = vadd.f32 %v1408_v29, %v1407_v7  ;;  %v1541_v47 = vrot.slane %v1540_v36, 1  ;;  %v1775_v48 = vrot.slane %v1774_v40, 1 }
 0x31c   : > { %v1420_v49 = vcombine.low %v2992_v18, %v1395_v41  ;;  %v1528_v50 = vadd.f32 %v1527_v42, %v1526_v13  ;;  %v1670_v38 = vcombine.low %v2994_v19, %v1645_v26  ;;  %v1659_v6 = vmax.f32 %v1657_v15, %v1658_v44 }
 0x31d   : > { %v1787_v51 = vcombine.low %v2996_v28, %v1762_v45  ;;  %v1421_v52 = vcombine.low %v2998_v16, %v1409_v46  ;;  %v1542_v53 = vadd.f32 %v1541_v47, %v1540_v36  ;;  %v1776_v20 = vmin.f32 %v1774_v40, %v1775_v48 }
 0x31e   : > { %v1442_v34 = vrot.slane %v1420_v49, %v2868_v12  ;;  %v1553_v54 = vcombine.low %v3004_v24, %v1528_v50  ;;  %v1692_v55 = vrot.slane %v1670_v38, %v2868_v12  ;;  %v1671_v8 = vcombine.low %v3000_v21, %v1659_v6 }
 0x31f   : > { %v1809_v18 = vrot.slane %v1787_v51, %v2868_v12  ;;  %v1449_v19 = vrot.slane %v1421_v52, %v2868_v12  ;;  %v1554_v57 = vcombine.low %v3012_v23, %v1542_v53  ;;  %v1788_v28 = vcombine.low %v3002_v22, %v1776_v20 }
 0x320   : > { %v1575_v16 = vrot.slane %v1553_v54, %v2868_v12  ;;  %v1699_v1 = vrot.slane %v1671_v8, %v2868_v12  ;;  %v1458_v21 = vrot.slane %v1450_v63, %v2868_v12  ;;  %v1591_v37 = vrot.slane %v1583_v4, %v2868_v12 }
 0x321   : > { %v1451_v58 = vcombine.low %v1442_v34, %v1449_v19  ;;  %v1582_v59 = vrot.slane %v1554_v57, %v2868_v12  ;;  %v1816_v24 = vrot.slane %v1788_v28, %v2868_v12  ;;  %v1708_v9 = vrot.slane %v1700_v2, %v2868_v12 }
 0x322   : > { %v1701_v60 = vcombine.low %v1692_v55, %v1699_v1  ;;  %v1825_v56 = vrot.slane %v1817_v33, %v2868_v12 }
 0x323   : > { %v1465_v23 = vrot.slane %v1451_v58, %v2868_v12  ;;  %v1584_v32 = vcombine.low %v1575_v16, %v1582_v59  ;;  %v1818_v22 = vcombine.low %v1809_v18, %v1816_v24 }
 0x324   : > { %v1715_v62 = vrot.slane %v1701_v60, %v2868_v12 }
 0x325   : > { %v1466_v31 = vcombine.low %v1458_v21, %v1465_v23  ;;  %v1598_v63 = vrot.slane %v1584_v32, %v2868_v12  ;;  %v1832_v5 = vrot.slane %v1818_v22, %v2868_v12 }
 0x326   : > { %v1716_v61 = vcombine.low %v1708_v9, %v1715_v62 }
 0x327   : > { %v1599_v25 = vcombine.low %v1591_v37, %v1598_v63  ;;  %v1833_v39 = vcombine.low %v1825_v56, %v1832_v5  ;;  %1469 = vst [vmem:[%s563_s25] sm:$0xff] %v1466_v31 }
 0x328   : > { %1719 = vst [vmem:[%s571_s30] sm:$0xff] %v1716_v61 }
 0x329   : > { %1602 = vst [vmem:[%s567_s19] sm:$0xff] %v1599_v25  ;;  %1836 = vst [vmem:[%s575_s28] sm:$0xff] %v1833_v39 }
 0x32a PF: > { %s3120_s24 = sld [smem:[#allocation13_spill]]  ;;  %s3121_s29 = sld [smem:[#allocation12_spill]] }
 0x32b   : > { %s3122_s30 = smov %s3124_s21 }
 0x330   : > { %s28_s15 = sadd.s32 1, %s3120_s24  }
 0x331   : > { %p25_p8 = scmp.ge.s32.totalorder %s28_s15, 4  }
 0x333   :  { %27 = sbr.rel (!%p25_p8) target bundleno = 8 (0x8), region = 151 }
 0x33a   :  { %1898 = vsyncpa [#allocation3], 1 }
 0x33b   :  { %1900 = vsyncpa [#allocation3 + $0x1], 1 }
 0x33c   :  { %1901 = vsyncpa [#allocation5], 1 }
 0x33d   :  { %1902 = vsyncpa [#allocation8], 1 }

// kernel: stn3d_forward.7
= control target key start
LH: loop header
LB: loop body
LE: loop exit
PB: predicated region body
PF: predicated region fallthrough
CT: control target
= control target key end

     0   :  { %v46_v37 = vlaneseq  ;;  %v3784_v38 = vmov 1983009808   ;;  %vm2856_vm9 = vcmask 66560   ;;  %s5072_s4 = inlined_call_operand.vmem [shape: bf16[1024,512], index: 4, kind: input, shape index: {}]   ;;  %s5073_s2 = inlined_call_operand.vmem [shape: f32[1,1024], index: 2, kind: input, shape index: {}]   ;;  %s5074_s0 = inlined_call_operand.vmem [shape: f32[2,1024], index: 0, kind: input, shape index: {}]   ;;  %s5075_s1 = inlined_call_operand.vmem [shape: f32[2,1024], index: 1, kind: input, shape index: {}]   ;;  %s5076_s3 = inlined_call_operand.vmem [shape: f32[1,1024], index: 3, kind: input, shape index: {}]   ;;  %s5077_s6 = inlined_call_operand.vmem [shape: bf16[512,256], index: 6, kind: input, shape index: {}]   ;;  %s5078_s5 = inlined_call_operand.vmem [shape: f32[1,512], index: 5, kind: input, shape index: {}]   ;;  %s5079_s8 = inlined_call_operand.vmem [shape: bf16[256,9], index: 8, kind: input, shape index: {}]   ;;  %s5080_s7 = inlined_call_operand.vmem [shape: f32[1,256], index: 7, kind: input, shape index: {}]   ;;  %s5081_s9 = inlined_call_operand.vmem [shape: f32[1,9], index: 9, kind: input, shape index: {}]   ;;  %s5082_s10 = inlined_call_operand.vmem [shape: f32[1,9], index: 10, kind: input, shape index: {}]   ;;  %s5083_s11 = inlined_call_operand.vmem [shape: f32[2,9], index: 11, kind: output, shape index: {}]  }
   0x1   :  { %v3256_v0 = vld [vmem:[%s5072_s4 + $0x4] ss:$16 sps:$4 sm:$0xff]   ;;  %v3260_v2 = vld [vmem:[%s5072_s4] ss:$16 sps:$4 sm:$0xff]   ;;  %v90_v39 = vunpack.c.l.s4 %v3784_v38  ;;  %v4022_v61 = vld [vmem:[%s5074_s0 + $0x8] sm:$0xff] }
   0x2   :  { %v3258_v1 = vld [vmem:[%s5072_s4 + $0x204] ss:$16 sps:$4 sm:$0xff]   ;;  %1855 = vmatprep.subr.bf16.mxu1 %v3256_v0  ;;  %v3261_v3 = vld [vmem:[%s5072_s4 + $0x200] ss:$16 sps:$4 sm:$0xff]   ;;  %v3969_v44 = vshrl.u32 %v46_v37, 7 }
   0x3   :  { %1896 = vmatprep.subr.bf16.mxu0 %v3258_v1  ;;  %v3262_v4 = vld [vmem:[%s5072_s4 + $0x24] ss:$16 sps:$4 sm:$0xff]   ;;  %1856 = vmatpush1.bf16.msra.mxu1 %v3260_v2  ;;  %v3266_v6 = vld [vmem:[%s5072_s4 + $0x20] ss:$16 sps:$4 sm:$0xff]   ;;  %v91_v45 = vunpack.c.0.s8 %v90_v39  ;;  %v4036_v2 = vld [vmem:[%s5075_s1 + $0x8] sm:$0xff] }
   0x4   :  { %1897 = vmatpush1.bf16.msra.mxu0 %v3261_v3  ;;  %v3264_v5 = vld [vmem:[%s5072_s4 + $0x224] ss:$16 sps:$4 sm:$0xff]   ;;  %1857 = vmatprep.subr.bf16.mxu1 %v3262_v4  ;;  %v3267_v7 = vld [vmem:[%s5072_s4 + $0x220] ss:$16 sps:$4 sm:$0xff]   ;;  %v3984_v50 = vsub.s32 1, %v3969_v44  ;;  %v3990_v52 = vsub.s32 0, %v3969_v44 }
   0x5   :  { %1898 = vmatprep.subr.bf16.mxu0 %v3264_v5  ;;  %v3268_v8 = vld [vmem:[%s5072_s4 + $0x44] ss:$16 sps:$4 sm:$0xff]   ;;  %v3272_v10 = vld [vmem:[%s5072_s4 + $0x40] ss:$16 sps:$4 sm:$0xff]   ;;  %v3987_v51 = vsub.s32 %v91_v45, %v3969_v44  ;;  %v3996_v54 = vsub.s32 3, %v3969_v44  ;;  %v3999_v55 = vsub.s32 2, %v3969_v44 }
   0x6   :  { %v3270_v9 = vld [vmem:[%s5072_s4 + $0x244] ss:$16 sps:$4 sm:$0xff]   ;;  %v3273_v11 = vld [vmem:[%s5072_s4 + $0x240] ss:$16 sps:$4 sm:$0xff]   ;;  %v4013_v59 = vsub.s32 5, %v3969_v44  ;;  %v3785_v3 = vmov 0  }
   0x7   :  { %1858 = vmatpush1.bf16.msra.mxu1 %v3266_v6  ;;  %v3274_v12 = vld [vmem:[%s5072_s4 + $0x64] ss:$16 sps:$4 sm:$0xff]   ;;  %v3278_v14 = vld [vmem:[%s5072_s4 + $0x60] ss:$16 sps:$4 sm:$0xff]   ;;  %v105_v6 = vcombine.high %v4022_v61, %v4022_v61 }
   0x8   :  { %1899 = vmatpush1.bf16.msra.mxu0 %v3267_v7  ;;  %1859 = vmatprep.subr.bf16.mxu1 %v3268_v8  ;;  %v3276_v13 = vld [vmem:[%s5072_s4 + $0x264] ss:$16 sps:$4 sm:$0xff]   ;;  %v3279_v15 = vld [vmem:[%s5072_s4 + $0x260] ss:$16 sps:$4 sm:$0xff]  }
   0x9   :  { %1900 = vmatprep.subr.bf16.mxu0 %v3270_v9  ;;  %v3280_v16 = vld [vmem:[%s5072_s4 + $0x84] ss:$16 sps:$4 sm:$0xff]   ;;  %v3284_v18 = vld [vmem:[%s5072_s4 + $0x80] ss:$16 sps:$4 sm:$0xff]  }
   0xa   :  { %v3282_v17 = vld [vmem:[%s5072_s4 + $0x284] ss:$16 sps:$4 sm:$0xff]   ;;  %v3285_v19 = vld [vmem:[%s5072_s4 + $0x280] ss:$16 sps:$4 sm:$0xff]  }
   0xb   :  { %1860 = vmatpush1.bf16.msra.mxu1 %v3272_v10  ;;  %v3286_v20 = vld [vmem:[%s5072_s4 + $0xa4] ss:$16 sps:$4 sm:$0xff]   ;;  %v3290_v22 = vld [vmem:[%s5072_s4 + $0xa0] ss:$16 sps:$4 sm:$0xff]  }
   0xc   :  { %1901 = vmatpush1.bf16.msra.mxu0 %v3273_v11  ;;  %1861 = vmatprep.subr.bf16.mxu1 %v3274_v12  ;;  %v3288_v21 = vld [vmem:[%s5072_s4 + $0x2a4] ss:$16 sps:$4 sm:$0xff]   ;;  %v3291_v23 = vld [vmem:[%s5072_s4 + $0x2a0] ss:$16 sps:$4 sm:$0xff]   ;;  %v149_v12 = vcombine.high %v4036_v2, %v4036_v2 }
   0xd   :  { %1902 = vmatprep.subr.bf16.mxu0 %v3276_v13  ;;  %v3292_v24 = vld [vmem:[%s5072_s4 + $0xc4] ss:$16 sps:$4 sm:$0xff]   ;;  %v3296_v26 = vld [vmem:[%s5072_s4 + $0xc0] ss:$16 sps:$4 sm:$0xff]  }
   0xe   :  { %v3294_v25 = vld [vmem:[%s5072_s4 + $0x2c4] ss:$16 sps:$4 sm:$0xff]   ;;  %v3297_v27 = vld [vmem:[%s5072_s4 + $0x2c0] ss:$16 sps:$4 sm:$0xff]  }
   0xf   :  { %1862 = vmatpush1.bf16.msra.mxu1 %v3278_v14  ;;  %v3298_v28 = vld [vmem:[%s5072_s4 + $0xe4] ss:$16 sps:$4 sm:$0xff]   ;;  %v3302_v30 = vld [vmem:[%s5072_s4 + $0xe0] ss:$16 sps:$4 sm:$0xff]   ;;  %v4062_v14 = vsub.s32 4, %v3969_v44 }
  0x10   :  { %1903 = vmatpush1.bf16.msra.mxu0 %v3279_v15  ;;  %1863 = vmatprep.subr.bf16.mxu1 %v3280_v16  ;;  %v3300_v29 = vld [vmem:[%s5072_s4 + $0x2e4] ss:$16 sps:$4 sm:$0xff]   ;;  %v3303_v31 = vld [vmem:[%s5072_s4 + $0x2e0] ss:$16 sps:$4 sm:$0xff]  }
  0x11   :  { %1904 = vmatprep.subr.bf16.mxu0 %v3282_v17  ;;  %v3304_v32 = vld [vmem:[%s5072_s4 + $0x104] ss:$16 sps:$4 sm:$0xff]   ;;  %v3308_v34 = vld [vmem:[%s5072_s4 + $0x100] ss:$16 sps:$4 sm:$0xff]  }
  0x12   :  { %v3306_v33 = vld [vmem:[%s5072_s4 + $0x304] ss:$16 sps:$4 sm:$0xff]   ;;  %v3309_v35 = vld [vmem:[%s5072_s4 + $0x300] ss:$16 sps:$4 sm:$0xff]  }
  0x13   :  { %1864 = vmatpush1.bf16.msra.mxu1 %v3284_v18  ;;  %v3310_v36 = vld [vmem:[%s5072_s4 + $0x124] ss:$16 sps:$4 sm:$0xff]   ;;  %v3314_v41 = vld [vmem:[%s5072_s4 + $0x120] ss:$16 sps:$4 sm:$0xff]  }
  0x14   :  { %1905 = vmatpush1.bf16.msra.mxu0 %v3285_v19  ;;  %1865 = vmatprep.subr.bf16.mxu1 %v3286_v20  ;;  %v3312_v40 = vld [vmem:[%s5072_s4 + $0x324] ss:$16 sps:$4 sm:$0xff]   ;;  %v3315_v42 = vld [vmem:[%s5072_s4 + $0x320] ss:$16 sps:$4 sm:$0xff]  }
  0x15   :  { %1906 = vmatprep.subr.bf16.mxu0 %v3288_v21  ;;  %v3316_v43 = vld [vmem:[%s5072_s4 + $0x144] ss:$16 sps:$4 sm:$0xff]   ;;  %v3320_v47 = vld [vmem:[%s5072_s4 + $0x140] ss:$16 sps:$4 sm:$0xff]  }
  0x16   :  { %v3318_v46 = vld [vmem:[%s5072_s4 + $0x344] ss:$16 sps:$4 sm:$0xff]   ;;  %v3321_v48 = vld [vmem:[%s5072_s4 + $0x340] ss:$16 sps:$4 sm:$0xff]  }
  0x17   :  { %1866 = vmatpush1.bf16.msra.mxu1 %v3290_v22  ;;  %v3322_v49 = vld [vmem:[%s5072_s4 + $0x164] ss:$16 sps:$4 sm:$0xff]   ;;  %v3326_v56 = vld [vmem:[%s5072_s4 + $0x160] ss:$16 sps:$4 sm:$0xff]  }
  0x18   :  { %1907 = vmatpush1.bf16.msra.mxu0 %v3291_v23  ;;  %1867 = vmatprep.subr.bf16.mxu1 %v3292_v24  ;;  %v3324_v53 = vld [vmem:[%s5072_s4 + $0x364] ss:$16 sps:$4 sm:$0xff]   ;;  %v3327_v57 = vld [vmem:[%s5072_s4 + $0x360] ss:$16 sps:$4 sm:$0xff]  }
  0x19   :  { %1908 = vmatprep.subr.bf16.mxu0 %v3294_v25  ;;  %v4010_v58 = vld [vmem:[%s5073_s2] sm:$0xff] }
  0x1a   :  { %vm40_vm0 = vcmp.ge.f32.partialorder %v4010_v58, 0.0  ;;  %v41_v60 = vld [vmem:[%s5074_s0] sm:$0xff]  ;;  %v190_v63 = vrot.slane %v4010_v58, %v3984_v50  ;;  %v186_v0 = vrot.slane %v4010_v58, %v3990_v52  ;;  %v198_v1 = vrot.slane %v4010_v58, %v3996_v54 }
  0x1b   :  { %1868 = vmatpush1.bf16.msra.mxu1 %v3296_v26  ;;  %v43_v62 = vld [vmem:[%s5075_s1] sm:$0xff]  ;;  %v4038_v4 = vsel %vm40_vm0, 1, %v3785_v3  ;;  %v95_v5 = vrot.slane %v41_v60, %v3987_v51  ;;  %v88_v20 = vcombine.high %v41_v60, %v41_v60 }
  0x1c   :  { %1909 = vmatpush1.bf16.msra.mxu0 %v3297_v27  ;;  %1869 = vmatprep.subr.bf16.mxu1 %v3298_v28  ;;  %v139_v7 = vrot.slane %v43_v62, %v3987_v51  ;;  %v4047_v8 = vld [vmem:[%s5076_s3] sm:$0xff]  ;;  %v53_v11 = vrot.slane %v4038_v4, %v3984_v50  ;;  %v49_v17 = vrot.slane %v4038_v4, %v3990_v52 }
  0x1d   :  { %1910 = vmatprep.subr.bf16.mxu0 %v3300_v29  ;;  %v3328_v9 = vld [vmem:[%s5072_s4 + $0x184] ss:$16 sps:$4 sm:$0xff]   ;;  %v240_v13 = vrot.slane %v4047_v8, %v3984_v50  ;;  %v103_v15 = vcombine.high %v95_v5, %v95_v5  ;;  %v236_v18 = vrot.slane %v4047_v8, %v3990_v52  ;;  %v61_v19 = vrot.slane %v4038_v4, %v3996_v54  ;;  %v3332_v22 = vld [vmem:[%s5072_s4 + $0x180] ss:$16 sps:$4 sm:$0xff]  }
  0x1e   :  { %v3330_v10 = vld [vmem:[%s5072_s4 + $0x384] ss:$16 sps:$4 sm:$0xff]   ;;  %v147_v16 = vcombine.high %v139_v7, %v139_v7  ;;  %vm79_vm1 = vcmp.eq.s32.totalorder %v53_v11, 1  ;;  %v132_v21 = vcombine.high %v43_v62, %v43_v62  ;;  %v3333_v23 = vld [vmem:[%s5072_s4 + $0x380] ss:$16 sps:$4 sm:$0xff]   ;;  %vm78_vm2 = vcmp.eq.s32.totalorder %v49_v17, 1 }
  0x1f   :  { %1870 = vmatpush1.bf16.msra.mxu1 %v3302_v30  ;;  %v248_v25 = vrot.slane %v4047_v8, %v3996_v54  ;;  %v57_v26 = vrot.slane %v4038_v4, %v3999_v55  ;;  %v3334_v27 = vld [vmem:[%s5072_s4 + $0x1a4] ss:$16 sps:$4 sm:$0xff]   ;;  %v174_v30 = vsel %vm78_vm2, %v95_v5, %v139_v7  ;;  %vm4086_vm3 = vcmp.eq.s32.totalorder %v61_v19, 1 }
  0x20   :  { %1911 = vmatpush1.bf16.msra.mxu0 %v3303_v31  ;;  %1871 = vmatprep.subr.bf16.mxu1 %v3304_v32  ;;  %v175_v24 = vsel %vm79_vm1, %v103_v15, %v147_v16  ;;  %v3336_v28 = vld [vmem:[%s5072_s4 + $0x3a4] ss:$16 sps:$4 sm:$0xff]   ;;  %v102_v32 = vrot.slane %v88_v20, %v3987_v51  ;;  %v244_v39 = vrot.slane %v4047_v8, %v3999_v55  ;;  %v72_v15 = vsub.s32 6, %v3969_v44 }
  0x21   :  { %1912 = vmatprep.subr.bf16.mxu0 %v3306_v33  ;;  %v224_v29 = vmul.f32 %v190_v63, %v175_v24  ;;  %v223_v33 = vmul.f32 %v186_v0, %v174_v30  ;;  %vm4092_vm4 = vcmp.eq.s32.totalorder %v57_v26, 1  ;;  %v156_v62 = vrot.slane %v4036_v2, %v3987_v51  ;;  %v3348_v16 = vld [vmem:[%s5072_s4 + $0x3e4] ss:$16 sps:$4 sm:$0xff]   ;;  %v3350_v24 = vld [vmem:[%s5072_s4 + $0x1e0] ss:$16 sps:$4 sm:$0xff]  }
  0x22   :  { %v104_v38 = vcombine.high %v102_v32, %v102_v32  ;;  %v206_v63 = vrot.slane %v4010_v58, %v4013_v59  ;;  %v256_v7 = vrot.slane %v4047_v8, %v4013_v59  ;;  %v119_v20 = vrot.slane %v105_v6, %v3987_v51 }
  0x23   :  { %1872 = vmatpush1.bf16.msra.mxu1 %v3308_v34  ;;  %v146_v34 = vrot.slane %v132_v21, %v3987_v51  ;;  %v274_v37 = vadd.f32 %v240_v13, %v224_v29  ;;  %v164_v11 = vcombine.high %v156_v62, %v156_v62  ;;  %v65_v13 = vrot.slane %v4038_v4, %v4062_v14 }
  0x24   :  { %1913 = vmatpush1.bf16.msra.mxu0 %v3309_v35  ;;  %1873 = vmatprep.subr.bf16.mxu1 %v3310_v36  ;;  %v194_v36 = vrot.slane %v4010_v58, %v3999_v55  ;;  %v163_v21 = vrot.slane %v149_v12, %v3987_v51  ;;  %v121_v2 = vcombine.high %v119_v20, %v119_v20  ;;  %v3358_v12 = vld [vmem:[%s5072_s4 + $0x404] ss:$16 sps:$4 sm:$0xff]  }
  0x25   :  { %1914 = vmatprep.subr.bf16.mxu0 %v3312_v40  ;;  %v69_v40 = vrot.slane %v4038_v4, %v4013_v59  ;;  %v148_v45 = vcombine.high %v146_v34, %v146_v34  ;;  %3756 = vtanh.f32 %v274_v37  ;;  %v3346_v59 = vld [vmem:[%s5072_s4 + $0x1e4] ss:$16 sps:$4 sm:$0xff]   ;;  %vm82_vm6 = vcmp.eq.s32.totalorder %v65_v13, 1  ;;  %v3374_v13 = vld [vmem:[%s5072_s4 + $0x460] ss:$16 sps:$4 sm:$0xff]  }
  0x26   :  { %v73_v31 = vrot.slane %v4038_v4, %v72_v15  ;;  %v260_v35 = vrot.slane %v4047_v8, %v72_v15 }
  0x27   :  { %1874 = vmatpush1.bf16.msra.mxu1 %v3314_v41  ;;  %v3338_v41 = vld [vmem:[%s5072_s4 + $0x1a0] ss:$16 sps:$4 sm:$0xff]   ;;  %vm4119_vm5 = vcmp.eq.s32.totalorder %v69_v40, 1  ;;  %v177_v60 = vsel %vm4086_vm3, %v104_v38, %v148_v45  ;;  %v3359_v38 = vld [vmem:[%s5072_s4 + $0x8] ss:$16 sps:$4 sm:$0xff]  }
  0x28   :  { %1915 = vmatpush1.bf16.msra.mxu0 %v3315_v42  ;;  %1875 = vmatprep.subr.bf16.mxu1 %v3316_v43  ;;  %v3339_v42 = vld [vmem:[%s5072_s4 + $0x3a0] ss:$16 sps:$4 sm:$0xff]   ;;  %v273_v43 = vadd.f32 %v236_v18, %v223_v33  ;;  %v226_v0 = vmul.f32 %v198_v1, %v177_v60  ;;  %v202_v1 = vrot.slane %v4010_v58, %v4062_v14  ;;  %vm84_vm8 = vcmp.eq.s32.totalorder %v73_v31, 1  ;;  %v3379_v60 = vld [vmem:[%s5072_s4 + $0x6c] ss:$16 sps:$4 sm:$0xff]  }
  0x29   :  { %1916 = vmatprep.subr.bf16.mxu0 %v3318_v46  ;;  %v176_v46 = vsel %vm4092_vm4, %v102_v32, %v146_v34  ;;  %v252_v18 = vrot.slane %v4047_v8, %v4062_v14  ;;  %v210_v32 = vrot.slane %v4010_v58, %v72_v15  ;;  %v3389_v15 = vld [vmem:[%s5072_s4 + $0xa8] ss:$16 sps:$4 sm:$0xff]   ;;  %v3418_v31 = vld [vmem:[%s5072_s4 + $0x544] ss:$16 sps:$4 sm:$0xff]  }
  0x2a   :  { %3758 = vtanh.f32 %v273_v43  ;;  %v276_v17 = vadd.f32 %v248_v25, %v226_v0  ;;  %v3361_v25 = vld [vmem:[%s5072_s4 + $0xc] ss:$16 sps:$4 sm:$0xff]   ;;  %v3370_v0 = vld [vmem:[%s5072_s4 + $0x444] ss:$16 sps:$4 sm:$0xff]  }
  0x2b   :  { %1876 = vmatpush1.bf16.msra.mxu1 %v3320_v47  ;;  %v4111_v47 = vsub.s32 7, %v3969_v44 }
  0x2c   :  { %1917 = vmatpush1.bf16.msra.mxu0 %v3321_v48  ;;  %1877 = vmatprep.subr.bf16.mxu1 %v3322_v49  ;;  %v3340_v48 = vld [vmem:[%s5072_s4 + $0x1c4] ss:$16 sps:$4 sm:$0xff]  }
  0x2d   :  { %1918 = vmatprep.subr.bf16.mxu0 %v3324_v53  ;;  %v3342_v49 = vld [vmem:[%s5072_s4 + $0x3c4] ss:$16 sps:$4 sm:$0xff]   ;;  %v225_v53 = vmul.f32 %v194_v36, %v176_v46  ;;  %v77_v19 = vrot.slane %v4038_v4, %v4111_v47 }
  0x2f   :  { %1878 = vmatpush1.bf16.msra.mxu1 %v3326_v56  ;;  %v275_v3 = vadd.f32 %v244_v39, %v225_v53  ;;  %vm4167_vm7 = vcmp.eq.s32.totalorder %v77_v19, 1  ;;  %v3757_v33 = vpop.eup %3756  ;;  %v3364_v53 = vld [vmem:[%s5072_s4 + $0x424] ss:$16 sps:$4 sm:$0xff]   ;;  %v3371_v56 = vld [vmem:[%s5072_s4 + $0x48] ss:$16 sps:$4 sm:$0xff]  }
  0x30   :  { %1919 = vmatpush1.bf16.msra.mxu0 %v3327_v57  ;;  %1879 = vmatprep.subr.bf16.mxu1 %v3328_v9  ;;  %v112_v57 = vrot.slane %v4022_v61, %v3987_v51  ;;  %v3344_v9 = vld [vmem:[%s5072_s4 + $0x1c0] ss:$16 sps:$4 sm:$0xff]   ;;  %v165_v51 = vcombine.high %v163_v21, %v163_v21  ;;  %v290_v37 = vpack.c.bf16 %v3757_v33, %v3757_v33  ;;  %v3403_v19 = vld [vmem:[%s5072_s4 + $0xec] ss:$16 sps:$4 sm:$0xff]  }
  0x31   :  { %1920 = vmatprep.subr.bf16.mxu0 %v3330_v10  ;;  %v3345_v10 = vld [vmem:[%s5072_s4 + $0x3c0] ss:$16 sps:$4 sm:$0xff]   ;;  %3760 = vtanh.f32 %v275_v3  ;;  %v3377_v3 = vld [vmem:[%s5072_s4 + $0x68] ss:$16 sps:$4 sm:$0xff]   ;;  %v3433_v33 = vld [vmem:[%s5072_s4 + $0x18c] ss:$16 sps:$4 sm:$0xff]  }
  0x32   :  { %v120_v5 = vcombine.high %v112_v57, %v112_v57  ;;  %3762 = vtanh.f32 %v276_v17  ;;  %v178_v14 = vsel %vm82_vm6, %v112_v57, %v156_v62  ;;  %v3351_v61 = vld [vmem:[%s5072_s4 + $0x3e0] ss:$16 sps:$4 sm:$0xff]   ;;  %v181_v30 = vsel %vm4167_vm7, %v121_v2, %v165_v51  ;;  %1887 = vmatprep.mubr.bf16.mxu1 %v290_v37  ;;  %v3388_v17 = vld [vmem:[%s5072_s4 + $0x4a4] ss:$16 sps:$4 sm:$0xff]   ;;  %v3413_v51 = vld [vmem:[%s5072_s4 + $0x128] ss:$16 sps:$4 sm:$0xff]  }
  0x33   :  { %1880 = vmatpush1.bf16.msra.mxu1 %v3332_v22  ;;  %v227_v6 = vmul.f32 %v202_v1, %v178_v14  ;;  %v3362_v62 = vld [vmem:[%s5072_s4 + $0x420] ss:$16 sps:$4 sm:$0xff]   ;;  %v3382_v1 = vld [vmem:[%s5072_s4 + $0x484] ss:$16 sps:$4 sm:$0xff]  }
  0x34   :  { %1921 = vmatpush1.bf16.msra.mxu0 %v3333_v23  ;;  %1881 = vmatprep.subr.bf16.mxu1 %v3334_v27  ;;  %v179_v44 = vsel %vm4119_vm5, %v120_v5, %v164_v11  ;;  %v214_v27 = vrot.slane %v4010_v58, %v4111_v47  ;;  %v3759_v36 = vpop.eup %3758  ;;  %v3367_v58 = vld [vmem:[%s5072_s4 + $0x2c] ss:$16 sps:$4 sm:$0xff]   ;;  %v3392_v14 = vld [vmem:[%s5072_s4 + $0x4c0] ss:$16 sps:$4 sm:$0xff]   ;;  %v3400_v23 = vld [vmem:[%s5072_s4 + $0x4e4] ss:$16 sps:$4 sm:$0xff]  }
  0x35   :  { %1922 = vmatprep.subr.bf16.mxu0 %v3336_v28  ;;  %v228_v22 = vmul.f32 %v206_v63, %v179_v44  ;;  %v264_v28 = vrot.slane %v4047_v8, %v4111_v47  ;;  %v4187_v29 = vadd.f32 %v252_v18, %v227_v6  ;;  %v4197_v39 = vpack.c.bf16 %v3759_v36, %v3759_v36  ;;  %v3373_v47 = vld [vmem:[%s5072_s4 + $0x4c] ss:$16 sps:$4 sm:$0xff]   ;;  %v3395_v18 = vld [vmem:[%s5072_s4 + $0xc8] ss:$16 sps:$4 sm:$0xff]   ;;  %v3386_v44 = vld [vmem:[%s5072_s4 + $0x4a0] ss:$16 sps:$4 sm:$0xff]  }
  0x36   :  { %v230_v34 = vmul.f32 %v214_v27, %v181_v30  ;;  %v180_v8 = vsel %vm84_vm8, %v119_v20, %v163_v21  ;;  %v3385_v5 = vld [vmem:[%s5072_s4 + $0x8c] ss:$16 sps:$4 sm:$0xff]   ;;  %v3394_v20 = vld [vmem:[%s5072_s4 + $0x4c4] ss:$16 sps:$4 sm:$0xff]   ;;  %v3401_v21 = vld [vmem:[%s5072_s4 + $0xe8] ss:$16 sps:$4 sm:$0xff]  }
  0x37   :  { %1882 = vmatpush1.bf16.msra.mxu1 %v3338_v41  ;;  %v278_v26 = vadd.f32 %v256_v7, %v228_v22  ;;  %v229_v40 = vmul.f32 %v210_v32, %v180_v8  ;;  %v3368_v7 = vld [vmem:[%s5072_s4 + $0x440] ss:$16 sps:$4 sm:$0xff]   ;;  %v3391_v11 = vld [vmem:[%s5072_s4 + $0xac] ss:$16 sps:$4 sm:$0xff]   ;;  %v3406_v2 = vld [vmem:[%s5072_s4 + $0x504] ss:$16 sps:$4 sm:$0xff]  }
  0x38   :  { %1923 = vmatpush1.bf16.msra.mxu0 %v3339_v42  ;;  %1883 = vmatprep.subr.bf16.mxu1 %v3340_v48  ;;  %v4202_v4 = vadd.f32 %v264_v28, %v230_v34  ;;  %v3365_v42 = vld [vmem:[%s5072_s4 + $0x28] ss:$16 sps:$4 sm:$0xff]   ;;  %v3409_v22 = vld [vmem:[%s5072_s4 + $0x10c] ss:$16 sps:$4 sm:$0xff]   ;;  %v3398_v6 = vld [vmem:[%s5072_s4 + $0x4e0] ss:$16 sps:$4 sm:$0xff]  }
  0x39   :  { %1924 = vmatprep.subr.bf16.mxu0 %v3342_v49  ;;  %3764 = vtanh.f32 %v278_v26  ;;  %v4208_v43 = vadd.f32 %v260_v35, %v229_v40  ;;  %v3356_v49 = vld [vmem:[%s5072_s4 + $0x400] ss:$16 sps:$4 sm:$0xff]   ;;  %v3412_v26 = vld [vmem:[%s5072_s4 + $0x524] ss:$16 sps:$4 sm:$0xff]   ;;  %v3419_v27 = vld [vmem:[%s5072_s4 + $0x148] ss:$16 sps:$4 sm:$0xff]  }
  0x3a   :  { %v3427_v28 = vld [vmem:[%s5072_s4 + $0x16c] ss:$16 sps:$4 sm:$0xff]   ;;  %v3410_v30 = vld [vmem:[%s5072_s4 + $0x520] ss:$16 sps:$4 sm:$0xff]   ;;  %v3425_v32 = vld [vmem:[%s5072_s4 + $0x168] ss:$16 sps:$4 sm:$0xff]   ;;  %3766 = vtanh.f32 %v4187_v29 }
  0x3b   :  { %1884 = vmatpush1.bf16.msra.mxu1 %v3344_v9  ;;  %v3761_v41 = vpop.eup %3760  ;;  %v3376_v9 = vld [vmem:[%s5072_s4 + $0x464] ss:$16 sps:$4 sm:$0xff]   ;;  %v3416_v34 = vld [vmem:[%s5072_s4 + $0x540] ss:$16 sps:$4 sm:$0xff]   ;;  %v3431_v36 = vld [vmem:[%s5072_s4 + $0x188] ss:$16 sps:$4 sm:$0xff]   ;;  %3768 = vtanh.f32 %v4202_v4 }
  0x3c   :  { %1925 = vmatpush1.bf16.msra.mxu0 %v3345_v10  ;;  %1885 = vmatprep.subr.bf16.mxu1 %v3346_v59  ;;  %v3763_v45 = vpop.eup %3762  ;;  %v4210_v46 = vpack.c.bf16 %v3761_v41, %v3761_v41  ;;  %v3383_v10 = vld [vmem:[%s5072_s4 + $0x88] ss:$16 sps:$4 sm:$0xff]   ;;  %v3397_v59 = vld [vmem:[%s5072_s4 + $0xcc] ss:$16 sps:$4 sm:$0xff]   ;;  %v3424_v35 = vld [vmem:[%s5072_s4 + $0x564] ss:$16 sps:$4 sm:$0xff]   ;;  %3770 = vtanh.f32 %v4208_v43 }
  0x3d   :  { %1926 = vmatprep.subr.bf16.mxu0 %v3348_v16  ;;  %v4215_v48 = vpack.c.bf16 %v3763_v45, %v3763_v45  ;;  %v3380_v16 = vld [vmem:[%s5072_s4 + $0x480] ss:$16 sps:$4 sm:$0xff]   ;;  %v3437_v8 = vld [vmem:[%s5072_s4 + $0x1a8] ss:$16 sps:$4 sm:$0xff]   ;;  %v3445_v40 = vld [vmem:[%s5072_s4 + $0x1cc] ss:$16 sps:$4 sm:$0xff]  }
  0x3e   :  { %v3428_v41 = vld [vmem:[%s5072_s4 + $0x580] ss:$16 sps:$4 sm:$0xff]   ;;  %v3443_v45 = vld [vmem:[%s5072_s4 + $0x1c8] ss:$16 sps:$4 sm:$0xff]   ;;  %v3457_v4 = vld [vmem:[%s5072_s4 + $0x20c] ss:$16 sps:$4 sm:$0xff]  }
  0x3f   :  { %1886 = vmatpush1.bf16.msra.mxu1 %v3350_v24  ;;  %1928 = vmatprep.mubr.bf16.mxu0 %v4215_v48  ;;  %v3407_v24 = vld [vmem:[%s5072_s4 + $0x108] ss:$16 sps:$4 sm:$0xff]  }
  0x40   :  { %1927 = vmatpush1.bf16.msra.mxu0 %v3351_v61  ;;  %2019 = vmatprep.subr.bf16.mxu1 %v3361_v25  ;;  %v3415_v61 = vld [vmem:[%s5072_s4 + $0x12c] ss:$16 sps:$4 sm:$0xff]   ;;  %v3404_v25 = vld [vmem:[%s5072_s4 + $0x500] ss:$16 sps:$4 sm:$0xff]   ;;  %v3449_v29 = vld [vmem:[%s5072_s4 + $0x1e8] ss:$16 sps:$4 sm:$0xff]  }
  0x41   :  { %1937 = vmatprep.subr.bf16.mxu0 %v3358_v12  ;;  %v3421_v12 = vld [vmem:[%s5072_s4 + $0x14c] ss:$16 sps:$4 sm:$0xff]   ;;  %v3545_v43 = vld [vmem:[%s5072_s4 + $0x3e8] ss:$16 sps:$4 sm:$0xff]  }
  0x42   :  { %1888 = vmatmul.mubr.bf16.vlgmr.msra.gmra.mrb[0].mxu1 %v4197_v39 }
  0x43   :  { %2020 = vmatpush1.bf16.msra.mxu1 %v3359_v38  ;;  %2051 = vmatprep.mubr.bf16.mxu1 %v290_v37  ;;  %v3765_v57 = vpop.eup %3764  ;;  %v3439_v37 = vld [vmem:[%s5072_s4 + $0x1ac] ss:$16 sps:$4 sm:$0xff]   ;;  %v3422_v38 = vld [vmem:[%s5072_s4 + $0x560] ss:$16 sps:$4 sm:$0xff]  }
  0x44   :  { %2021 = vmatprep.subr.bf16.mxu1 %v3367_v58  ;;  %1929 = vmatmul.mubr.bf16.vlgmr.msra.gmra.mrb[0].mxu0 %v4210_v46  ;;  %v4234_v63 = vpack.c.bf16 %v3765_v57, %v3765_v57  ;;  %v3430_v58 = vld [vmem:[%s5072_s4 + $0x584] ss:$16 sps:$4 sm:$0xff]  }
  0x45   :  { %1938 = vmatpush1.bf16.msra.mxu0 %v3356_v49  ;;  %v3434_v49 = vld [vmem:[%s5072_s4 + $0x5a0] ss:$16 sps:$4 sm:$0xff]   ;;  %v3448_v57 = vld [vmem:[%s5072_s4 + $0x5e4] ss:$16 sps:$4 sm:$0xff]  }
  0x46   :  { %1939 = vmatprep.subr.bf16.mxu0 %v3364_v53  ;;  %1969 = vmatprep.mubr.bf16.mxu0 %v4234_v63  ;;  %v3442_v53 = vld [vmem:[%s5072_s4 + $0x5c4] ss:$16 sps:$4 sm:$0xff]  }
  0x47   :  { %2022 = vmatpush1.bf16.msra.mxu1 %v3365_v42  ;;  %v3436_v42 = vld [vmem:[%s5072_s4 + $0x5a4] ss:$16 sps:$4 sm:$0xff]  }
  0x48   :  { %2023 = vmatprep.subr.bf16.mxu1 %v3373_v47  ;;  %v3451_v47 = vld [vmem:[%s5072_s4 + $0x1ec] ss:$16 sps:$4 sm:$0xff]  }
  0x49   :  { %1940 = vmatpush1.bf16.msra.mxu0 %v3362_v62  ;;  %v3463_v62 = vld [vmem:[%s5072_s4 + $0x22c] ss:$16 sps:$4 sm:$0xff]  }
  0x4a   :  { %1941 = vmatprep.subr.bf16.mxu0 %v3370_v0  ;;  %v3767_v0 = vpop.eup %3766 }
  0x4b   :  { %2024 = vmatpush1.bf16.msra.mxu1 %v3371_v56  ;;  %v3440_v56 = vld [vmem:[%s5072_s4 + $0x5c0] ss:$16 sps:$4 sm:$0xff]  }
  0x4c   :  { %2025 = vmatprep.subr.bf16.mxu1 %v3379_v60  ;;  %v3455_v60 = vld [vmem:[%s5072_s4 + $0x208] ss:$16 sps:$4 sm:$0xff]  }
  0x4d   :  { %1942 = vmatpush1.bf16.msra.mxu0 %v3368_v7  ;;  %v3454_v7 = vld [vmem:[%s5072_s4 + $0x604] ss:$16 sps:$4 sm:$0xff]  }
  0x4e   :  { %1943 = vmatprep.subr.bf16.mxu0 %v3376_v9  ;;  %v3461_v9 = vld [vmem:[%s5072_s4 + $0x228] ss:$16 sps:$4 sm:$0xff]  }
  0x4f   :  { %2026 = vmatpush1.bf16.msra.mxu1 %v3377_v3  ;;  %v3446_v3 = vld [vmem:[%s5072_s4 + $0x5e0] ss:$16 sps:$4 sm:$0xff]  }
  0x50   :  { %2027 = vmatprep.subr.bf16.mxu1 %v3385_v5  ;;  %v3769_v5 = vpop.eup %3768 }
  0x51   :  { %1944 = vmatpush1.bf16.msra.mxu0 %v3374_v13  ;;  %v3452_v13 = vld [vmem:[%s5072_s4 + $0x600] ss:$16 sps:$4 sm:$0xff]  }
  0x52   :  { %1945 = vmatprep.subr.bf16.mxu0 %v3382_v1  ;;  %v3460_v1 = vld [vmem:[%s5072_s4 + $0x624] ss:$16 sps:$4 sm:$0xff]  }
  0x53   :  { %2028 = vmatpush1.bf16.msra.mxu1 %v3383_v10  ;;  %v4415_v10 = vpack.c.bf16 %v3767_v0, %v3767_v0  ;;  %v3532_v0 = vld [vmem:[%s5072_s4 + $0x7a4] ss:$16 sps:$4 sm:$0xff]  }
  0x54   :  { %2029 = vmatprep.subr.bf16.mxu1 %v3391_v11  ;;  %v3469_v11 = vld [vmem:[%s5072_s4 + $0x24c] ss:$16 sps:$4 sm:$0xff]  }
  0x55   :  { %1946 = vmatpush1.bf16.msra.mxu0 %v3380_v16  ;;  %v3466_v16 = vld [vmem:[%s5072_s4 + $0x644] ss:$16 sps:$4 sm:$0xff]  }
  0x56   :  { %1947 = vmatprep.subr.bf16.mxu0 %v3388_v17  ;;  %v3473_v17 = vld [vmem:[%s5072_s4 + $0x268] ss:$16 sps:$4 sm:$0xff]  }
  0x57   :  { %2030 = vmatpush1.bf16.msra.mxu1 %v3389_v15  ;;  %v3475_v15 = vld [vmem:[%s5072_s4 + $0x26c] ss:$16 sps:$4 sm:$0xff]  }
  0x58   :  { %2031 = vmatprep.subr.bf16.mxu1 %v3397_v59  ;;  %v3458_v59 = vld [vmem:[%s5072_s4 + $0x620] ss:$16 sps:$4 sm:$0xff]  }
  0x59   :  { %1948 = vmatpush1.bf16.msra.mxu0 %v3386_v44  ;;  %v3472_v44 = vld [vmem:[%s5072_s4 + $0x664] ss:$16 sps:$4 sm:$0xff]  }
  0x5a   :  { %1949 = vmatprep.subr.bf16.mxu0 %v3394_v20  ;;  %v3479_v20 = vld [vmem:[%s5072_s4 + $0x288] ss:$16 sps:$4 sm:$0xff]  }
  0x5b   :  { %2032 = vmatpush1.bf16.msra.mxu1 %v3395_v18  ;;  %v3481_v18 = vld [vmem:[%s5072_s4 + $0x28c] ss:$16 sps:$4 sm:$0xff]  }
  0x5c   :  { %2033 = vmatprep.subr.bf16.mxu1 %v3403_v19  ;;  %v3464_v19 = vld [vmem:[%s5072_s4 + $0x640] ss:$16 sps:$4 sm:$0xff]  }
  0x5d   :  { %1950 = vmatpush1.bf16.msra.mxu0 %v3392_v14  ;;  %v3478_v14 = vld [vmem:[%s5072_s4 + $0x684] ss:$16 sps:$4 sm:$0xff]  }
  0x5e   :  { %1951 = vmatprep.subr.bf16.mxu0 %v3400_v23  ;;  %v3485_v23 = vld [vmem:[%s5072_s4 + $0x2a8] ss:$16 sps:$4 sm:$0xff]  }
  0x5f   :  { %2034 = vmatpush1.bf16.msra.mxu1 %v3401_v21  ;;  %v3487_v21 = vld [vmem:[%s5072_s4 + $0x2ac] ss:$16 sps:$4 sm:$0xff]  }
  0x60   :  { %2035 = vmatprep.subr.bf16.mxu1 %v3409_v22  ;;  %v3470_v22 = vld [vmem:[%s5072_s4 + $0x660] ss:$16 sps:$4 sm:$0xff]  }
  0x61   :  { %1952 = vmatpush1.bf16.msra.mxu0 %v3398_v6  ;;  %v3484_v6 = vld [vmem:[%s5072_s4 + $0x6a4] ss:$16 sps:$4 sm:$0xff]  }
  0x62   :  { %1953 = vmatprep.subr.bf16.mxu0 %v3406_v2  ;;  %v3491_v2 = vld [vmem:[%s5072_s4 + $0x2c8] ss:$16 sps:$4 sm:$0xff]  }
  0x63   :  { %2036 = vmatpush1.bf16.msra.mxu1 %v3407_v24  ;;  %v3493_v24 = vld [vmem:[%s5072_s4 + $0x2cc] ss:$16 sps:$4 sm:$0xff]  }
  0x64   :  { %2037 = vmatprep.subr.bf16.mxu1 %v3415_v61  ;;  %v3476_v61 = vld [vmem:[%s5072_s4 + $0x680] ss:$16 sps:$4 sm:$0xff]  }
  0x65   :  { %1954 = vmatpush1.bf16.msra.mxu0 %v3404_v25  ;;  %v3490_v25 = vld [vmem:[%s5072_s4 + $0x6c4] ss:$16 sps:$4 sm:$0xff]  }
  0x66   :  { %1955 = vmatprep.subr.bf16.mxu0 %v3412_v26  ;;  %v3497_v26 = vld [vmem:[%s5072_s4 + $0x2e8] ss:$16 sps:$4 sm:$0xff]  }
  0x67   :  { %2038 = vmatpush1.bf16.msra.mxu1 %v3413_v51  ;;  %v3499_v51 = vld [vmem:[%s5072_s4 + $0x2ec] ss:$16 sps:$4 sm:$0xff]  }
  0x68   :  { %2039 = vmatprep.subr.bf16.mxu1 %v3421_v12  ;;  %v3482_v12 = vld [vmem:[%s5072_s4 + $0x6a0] ss:$16 sps:$4 sm:$0xff]  }
  0x69   :  { %1956 = vmatpush1.bf16.msra.mxu0 %v3410_v30  ;;  %v3496_v30 = vld [vmem:[%s5072_s4 + $0x6e4] ss:$16 sps:$4 sm:$0xff]  }
  0x6a   :  { %1957 = vmatprep.subr.bf16.mxu0 %v3418_v31  ;;  %v3503_v31 = vld [vmem:[%s5072_s4 + $0x308] ss:$16 sps:$4 sm:$0xff]  }
  0x6b   :  { %2040 = vmatpush1.bf16.msra.mxu1 %v3419_v27  ;;  %v3505_v27 = vld [vmem:[%s5072_s4 + $0x30c] ss:$16 sps:$4 sm:$0xff]  }
  0x6c   :  { %2041 = vmatprep.subr.bf16.mxu1 %v3427_v28  ;;  %v3488_v28 = vld [vmem:[%s5072_s4 + $0x6c0] ss:$16 sps:$4 sm:$0xff]  }
  0x6d   :  { %1958 = vmatpush1.bf16.msra.mxu0 %v3416_v34  ;;  %v3502_v34 = vld [vmem:[%s5072_s4 + $0x704] ss:$16 sps:$4 sm:$0xff]  }
  0x6e   :  { %1959 = vmatprep.subr.bf16.mxu0 %v3424_v35  ;;  %v3500_v35 = vld [vmem:[%s5072_s4 + $0x700] ss:$16 sps:$4 sm:$0xff]  }
  0x6f   :  { %2042 = vmatpush1.bf16.msra.mxu1 %v3425_v32  ;;  %v3511_v32 = vld [vmem:[%s5072_s4 + $0x32c] ss:$16 sps:$4 sm:$0xff]  }
  0x70   :  { %2043 = vmatprep.subr.bf16.mxu1 %v3433_v33  ;;  %v3494_v33 = vld [vmem:[%s5072_s4 + $0x6e0] ss:$16 sps:$4 sm:$0xff]  }
  0x71   :  { %1960 = vmatpush1.bf16.msra.mxu0 %v3422_v38  ;;  %v3508_v38 = vld [vmem:[%s5072_s4 + $0x724] ss:$16 sps:$4 sm:$0xff]  }
  0x72   :  { %1961 = vmatprep.subr.bf16.mxu0 %v3430_v58  ;;  %v3515_v58 = vld [vmem:[%s5072_s4 + $0x348] ss:$16 sps:$4 sm:$0xff]  }
  0x73   :  { %2044 = vmatpush1.bf16.msra.mxu1 %v3431_v36  ;;  %v3509_v36 = vld [vmem:[%s5072_s4 + $0x328] ss:$16 sps:$4 sm:$0xff]  }
  0x74   :  { %2045 = vmatprep.subr.bf16.mxu1 %v3439_v37  ;;  %v3517_v37 = vld [vmem:[%s5072_s4 + $0x34c] ss:$16 sps:$4 sm:$0xff]  }
  0x75   :  { %1962 = vmatpush1.bf16.msra.mxu0 %v3428_v41  ;;  %v3514_v41 = vld [vmem:[%s5072_s4 + $0x744] ss:$16 sps:$4 sm:$0xff]  }
  0x76   :  { %1963 = vmatprep.subr.bf16.mxu0 %v3436_v42  ;;  %v3521_v42 = vld [vmem:[%s5072_s4 + $0x368] ss:$16 sps:$4 sm:$0xff]  }
  0x77   :  { %2046 = vmatpush1.bf16.msra.mxu1 %v3437_v8  ;;  %v3523_v8 = vld [vmem:[%s5072_s4 + $0x36c] ss:$16 sps:$4 sm:$0xff]  }
  0x78   :  { %2047 = vmatprep.subr.bf16.mxu1 %v3445_v40  ;;  %v3506_v40 = vld [vmem:[%s5072_s4 + $0x720] ss:$16 sps:$4 sm:$0xff]  }
  0x79   :  { %1964 = vmatpush1.bf16.msra.mxu0 %v3434_v49  ;;  %v3520_v49 = vld [vmem:[%s5072_s4 + $0x764] ss:$16 sps:$4 sm:$0xff]  }
  0x7a   :  { %1965 = vmatprep.subr.bf16.mxu0 %v3442_v53  ;;  %v3527_v53 = vld [vmem:[%s5072_s4 + $0x388] ss:$16 sps:$4 sm:$0xff]  }
  0x7b   :  { %2048 = vmatpush1.bf16.msra.mxu1 %v3443_v45  ;;  %v3529_v45 = vld [vmem:[%s5072_s4 + $0x38c] ss:$16 sps:$4 sm:$0xff]  }
  0x7c   :  { %2049 = vmatprep.subr.bf16.mxu1 %v3451_v47  ;;  %v3512_v47 = vld [vmem:[%s5072_s4 + $0x740] ss:$16 sps:$4 sm:$0xff]  }
  0x7d   :  { %1966 = vmatpush1.bf16.msra.mxu0 %v3440_v56  ;;  %v3526_v56 = vld [vmem:[%s5072_s4 + $0x784] ss:$16 sps:$4 sm:$0xff]  }
  0x7e   :  { %1967 = vmatprep.subr.bf16.mxu0 %v3448_v57  ;;  %v3533_v57 = vld [vmem:[%s5072_s4 + $0x3a8] ss:$16 sps:$4 sm:$0xff]  }
  0x7f   :  { %2050 = vmatpush1.bf16.msra.mxu1 %v3449_v29  ;;  %v3535_v29 = vld [vmem:[%s5072_s4 + $0x3ac] ss:$16 sps:$4 sm:$0xff]  }
  0x80   :  { %2060 = vmatprep.subr.bf16.mxu1 %v3457_v4  ;;  %v3518_v4 = vld [vmem:[%s5072_s4 + $0x760] ss:$16 sps:$4 sm:$0xff]  }
  0x81   :  { %1968 = vmatpush1.bf16.msra.mxu0 %v3446_v3  ;;  %v3539_v3 = vld [vmem:[%s5072_s4 + $0x3c8] ss:$16 sps:$4 sm:$0xff]  }
  0x82   :  { %2052 = vmatmul.mubr.bf16.vlgmr.msra.gmra.mrb[4].mxu1 %v4197_v39  ;;  %v4423_v39 = vpack.c.bf16 %v3769_v5, %v3769_v5  ;;  %1978 = vmatprep.subr.bf16.mxu0 %v3454_v7  ;;  %v3547_v5 = vld [vmem:[%s5072_s4 + $0x3ec] ss:$16 sps:$4 sm:$0xff]   ;;  %v3530_v7 = vld [vmem:[%s5072_s4 + $0x7a0] ss:$16 sps:$4 sm:$0xff]  }
  0x83   :  { %2061 = vmatpush1.bf16.msra.mxu1 %v3455_v60  ;;  %2092 = vmatprep.mubr.bf16.mxu1 %v4215_v48  ;;  %v3467_v48 = vld [vmem:[%s5072_s4 + $0x248] ss:$16 sps:$4 sm:$0xff]   ;;  %v3541_v60 = vld [vmem:[%s5072_s4 + $0x3cc] ss:$16 sps:$4 sm:$0xff]  }
  0x84   :  { %2062 = vmatprep.subr.bf16.mxu1 %v3463_v62  ;;  %1970 = vmatmul.mubr.bf16.vlgmr.msra.gmra.mrb[0].mxu0 %v4415_v10  ;;  %v3524_v62 = vld [vmem:[%s5072_s4 + $0x780] ss:$16 sps:$4 sm:$0xff]  }
  0x85   :  { %1979 = vmatpush1.bf16.msra.mxu0 %v3452_v13  ;;  %2010 = vmatprep.mubr.bf16.mxu0 %v4423_v39  ;;  %v3536_v13 = vld [vmem:[%s5072_s4 + $0x7c0] ss:$16 sps:$4 sm:$0xff]  }
  0x86   :  { %1980 = vmatprep.subr.bf16.mxu0 %v3460_v1  ;;  %v3544_v1 = vld [vmem:[%s5072_s4 + $0x7e4] ss:$16 sps:$4 sm:$0xff]  }
  0x87   :  { %2063 = vmatpush1.bf16.msra.mxu1 %v3461_v9  ;;  %v3538_v9 = vld [vmem:[%s5072_s4 + $0x7c4] ss:$16 sps:$4 sm:$0xff]  }
  0x88   :  { %2064 = vmatprep.subr.bf16.mxu1 %v3469_v11  ;;  %v3550_v11 = vld [vmem:[%s5072_s4 + $0x40c] ss:$16 sps:$4 sm:$0xff]  }
  0x89   :  { %1981 = vmatpush1.bf16.msra.mxu0 %v3458_v59  ;;  %v3771_v59 = vpop.eup %3770 }
  0x8a   :  { %1982 = vmatprep.subr.bf16.mxu0 %v3466_v16  ;;  %v3542_v16 = vld [vmem:[%s5072_s4 + $0x7e0] ss:$16 sps:$4 sm:$0xff]  }
  0x8b   :  { %2065 = vmatpush1.bf16.msra.mxu1 %v3467_v48  ;;  %v3548_v48 = vld [vmem:[%s5072_s4 + $0x408] ss:$16 sps:$4 sm:$0xff]  }
  0x8c   :  { %2066 = vmatprep.subr.bf16.mxu1 %v3475_v15  ;;  %v3553_v15 = vld [vmem:[%s5072_s4 + $0x42c] ss:$16 sps:$4 sm:$0xff]  }
  0x8d   :  { %1983 = vmatpush1.bf16.msra.mxu0 %v3464_v19  ;;  %v4616_v19 = vpack.c.bf16 %v3771_v59, %v3771_v59  ;;  %v3601_v59 = vld [vmem:[%s5072_s4 + $0x62c] ss:$16 sps:$4 sm:$0xff]  }
  0x8e   :  { %1984 = vmatprep.subr.bf16.mxu0 %v3472_v44  ;;  %v3646_v44 = vld [vmem:[%s5077_s6 + $0x4] ss:$8 sps:$4 sm:$0xff]  }
  0x8f   :  { %2067 = vmatpush1.bf16.msra.mxu1 %v3473_v17  ;;  %v3551_v17 = vld [vmem:[%s5072_s4 + $0x428] ss:$16 sps:$4 sm:$0xff]  }
  0x90   :  { %2068 = vmatprep.subr.bf16.mxu1 %v3481_v18  ;;  %v3556_v18 = vld [vmem:[%s5072_s4 + $0x44c] ss:$16 sps:$4 sm:$0xff]  }
  0x91   :  { %1985 = vmatpush1.bf16.msra.mxu0 %v3470_v22  ;;  %v3647_v22 = vld [vmem:[%s5077_s6 + $0x10] ss:$8 sps:$4 sm:$0xff]  }
  0x92   :  { %1986 = vmatprep.subr.bf16.mxu0 %v3478_v14  ;;  %v3652_v14 = vld [vmem:[%s5077_s6 + $0x24] ss:$8 sps:$4 sm:$0xff]  }
  0x93   :  { %2069 = vmatpush1.bf16.msra.mxu1 %v3479_v20  ;;  %v3649_v20 = vld [vmem:[%s5077_s6 + $0x14] ss:$8 sps:$4 sm:$0xff]  }
  0x94   :  { %2070 = vmatprep.subr.bf16.mxu1 %v3487_v21  ;;  %v3559_v21 = vld [vmem:[%s5072_s4 + $0x46c] ss:$16 sps:$4 sm:$0xff]  }
  0x95   :  { %1987 = vmatpush1.bf16.msra.mxu0 %v3476_v61  ;;  %v3650_v61 = vld [vmem:[%s5077_s6 + $0x20] ss:$8 sps:$4 sm:$0xff]  }
  0x96   :  { %1988 = vmatprep.subr.bf16.mxu0 %v3484_v6  ;;  %v3655_v6 = vld [vmem:[%s5077_s6 + $0x34] ss:$8 sps:$4 sm:$0xff]  }
  0x97   :  { %2071 = vmatpush1.bf16.msra.mxu1 %v3485_v23  ;;  %v3557_v23 = vld [vmem:[%s5072_s4 + $0x468] ss:$16 sps:$4 sm:$0xff]  }
  0x98   :  { %2072 = vmatprep.subr.bf16.mxu1 %v3493_v24  ;;  %v3562_v24 = vld [vmem:[%s5072_s4 + $0x48c] ss:$16 sps:$4 sm:$0xff]  }
  0x99   :  { %1989 = vmatpush1.bf16.msra.mxu0 %v3482_v12  ;;  %v3563_v12 = vld [vmem:[%s5072_s4 + $0x4a8] ss:$16 sps:$4 sm:$0xff]  }
  0x9a   :  { %1990 = vmatprep.subr.bf16.mxu0 %v3490_v25  ;;  %v3653_v25 = vld [vmem:[%s5077_s6 + $0x30] ss:$8 sps:$4 sm:$0xff]  }
  0x9b   :  { %2073 = vmatpush1.bf16.msra.mxu1 %v3491_v2  ;;  %v3560_v2 = vld [vmem:[%s5072_s4 + $0x488] ss:$16 sps:$4 sm:$0xff]  }
  0x9c   :  { %2074 = vmatprep.subr.bf16.mxu1 %v3499_v51  ;;  %v3565_v51 = vld [vmem:[%s5072_s4 + $0x4ac] ss:$16 sps:$4 sm:$0xff]  }
  0x9d   :  { %1991 = vmatpush1.bf16.msra.mxu0 %v3488_v28  ;;  %v3656_v28 = vld [vmem:[%s5077_s6 + $0x40] ss:$8 sps:$4 sm:$0xff]  }
  0x9e   :  { %1992 = vmatprep.subr.bf16.mxu0 %v3496_v30  ;;  %v3661_v30 = vld [vmem:[%s5077_s6 + $0x54] ss:$8 sps:$4 sm:$0xff]  }
  0x9f   :  { %2075 = vmatpush1.bf16.msra.mxu1 %v3497_v26  ;;  %v3568_v26 = vld [vmem:[%s5072_s4 + $0x4cc] ss:$16 sps:$4 sm:$0xff]  }
  0xa0   :  { %2076 = vmatprep.subr.bf16.mxu1 %v3505_v27  ;;  %v3658_v27 = vld [vmem:[%s5077_s6 + $0x44] ss:$8 sps:$4 sm:$0xff]  }
  0xa1   :  { %1993 = vmatpush1.bf16.msra.mxu0 %v3494_v33  ;;  %v3659_v33 = vld [vmem:[%s5077_s6 + $0x50] ss:$8 sps:$4 sm:$0xff]  }
  0xa2   :  { %1994 = vmatprep.subr.bf16.mxu0 %v3502_v34  ;;  %v3664_v34 = vld [vmem:[%s5077_s6 + $0x64] ss:$8 sps:$4 sm:$0xff]  }
  0xa3   :  { %2077 = vmatpush1.bf16.msra.mxu1 %v3503_v31  ;;  %v3566_v31 = vld [vmem:[%s5072_s4 + $0x4c8] ss:$16 sps:$4 sm:$0xff]  }
  0xa4   :  { %2078 = vmatprep.subr.bf16.mxu1 %v3511_v32  ;;  %v3571_v32 = vld [vmem:[%s5072_s4 + $0x4ec] ss:$16 sps:$4 sm:$0xff]  }
  0xa5   :  { %1995 = vmatpush1.bf16.msra.mxu0 %v3500_v35  ;;  %v3569_v35 = vld [vmem:[%s5072_s4 + $0x4e8] ss:$16 sps:$4 sm:$0xff]  }
  0xa6   :  { %1996 = vmatprep.subr.bf16.mxu0 %v3508_v38  ;;  %v3667_v38 = vld [vmem:[%s5077_s6 + $0x74] ss:$8 sps:$4 sm:$0xff]  }
  0xa7   :  { %2079 = vmatpush1.bf16.msra.mxu1 %v3509_v36  ;;  %v3574_v36 = vld [vmem:[%s5072_s4 + $0x50c] ss:$16 sps:$4 sm:$0xff]  }
  0xa8   :  { %2080 = vmatprep.subr.bf16.mxu1 %v3517_v37  ;;  %v3662_v37 = vld [vmem:[%s5077_s6 + $0x60] ss:$8 sps:$4 sm:$0xff]  }
  0xa9   :  { %1997 = vmatpush1.bf16.msra.mxu0 %v3506_v40  ;;  %v3665_v40 = vld [vmem:[%s5077_s6 + $0x70] ss:$8 sps:$4 sm:$0xff]  }
  0xaa   :  { %1998 = vmatprep.subr.bf16.mxu0 %v3514_v41  ;;  %v3670_v41 = vld [vmem:[%s5077_s6 + $0x84] ss:$8 sps:$4 sm:$0xff]  }
  0xab   :  { %2081 = vmatpush1.bf16.msra.mxu1 %v3515_v58  ;;  %v3572_v58 = vld [vmem:[%s5072_s4 + $0x508] ss:$16 sps:$4 sm:$0xff]  }
  0xac   :  { %2082 = vmatprep.subr.bf16.mxu1 %v3523_v8  ;;  %v3577_v8 = vld [vmem:[%s5072_s4 + $0x52c] ss:$16 sps:$4 sm:$0xff]  }
  0xad   :  { %1999 = vmatpush1.bf16.msra.mxu0 %v3512_v47  ;;  %v3668_v47 = vld [vmem:[%s5077_s6 + $0x80] ss:$8 sps:$4 sm:$0xff]  }
  0xae   :  { %2000 = vmatprep.subr.bf16.mxu0 %v3520_v49  ;;  %v3673_v49 = vld [vmem:[%s5077_s6 + $0x94] ss:$8 sps:$4 sm:$0xff]  }
  0xaf   :  { %2083 = vmatpush1.bf16.msra.mxu1 %v3521_v42  ;;  %v3575_v42 = vld [vmem:[%s5072_s4 + $0x528] ss:$16 sps:$4 sm:$0xff]  }
  0xb0   :  { %2084 = vmatprep.subr.bf16.mxu1 %v3529_v45  ;;  %v3580_v45 = vld [vmem:[%s5072_s4 + $0x54c] ss:$16 sps:$4 sm:$0xff]  }
  0xb1   :  { %2001 = vmatpush1.bf16.msra.mxu0 %v3518_v4  ;;  %v3671_v4 = vld [vmem:[%s5077_s6 + $0x90] ss:$8 sps:$4 sm:$0xff]  }
  0xb2   :  { %2002 = vmatprep.subr.bf16.mxu0 %v3526_v56  ;;  %v3676_v56 = vld [vmem:[%s5077_s6 + $0xa4] ss:$8 sps:$4 sm:$0xff]  }
  0xb3   :  { %2085 = vmatpush1.bf16.msra.mxu1 %v3527_v53  ;;  %v3578_v53 = vld [vmem:[%s5072_s4 + $0x548] ss:$16 sps:$4 sm:$0xff]  }
  0xb4   :  { %2086 = vmatprep.subr.bf16.mxu1 %v3535_v29  ;;  %v3583_v29 = vld [vmem:[%s5072_s4 + $0x56c] ss:$16 sps:$4 sm:$0xff]  }
  0xb5   :  { %2003 = vmatpush1.bf16.msra.mxu0 %v3524_v62  ;;  %v3674_v62 = vld [vmem:[%s5077_s6 + $0xa0] ss:$8 sps:$4 sm:$0xff]  }
  0xb6   :  { %2004 = vmatprep.subr.bf16.mxu0 %v3532_v0  ;;  %v3679_v0 = vld [vmem:[%s5077_s6 + $0xb4] ss:$8 sps:$4 sm:$0xff]  }
  0xb7   :  { %2087 = vmatpush1.bf16.msra.mxu1 %v3533_v57  ;;  %v3581_v57 = vld [vmem:[%s5072_s4 + $0x568] ss:$16 sps:$4 sm:$0xff]  }
  0xb8   :  { %2088 = vmatprep.subr.bf16.mxu1 %v3541_v60  ;;  %v3586_v60 = vld [vmem:[%s5072_s4 + $0x58c] ss:$16 sps:$4 sm:$0xff]  }
  0xb9   :  { %2005 = vmatpush1.bf16.msra.mxu0 %v3530_v7  ;;  %v3677_v7 = vld [vmem:[%s5077_s6 + $0xb0] ss:$8 sps:$4 sm:$0xff]  }
  0xba   :  { %2006 = vmatprep.subr.bf16.mxu0 %v3538_v9  ;;  %v3587_v9 = vld [vmem:[%s5072_s4 + $0x5a8] ss:$16 sps:$4 sm:$0xff]  }
  0xbb   :  { %2089 = vmatpush1.bf16.msra.mxu1 %v3539_v3  ;;  %v3584_v3 = vld [vmem:[%s5072_s4 + $0x588] ss:$16 sps:$4 sm:$0xff]  }
  0xbc   :  { %2090 = vmatprep.subr.bf16.mxu1 %v3547_v5  ;;  %v3589_v5 = vld [vmem:[%s5072_s4 + $0x5ac] ss:$16 sps:$4 sm:$0xff]  }
  0xbd   :  { %2007 = vmatpush1.bf16.msra.mxu0 %v3536_v13  ;;  %v3595_v13 = vld [vmem:[%s5072_s4 + $0x5ec] ss:$16 sps:$4 sm:$0xff]  }
  0xbe   :  { %2008 = vmatprep.subr.bf16.mxu0 %v3544_v1  ;;  %v3593_v1 = vld [vmem:[%s5072_s4 + $0x5e8] ss:$16 sps:$4 sm:$0xff]  }
  0xbf   :  { %2091 = vmatpush1.bf16.msra.mxu1 %v3545_v43  ;;  %v3592_v43 = vld [vmem:[%s5072_s4 + $0x5cc] ss:$16 sps:$4 sm:$0xff]  }
  0xc0   :  { %2101 = vmatprep.subr.bf16.mxu1 %v3550_v11  ;;  %v3590_v11 = vld [vmem:[%s5072_s4 + $0x5c8] ss:$16 sps:$4 sm:$0xff]  }
  0xc1   :  { %2009 = vmatpush1.bf16.msra.mxu0 %v3542_v16  ;;  %v3599_v16 = vld [vmem:[%s5072_s4 + $0x628] ss:$16 sps:$4 sm:$0xff]  }
  0xc2   :  { %2093 = vmatmul.mubr.bf16.vlgmr.msra.gmra.mrb[4].mxu1 %v4210_v46  ;;  %v3644_v46 = vld [vmem:[%s5077_s6] ss:$8 sps:$4 sm:$0xff]   ;;  %2587 = vmatprep.subr.bf16.mxu0 %v3646_v44  ;;  %v3610_v44 = vld [vmem:[%s5072_s4 + $0x68c] ss:$16 sps:$4 sm:$0xff]  }
  0xc3   :  { %2102 = vmatpush1.bf16.msra.mxu1 %v3548_v48  ;;  %2133 = vmatprep.mubr.bf16.mxu1 %v4234_v63  ;;  %v3554_v63 = vld [vmem:[%s5072_s4 + $0x448] ss:$16 sps:$4 sm:$0xff]   ;;  %v3598_v48 = vld [vmem:[%s5072_s4 + $0x60c] ss:$16 sps:$4 sm:$0xff]  }
  0xc4   :  { %2103 = vmatprep.subr.bf16.mxu1 %v3553_v15  ;;  %2011 = vmatmul.mubr.bf16.vlgmr.msra.gmra.mrb[0].mxu0 %v4616_v19  ;;  %v3596_v15 = vld [vmem:[%s5072_s4 + $0x608] ss:$16 sps:$4 sm:$0xff]  }
  0xc5   :  { %2588 = vmatpush1.bf16.msra.mxu0 %v3644_v46  ;;  %v3608_v46 = vld [vmem:[%s5072_s4 + $0x688] ss:$16 sps:$4 sm:$0xff]  }
  0xc6   :  { %2589 = vmatprep.subr.bf16.mxu0 %v3649_v20  ;;  %v3613_v20 = vld [vmem:[%s5072_s4 + $0x6ac] ss:$16 sps:$4 sm:$0xff]  }
  0xc7   :  { %2104 = vmatpush1.bf16.msra.mxu1 %v3551_v17  ;;  %v3604_v17 = vld [vmem:[%s5072_s4 + $0x64c] ss:$16 sps:$4 sm:$0xff]  }
  0xc8   :  { %2105 = vmatprep.subr.bf16.mxu1 %v3556_v18  ;;  %v3602_v18 = vld [vmem:[%s5072_s4 + $0x648] ss:$16 sps:$4 sm:$0xff]  }
  0xc9   :  { %2590 = vmatpush1.bf16.msra.mxu0 %v3647_v22 }
  0xca   :  { %2591 = vmatprep.subr.bf16.mxu0 %v3652_v14 }
  0xcb   :  { %2106 = vmatpush1.bf16.msra.mxu1 %v3554_v63  ;;  %v3611_v63 = vld [vmem:[%s5072_s4 + $0x6a8] ss:$16 sps:$4 sm:$0xff]  }
  0xcc   :  { %2107 = vmatprep.subr.bf16.mxu1 %v3559_v21  ;;  %v3616_v21 = vld [vmem:[%s5072_s4 + $0x6cc] ss:$16 sps:$4 sm:$0xff]  }
  0xcd   :  { %2592 = vmatpush1.bf16.msra.mxu0 %v3650_v61 }
  0xce   :  { %2593 = vmatprep.subr.bf16.mxu0 %v3655_v6  ;;  %v3619_v6 = vld [vmem:[%s5072_s4 + $0x6ec] ss:$16 sps:$4 sm:$0xff]  }
  0xcf   :  { %2108 = vmatpush1.bf16.msra.mxu1 %v3557_v23 }
  0xd0   :  { %2109 = vmatprep.subr.bf16.mxu1 %v3562_v24  ;;  %v3614_v24 = vld [vmem:[%s5072_s4 + $0x6c8] ss:$16 sps:$4 sm:$0xff]  }
  0xd1   :  { %2594 = vmatpush1.bf16.msra.mxu0 %v3653_v25  ;;  %v3680_v25 = vld [vmem:[%s5077_s6 + $0xc0] ss:$8 sps:$4 sm:$0xff]  }
  0xd2   :  { %2595 = vmatprep.subr.bf16.mxu0 %v3658_v27  ;;  %v3685_v27 = vld [vmem:[%s5077_s6 + $0xd4] ss:$8 sps:$4 sm:$0xff]  }
  0xd3   :  { %2110 = vmatpush1.bf16.msra.mxu1 %v3560_v2  ;;  %v3617_v2 = vld [vmem:[%s5072_s4 + $0x6e8] ss:$16 sps:$4 sm:$0xff]  }
  0xd4   :  { %2111 = vmatprep.subr.bf16.mxu1 %v3565_v51  ;;  %v3682_v51 = vld [vmem:[%s5077_s6 + $0xc4] ss:$8 sps:$4 sm:$0xff]  }
  0xd5   :  { %2596 = vmatpush1.bf16.msra.mxu0 %v3656_v28  ;;  %v3625_v28 = vld [vmem:[%s5072_s4 + $0x72c] ss:$16 sps:$4 sm:$0xff]  }
  0xd6   :  { %2597 = vmatprep.subr.bf16.mxu0 %v3661_v30  ;;  %v3683_v30 = vld [vmem:[%s5077_s6 + $0xd0] ss:$8 sps:$4 sm:$0xff]  }
  0xd7   :  { %2112 = vmatpush1.bf16.msra.mxu1 %v3563_v12  ;;  %v3622_v12 = vld [vmem:[%s5072_s4 + $0x70c] ss:$16 sps:$4 sm:$0xff]  }
  0xd8   :  { %2113 = vmatprep.subr.bf16.mxu1 %v3568_v26  ;;  %v3620_v26 = vld [vmem:[%s5072_s4 + $0x708] ss:$16 sps:$4 sm:$0xff]  }
  0xd9   :  { %2598 = vmatpush1.bf16.msra.mxu0 %v3659_v33  ;;  %v3628_v33 = vld [vmem:[%s5072_s4 + $0x74c] ss:$16 sps:$4 sm:$0xff]  }
  0xda   :  { %2599 = vmatprep.subr.bf16.mxu0 %v3664_v34  ;;  %v3686_v34 = vld [vmem:[%s5077_s6 + $0xe0] ss:$8 sps:$4 sm:$0xff]  }
  0xdb   :  { %2114 = vmatpush1.bf16.msra.mxu1 %v3566_v31  ;;  %v3623_v31 = vld [vmem:[%s5072_s4 + $0x728] ss:$16 sps:$4 sm:$0xff]  }
  0xdc   :  { %2115 = vmatprep.subr.bf16.mxu1 %v3571_v32  ;;  %v3688_v32 = vld [vmem:[%s5077_s6 + $0xe4] ss:$8 sps:$4 sm:$0xff]  }
  0xdd   :  { %2600 = vmatpush1.bf16.msra.mxu0 %v3662_v37  ;;  %v3631_v37 = vld [vmem:[%s5072_s4 + $0x76c] ss:$16 sps:$4 sm:$0xff]  }
  0xde   :  { %2601 = vmatprep.subr.bf16.mxu0 %v3667_v38  ;;  %v3689_v38 = vld [vmem:[%s5077_s6 + $0xf0] ss:$8 sps:$4 sm:$0xff]  }
  0xdf   :  { %2116 = vmatpush1.bf16.msra.mxu1 %v3569_v35  ;;  %v3626_v35 = vld [vmem:[%s5072_s4 + $0x748] ss:$16 sps:$4 sm:$0xff]  }
  0xe0   :  { %2117 = vmatprep.subr.bf16.mxu1 %v3574_v36  ;;  %v3691_v36 = vld [vmem:[%s5077_s6 + $0xf4] ss:$8 sps:$4 sm:$0xff]  }
  0xe1   :  { %2602 = vmatpush1.bf16.msra.mxu0 %v3665_v40  ;;  %v3694_v40 = vld [vmem:[%s5077_s6 + $0x104] ss:$8 sps:$4 sm:$0xff]  }
  0xe2   :  { %2603 = vmatprep.subr.bf16.mxu0 %v3670_v41  ;;  %v3632_v41 = vld [vmem:[%s5072_s4 + $0x788] ss:$16 sps:$4 sm:$0xff]  }
  0xe3   :  { %2118 = vmatpush1.bf16.msra.mxu1 %v3572_v58  ;;  %v3629_v58 = vld [vmem:[%s5072_s4 + $0x768] ss:$16 sps:$4 sm:$0xff]  }
  0xe4   :  { %2119 = vmatprep.subr.bf16.mxu1 %v3577_v8  ;;  %v3634_v8 = vld [vmem:[%s5072_s4 + $0x78c] ss:$16 sps:$4 sm:$0xff]  }
  0xe5   :  { %2604 = vmatpush1.bf16.msra.mxu0 %v3668_v47  ;;  %v3640_v47 = vld [vmem:[%s5072_s4 + $0x7cc] ss:$16 sps:$4 sm:$0xff]  }
  0xe6   :  { %2605 = vmatprep.subr.bf16.mxu0 %v3673_v49  ;;  %v3638_v49 = vld [vmem:[%s5072_s4 + $0x7c8] ss:$16 sps:$4 sm:$0xff]  }
  0xe7   :  { %2120 = vmatpush1.bf16.msra.mxu1 %v3575_v42  ;;  %v3637_v42 = vld [vmem:[%s5072_s4 + $0x7ac] ss:$16 sps:$4 sm:$0xff]  }
  0xe8   :  { %2121 = vmatprep.subr.bf16.mxu1 %v3580_v45  ;;  %v3635_v45 = vld [vmem:[%s5072_s4 + $0x7a8] ss:$16 sps:$4 sm:$0xff]  }
  0xe9   :  { %2606 = vmatpush1.bf16.msra.mxu0 %v3671_v4  ;;  %v4905_v4 = vld [vmem:[%s5078_s5] sm:$0xf] }
  0xea   :  { %2607 = vmatprep.subr.bf16.mxu0 %v3676_v56  ;;  %v558_v56 = vrot.slane %v4905_v4, %v3990_v52 }
  0xeb   :  { %2122 = vmatpush1.bf16.msra.mxu1 %v3578_v53  ;;  %v3643_v53 = vld [vmem:[%s5072_s4 + $0x7ec] ss:$16 sps:$4 sm:$0xff]  }
  0xec   :  { %2123 = vmatprep.subr.bf16.mxu1 %v3583_v29  ;;  %v3641_v29 = vld [vmem:[%s5072_s4 + $0x7e8] ss:$16 sps:$4 sm:$0xff]  }
  0xed   :  { %2608 = vmatpush1.bf16.msra.mxu0 %v3674_v62 }
  0xee   :  { %2609 = vmatprep.subr.bf16.mxu0 %v3679_v0 }
  0xef   :  { %2124 = vmatpush1.bf16.msra.mxu1 %v3581_v57  ;;  %v562_v57 = vrot.slane %v4905_v4, %v3984_v50 }
  0xf0   :  { %2125 = vmatprep.subr.bf16.mxu1 %v3586_v60 }
  0xf1   :  { %2610 = vmatpush1.bf16.msra.mxu0 %v3677_v7 }
  0xf2   :  { %2611 = vmatprep.subr.bf16.mxu0 %v3682_v51  ;;  %v3710_v51 = vld [vmem:[%s5077_s6 + $0x160] ss:$8 sps:$4 sm:$0xff]  }
  0xf3   :  { %2126 = vmatpush1.bf16.msra.mxu1 %v3584_v3 }
  0xf4   :  { %2127 = vmatprep.subr.bf16.mxu1 %v3589_v5 }
  0xf5   :  { %2612 = vmatpush1.bf16.msra.mxu0 %v3680_v25  ;;  %v3713_v25 = vld [vmem:[%s5077_s6 + $0x170] ss:$8 sps:$4 sm:$0xff]  }
  0xf6   :  { %2613 = vmatprep.subr.bf16.mxu0 %v3685_v27  ;;  %v3716_v27 = vld [vmem:[%s5077_s6 + $0x180] ss:$8 sps:$4 sm:$0xff]  }
  0xf7   :  { %2128 = vmatpush1.bf16.msra.mxu1 %v3587_v9 }
  0xf8   :  { %2129 = vmatprep.subr.bf16.mxu1 %v3592_v43 }
  0xf9   :  { %2614 = vmatpush1.bf16.msra.mxu0 %v3683_v30  ;;  %v3719_v30 = vld [vmem:[%s5077_s6 + $0x190] ss:$8 sps:$4 sm:$0xff]  }
  0xfa   :  { %2615 = vmatprep.subr.bf16.mxu0 %v3688_v32  ;;  %v3722_v32 = vld [vmem:[%s5077_s6 + $0x1a0] ss:$8 sps:$4 sm:$0xff]  }
  0xfb   :  { %2130 = vmatpush1.bf16.msra.mxu1 %v3590_v11  ;;  %v3692_v11 = vld [vmem:[%s5077_s6 + $0x100] ss:$8 sps:$4 sm:$0xff]  }
  0xfc   :  { %2131 = vmatprep.subr.bf16.mxu1 %v3595_v13  ;;  %v3740_v13 = vld [vmem:[%s5079_s8 + $0x40] sm:$0xff]  }
  0xfd   :  { %2616 = vmatpush1.bf16.msra.mxu0 %v3686_v34  ;;  %v3725_v34 = vld [vmem:[%s5077_s6 + $0x1b0] ss:$8 sps:$4 sm:$0xff]  }
  0xfe   :  { %2617 = vmatprep.subr.bf16.mxu0 %v3691_v36  ;;  %v3728_v36 = vld [vmem:[%s5077_s6 + $0x1c0] ss:$8 sps:$4 sm:$0xff]  }
  0xff   :  { %2132 = vmatpush1.bf16.msra.mxu1 %v3593_v1 }
 0x100   :  { %2142 = vmatprep.subr.bf16.mxu1 %v3598_v48  ;;  %v3697_v48 = vld [vmem:[%s5077_s6 + $0x114] ss:$8 sps:$4 sm:$0xff]  }
 0x101   :  { %2618 = vmatpush1.bf16.msra.mxu0 %v3689_v38  ;;  %v3731_v38 = vld [vmem:[%s5077_s6 + $0x1d0] ss:$8 sps:$4 sm:$0xff]  }
 0x102   :  { %2134 = vmatmul.mubr.bf16.vlgmr.msra.gmra.mrb[4].mxu1 %v4415_v10  ;;  %v3607_v10 = vld [vmem:[%s5072_s4 + $0x66c] ss:$16 sps:$4 sm:$0xff]   ;;  %2628 = vmatprep.subr.bf16.mxu0 %v3694_v40 }
 0x103   :  { %2143 = vmatpush1.bf16.msra.mxu1 %v3596_v15  ;;  %2174 = vmatprep.mubr.bf16.mxu1 %v4423_v39  ;;  %v3605_v39 = vld [vmem:[%s5072_s4 + $0x668] ss:$16 sps:$4 sm:$0xff]   ;;  %v3741_v15 = vld [vmem:[%s5079_s8] sm:$0xff]   ;;  %v3739_v40 = vld [vmem:[%s5077_s6 + $0x1f4] ss:$8 sps:$4 sm:$0xff]  }
 0x104   :  { %2144 = vmatprep.subr.bf16.mxu1 %v3601_v59 }
 0x107   :  { %2145 = vmatpush1.bf16.msra.mxu1 %v3599_v16  ;;  %v3742_v16 = vld [vmem:[%s5079_s8 + $0x48] sm:$0xff]  }
 0x108   :  { %2146 = vmatprep.subr.bf16.mxu1 %v3604_v17 }
 0x10b   :  { %2147 = vmatpush1.bf16.msra.mxu1 %v3602_v18  ;;  %v3743_v18 = vld [vmem:[%s5079_s8 + $0x8] sm:$0xff]  }
 0x10c   :  { %2148 = vmatprep.subr.bf16.mxu1 %v3607_v10  ;;  %v3744_v10 = vld [vmem:[%s5079_s8 + $0x50] sm:$0xff]  }
 0x10f   :  { %2149 = vmatpush1.bf16.msra.mxu1 %v3605_v39  ;;  %v3695_v39 = vld [vmem:[%s5077_s6 + $0x110] ss:$8 sps:$4 sm:$0xff]  }
 0x110   :  { %2150 = vmatprep.subr.bf16.mxu1 %v3610_v44  ;;  %v3700_v44 = vld [vmem:[%s5077_s6 + $0x124] ss:$8 sps:$4 sm:$0xff]  }
 0x113   :  { %2151 = vmatpush1.bf16.msra.mxu1 %v3608_v46  ;;  %v3745_v46 = vld [vmem:[%s5079_s8 + $0x10] sm:$0xff]  }
 0x114   :  { %2152 = vmatprep.subr.bf16.mxu1 %v3613_v20  ;;  %v3698_v20 = vld [vmem:[%s5077_s6 + $0x120] ss:$8 sps:$4 sm:$0xff]  }
 0x115   :  { %v4813_v22 = vpop.f32.mrb[0].mxu1 }
 0x116   :  { %v4815_v14 = vpop.f32.mrb[1].mxu1  ;;  %v1890_v60 = vadd.f32 %v4813_v22, %v558_v56  ;;  %v3747_v22 = vld [vmem:[%s5079_s8 + $0x18] sm:$0xff]  }
 0x117   :  { %v1893_v23 = vpop.f32.mrb[2].mxu1  ;;  %2153 = vmatpush1.bf16.msra.mxu1 %v3611_v63  ;;  %v1892_v62 = vadd.f32 %v4815_v14, %v562_v57  ;;  %v3746_v63 = vld [vmem:[%s5079_s8 + $0x58] sm:$0xff]  }
 0x118   :  { %v1894_v61 = vpop.f32.mrb[3].mxu1  ;;  %2154 = vmatprep.subr.bf16.mxu1 %v3616_v21  ;;  %v3703_v21 = vld [vmem:[%s5077_s6 + $0x134] ss:$8 sps:$4 sm:$0xff]   ;;  %v3701_v14 = vld [vmem:[%s5077_s6 + $0x130] ss:$8 sps:$4 sm:$0xff]  }
 0x119   :  { %v3706_v23 = vld [vmem:[%s5077_s6 + $0x144] ss:$8 sps:$4 sm:$0xff]   ;;  %v3709_v61 = vld [vmem:[%s5077_s6 + $0x154] ss:$8 sps:$4 sm:$0xff]  }
 0x11b   :  { %2155 = vmatpush1.bf16.msra.mxu1 %v3614_v24  ;;  %v3704_v24 = vld [vmem:[%s5077_s6 + $0x140] ss:$8 sps:$4 sm:$0xff]  }
 0x11c   :  { %2156 = vmatprep.subr.bf16.mxu1 %v3619_v6  ;;  %v3707_v6 = vld [vmem:[%s5077_s6 + $0x150] ss:$8 sps:$4 sm:$0xff]  }
 0x11f   :  { %2157 = vmatpush1.bf16.msra.mxu1 %v3617_v2  ;;  %v3712_v2 = vld [vmem:[%s5077_s6 + $0x164] ss:$8 sps:$4 sm:$0xff]  }
 0x120   :  { %2158 = vmatprep.subr.bf16.mxu1 %v3622_v12  ;;  %v3715_v12 = vld [vmem:[%s5077_s6 + $0x174] ss:$8 sps:$4 sm:$0xff]  }
 0x123   :  { %2159 = vmatpush1.bf16.msra.mxu1 %v3620_v26  ;;  %v3718_v26 = vld [vmem:[%s5077_s6 + $0x184] ss:$8 sps:$4 sm:$0xff]  }
 0x124   :  { %2160 = vmatprep.subr.bf16.mxu1 %v3625_v28  ;;  %v3721_v28 = vld [vmem:[%s5077_s6 + $0x194] ss:$8 sps:$4 sm:$0xff]  }
 0x127   :  { %2161 = vmatpush1.bf16.msra.mxu1 %v3623_v31  ;;  %v3724_v31 = vld [vmem:[%s5077_s6 + $0x1a4] ss:$8 sps:$4 sm:$0xff]  }
 0x128   :  { %2162 = vmatprep.subr.bf16.mxu1 %v3628_v33  ;;  %v3727_v33 = vld [vmem:[%s5077_s6 + $0x1b4] ss:$8 sps:$4 sm:$0xff]  }
 0x12b   :  { %2163 = vmatpush1.bf16.msra.mxu1 %v3626_v35  ;;  %v3730_v35 = vld [vmem:[%s5077_s6 + $0x1c4] ss:$8 sps:$4 sm:$0xff]  }
 0x12c   :  { %2164 = vmatprep.subr.bf16.mxu1 %v3631_v37  ;;  %v3733_v37 = vld [vmem:[%s5077_s6 + $0x1d4] ss:$8 sps:$4 sm:$0xff]  }
 0x12f   :  { %2165 = vmatpush1.bf16.msra.mxu1 %v3629_v58  ;;  %v3736_v58 = vld [vmem:[%s5077_s6 + $0x1e4] ss:$8 sps:$4 sm:$0xff]  }
 0x130   :  { %2166 = vmatprep.subr.bf16.mxu1 %v3634_v8  ;;  %v3734_v8 = vld [vmem:[%s5077_s6 + $0x1e0] ss:$8 sps:$4 sm:$0xff]  }
 0x133   :  { %2167 = vmatpush1.bf16.msra.mxu1 %v3632_v41  ;;  %v3737_v41 = vld [vmem:[%s5077_s6 + $0x1f0] ss:$8 sps:$4 sm:$0xff]  }
 0x134   :  { %2168 = vmatprep.subr.bf16.mxu1 %v3637_v42  ;;  %v566_v42 = vrot.slane %v4905_v4, %v3999_v55  ;;  %v3748_v55 = vld [vmem:[%s5079_s8 + $0x60] sm:$0xff]  }
 0x137   :  { %2169 = vmatpush1.bf16.msra.mxu1 %v3635_v45  ;;  %v570_v45 = vrot.slane %v4905_v4, %v3996_v54  ;;  %v3749_v54 = vld [vmem:[%s5079_s8 + $0x20] sm:$0xff]   ;;  %v3750_v4 = vld [vmem:[%s5079_s8 + $0x68] sm:$0xff]  }
 0x138   :  { %2170 = vmatprep.subr.bf16.mxu1 %v3640_v47 }
 0x13b   :  { %2171 = vmatpush1.bf16.msra.mxu1 %v3638_v49 }
 0x13c   :  { %2172 = vmatprep.subr.bf16.mxu1 %v3643_v53 }
 0x13f   :  { %2173 = vmatpush1.bf16.msra.mxu1 %v3641_v29 }
 0x140   :  { %3200 = vmatprep.subr.bf16.mxu1 %v3740_v13 }
 0x142   :  { %2175 = vmatmul.mubr.bf16.vlgmr.msra.gmra.mrb[4].mxu1 %v4616_v19 }
 0x143   :  { %3201 = vmatpush3.bf16.msra.mxu1 %v3741_v15 }
 0x144   :  { %3202 = vmatprep.subr.bf16.mxu1 %v3742_v16 }
 0x147   :  { %3203 = vmatpush3.bf16.msra.mxu1 %v3743_v18 }
 0x148   :  { %3204 = vmatprep.subr.bf16.mxu1 %v3744_v10 }
 0x14b   :  { %3205 = vmatpush3.bf16.msra.mxu1 %v3745_v46 }
 0x14c   :  { %3206 = vmatprep.subr.bf16.mxu1 %v3746_v63 }
 0x14f   :  { %3207 = vmatpush3.bf16.msra.mxu1 %v3747_v22  ;;  %v3199_v22 = vld [vmem:[%s5082_s10] ss:$0 sm:$0xff] }
 0x150   :  { %3208 = vmatprep.subr.bf16.mxu1 %v3748_v55 }
 0x153   :  { %3209 = vmatpush3.bf16.msra.mxu1 %v3749_v54 }
 0x154   :  { %3210 = vmatprep.subr.bf16.mxu1 %v3750_v4 }
 0x197   :  { %v2012_v0 = vpop.f32.mrb[0].mxu0 }
 0x198   :  { %v3223_v3 = vadd.f32 %v2012_v0, %v1890_v60  ;;  %v2014_v5 = vpop.f32.mrb[1].mxu0 }
 0x199   :  { %v3225_v7 = vadd.f32 %v2014_v5, %v1892_v62  ;;  %v2016_v19 = vpop.f32.mrb[2].mxu0  ;;  %v3751_v5 = vld [vmem:[%s5079_s8 + $0x28] sm:$0xff]  }
 0x19a   :  { %3772 = vtanh.f32 %v3223_v3  ;;  %v2017_v9 = vpop.f32.mrb[3].mxu0  ;;  %3211 = vmatpush3.bf16.msra.mxu1 %v3751_v5  ;;  %v3753_v19 = vld [vmem:[%s5079_s8 + $0x30] sm:$0xff]  }
 0x19b   :  { %3774 = vtanh.f32 %v3225_v7  ;;  %v3752_v7 = vld [vmem:[%s5079_s8 + $0x70] sm:$0xff]   ;;  %v3754_v9 = vld [vmem:[%s5079_s8 + $0x78] sm:$0xff]  }
 0x19c   :  { %3212 = vmatprep.subr.bf16.mxu1 %v3752_v7 }
 0x19e   :  { %3213 = vmatpush3.bf16.msra.mxu1 %v3753_v19 }
 0x19f   :  { %3214 = vmatprep.subr.bf16.mxu1 %v3754_v9 }
 0x1a4   :  { %v3773_v43 = vpop.eup %3772 }
 0x1a5   :  { %v3775_v1 = vpop.eup %3774  ;;  %v2187_v17 = vpack.c.bf16 %v3773_v43, %v3773_v43  ;;  %v3755_v43 = vld [vmem:[%s5079_s8 + $0x38] sm:$0xff]  }
 0x1a6   :  { %v2188_v59 = vpack.c.bf16 %v3775_v1, %v3775_v1  ;;  %3215 = vmatpush3.bf16.msra.mxu1 %v3755_v43 }
 0x1a8   :  { %2619 = vmatprep.mubr.bf16.mxu0 %v2188_v59 }
 0x1a9   :  { %2620 = vmatmul.mubr.bf16.vlgmr.msra.gmra.mrb[4].mxu0 %v2187_v17 }
 0x1aa   :  { %2629 = vmatpush1.bf16.msra.mxu0 %v3692_v11  ;;  %v2255_v11 = vld [vmem:[%s5080_s7] sm:$0x3] }
 0x1ab   :  { %2630 = vmatprep.subr.bf16.mxu0 %v3697_v48  ;;  %v2260_v13 = vrot.slane %v2255_v11, %v3990_v52  ;;  %v2264_v1 = vrot.slane %v2255_v11, %v3984_v50  ;;  %v3182_v52 = vld [vmem:[%s5081_s9] ss:$0 sm:$0xff] }
 0x1ae   :  { %2631 = vmatpush1.bf16.msra.mxu0 %v3695_v39 }
 0x1af   :  { %2632 = vmatprep.subr.bf16.mxu0 %v3700_v44 }
 0x1b2   :  { %2633 = vmatpush1.bf16.msra.mxu0 %v3698_v20 }
 0x1b3   :  { %2634 = vmatprep.subr.bf16.mxu0 %v3703_v21 }
 0x1b6   :  { %2635 = vmatpush1.bf16.msra.mxu0 %v3701_v14 }
 0x1b7   :  { %2636 = vmatprep.subr.bf16.mxu0 %v3706_v23 }
 0x1ba   :  { %2637 = vmatpush1.bf16.msra.mxu0 %v3704_v24 }
 0x1bb   :  { %2638 = vmatprep.subr.bf16.mxu0 %v3709_v61 }
 0x1be   :  { %2639 = vmatpush1.bf16.msra.mxu0 %v3707_v6 }
 0x1bf   :  { %2640 = vmatprep.subr.bf16.mxu0 %v3712_v2 }
 0x1c2   :  { %2641 = vmatpush1.bf16.msra.mxu0 %v3710_v51 }
 0x1c3   :  { %2642 = vmatprep.subr.bf16.mxu0 %v3715_v12 }
 0x1c6   :  { %2643 = vmatpush1.bf16.msra.mxu0 %v3713_v25 }
 0x1c7   :  { %2644 = vmatprep.subr.bf16.mxu0 %v3718_v26 }
 0x1ca   :  { %2645 = vmatpush1.bf16.msra.mxu0 %v3716_v27 }
 0x1cb   :  { %2646 = vmatprep.subr.bf16.mxu0 %v3721_v28 }
 0x1ce   :  { %2647 = vmatpush1.bf16.msra.mxu0 %v3719_v30 }
 0x1cf   :  { %2648 = vmatprep.subr.bf16.mxu0 %v3724_v31 }
 0x1d2   :  { %2649 = vmatpush1.bf16.msra.mxu0 %v3722_v32 }
 0x1d3   :  { %2650 = vmatprep.subr.bf16.mxu0 %v3727_v33 }
 0x1d6   :  { %2651 = vmatpush1.bf16.msra.mxu0 %v3725_v34 }
 0x1d7   :  { %2652 = vmatprep.subr.bf16.mxu0 %v3730_v35 }
 0x1da   :  { %2653 = vmatpush1.bf16.msra.mxu0 %v3728_v36 }
 0x1db   :  { %2654 = vmatprep.subr.bf16.mxu0 %v3733_v37 }
 0x1de   :  { %2655 = vmatpush1.bf16.msra.mxu0 %v3731_v38 }
 0x1df   :  { %2656 = vmatprep.subr.bf16.mxu0 %v3736_v58 }
 0x1e2   :  { %2657 = vmatpush1.bf16.msra.mxu0 %v3734_v8 }
 0x1e3   :  { %2658 = vmatprep.subr.bf16.mxu0 %v3739_v40 }
 0x1e6   :  { %2659 = vmatpush1.bf16.msra.mxu0 %v3737_v41 }
 0x215   :  { %v2176_v47 = vpop.f32.mrb[4].mxu1 }
 0x216   :  { %v3226_v49 = vadd.f32 %v2176_v47, %v566_v42  ;;  %v2178_v53 = vpop.f32.mrb[5].mxu1 }
 0x217   :  { %v3227_v29 = vadd.f32 %v2178_v53, %v570_v45  ;;  %v2180_v56 = vpop.f32.mrb[6].mxu1 }
 0x218   :  { %3776 = vtanh.f32 %v3226_v49  ;;  %v2181_v57 = vpop.f32.mrb[7].mxu1 }
 0x219   :  { %3778 = vtanh.f32 %v3227_v29 }
 0x222   :  { %v3777_v60 = vpop.eup %3776 }
 0x223   :  { %v3779_v62 = vpop.eup %3778  ;;  %v2189_v3 = vpack.c.bf16 %v3777_v60, %v3777_v60 }
 0x224   :  { %v2190_v0 = vpack.c.bf16 %v3779_v62, %v3779_v62 }
 0x226   :  { %2660 = vmatprep.mubr.bf16.mxu0 %v2190_v0 }
 0x227   :  { %2661 = vmatmul.mubr.bf16.vlgmr.msra.gmra.mrb[4].mxu0 %v2189_v3 }
 0x2fa   :  { %v2662_v48 = vpop.f32.mrb[4].mxu0 }
 0x2fb   :  { %v3228_v15 = vadd.f32 %v2662_v48, %v2260_v13  ;;  %v2664_v59 = vpop.f32.mrb[5].mxu0 }
 0x2fc   :  { %v3229_v16 = vadd.f32 %v2664_v59, %v2264_v1  ;;  %v2666_v17 = vpop.f32.mrb[6].mxu0 }
 0x2fd   :  { %3780 = vtanh.f32 %v3228_v15  ;;  %v2667_v18 = vpop.f32.mrb[7].mxu0 }
 0x2fe   :  { %3782 = vtanh.f32 %v3229_v16 }
 0x307   :  { %v3781_v10 = vpop.eup %3780 }
 0x308   :  { %v3783_v39 = vpop.eup %3782  ;;  %v2671_v46 = vpack.c.bf16 %v3781_v10, %v3781_v10 }
 0x309   :  { %v2672_v44 = vpack.c.bf16 %v3783_v39, %v3783_v39 }
 0x30b   :  { %2840 = vmatprep.mubr.bf16.mxu1 %v2672_v44 }
 0x30c   :  { %2841 = vmatmul.mubr.bf16.vlgmr.msra.gmra.mrb[8].mxu1 %v2671_v46 }
 0x3df   :  { %v3216_v20 = vpop.f32.mrb[8].mxu1 }
 0x3e0   :  { %v3217_v50 = vpop.f32.mrb[9].mxu1 }
 0x3e1   :  { %v3218_v63 = vadd.f32 %v3217_v50, %v3216_v20  ;;  %v3219_v21 = vpop.f32.mrb[10].mxu1 }
 0x3e2   :  { %v3220_v14 = vpop.f32.mrb[11].mxu1 }
 0x3e3   :  { %v2843_v23 = vadd.f32 %v3218_v63, %v3182_v52 }
 0x3e5   :  { %v2855_v24 = vadd.f32 %v3199_v22, %v2843_v23 }
 0x3e7   :  { %2857 = vst.msk [vmem:[%s5083_s11] sm:$0x3] %vm2856_vm9, %v2855_v24 }

</bundles_post_ra>
